<compile_context>
chip_gen: v6e
topology: v6e:2x2x1
jax: 0.10.0
libtpu: 0.0.40
codegen_flags: <defaults>
</compile_context>

<pallas_src>
import math

import jax
import jax.numpy as jnp
from jax import lax
from jax.experimental import pallas as pl
from jax.experimental.pallas import tpu as pltpu


# -----------------------------------------------------------------------------
# Fused kernel factory
# -----------------------------------------------------------------------------
def _make_fused_kernel(*, heads: int, dims: int, batch_tile: int, seq: int,
                       has_mask: bool, emit_matrix: bool, per_head_w2: bool):
    H, D, Bt, S = heads, dims, batch_tile, seq
    HD = H * D
    rows = Bt * S

    def kernel(*refs):
        idx = 0
        x_ref = refs[idx]; idx += 1
        if has_mask:
            mask_ref = refs[idx]; idx += 1
        w1_ref = refs[idx]; idx += 1
        b1_ref = refs[idx]; idx += 1
        w2_ref = refs[idx]; idx += 1
        b2_ref = refs[idx]; idx += 1
        wo_ref = refs[idx]; idx += 1
        bo_ref = refs[idx]; idx += 1
        out_ref = refs[idx]; idx += 1
        matrix_ref = None
        if emit_matrix:
            matrix_ref = refs[idx]; idx += 1
        cat_ref = refs[idx]; idx += 1          # VMEM scratch (rows, HD) f32

        # ---- Layer 1: one wide matmul over all heads & q/k/v -----------------
        x = x_ref[...].reshape(rows, x_ref.shape[-1])          # (rows, E) bf16
        h1 = (jnp.dot(x, w1_ref[...], preferred_element_type=jnp.float32)
              + b1_ref[...])
        h1 = jnp.maximum(h1, 0.0)                               # ReLU
        h1b = h1.astype(jnp.bfloat16)

        # ---- Layer 2 ---------------------------------------------------------
        if per_head_w2:
            # Per-head contraction: lane-aligned (D multiple of 128) slices.
            qkv_heads = []
            for i in range(3 * H):
                hi = h1b[:, i * D:(i + 1) * D]
                qkv_heads.append(
                    jnp.dot(hi, w2_ref[i], preferred_element_type=jnp.float32)
                    + b2_ref[:, i * D:(i + 1) * D])
            q_heads = qkv_heads[:H]
            k_heads = qkv_heads[H:2 * H]
            v_heads = qkv_heads[2 * H:]
        else:
            # Small D: dense block-diagonal matmul keeps the MXU lanes filled.
            qkv = (jnp.dot(h1b, w2_ref[...], preferred_element_type=jnp.float32)
                   + b2_ref[...])
            q_heads = [qkv[:, hh * D:(hh + 1) * D] for hh in range(H)]
            k_heads = [qkv[:, HD + hh * D:HD + (hh + 1) * D] for hh in range(H)]
            v_heads = [qkv[:, 2 * HD + hh * D:2 * HD + (hh + 1) * D]
                       for hh in range(H)]

        if has_mask:
            add_mask = mask_ref[...]            # (S, S) f32, hoisted once

        # ---- Per-(batch, head) attention --------------------------------------
        # 1/sqrt(D) scale is already folded into the packed q weights/bias.
        for bt in range(Bt):
            r0 = bt * S
            for hh in range(H):
                qh = q_heads[hh][r0:r0 + S].astype(jnp.bfloat16)
                kh = k_heads[hh][r0:r0 + S].astype(jnp.bfloat16)
                vh = v_heads[hh][r0:r0 + S].astype(jnp.bfloat16)

                # q @ k^T without materializing a transpose of k.
                scores = lax.dot_general(
                    qh, kh, (((1,), (1,)), ((), ())),
                    preferred_element_type=jnp.float32)         # (S, S) f32
                if has_mask:
                    scores = scores + add_mask

                m = jnp.max(scores, axis=-1, keepdims=True)
                e = jnp.exp(scores - m)
                denom = jnp.sum(e, axis=-1, keepdims=True)
                # Exact softmax on the emit_matrix path, approx (EUP) otherwise.
                attn = e * pl.reciprocal(denom, approx=not emit_matrix)

                ho = jnp.dot(attn.astype(jnp.bfloat16), vh,
                             preferred_element_type=jnp.float32)  # (S, D) f32
                cat_ref[r0:r0 + S, hh * D:(hh + 1) * D] = ho

                if emit_matrix and hh == H - 1:
                    matrix_ref[bt] = attn       # PyTorch keeps the last head's

        # ---- Final output Linear ----------------------------------------------
        out = (jnp.dot(cat_ref[...].astype(jnp.bfloat16), wo_ref[...],
                       preferred_element_type=jnp.float32) + bo_ref[...])
        out_ref[...] = out.reshape(Bt, S, HD)

    return kernel


# -----------------------------------------------------------------------------
# Weight packing (trace-time, outside the kernel)
# -----------------------------------------------------------------------------
def _pack_weights(params, *, per_head_w2: bool):
    H, E, D = params["wq1"].shape
    HD = H * D
    scale = 1.0 / math.sqrt(float(D))

    def pack_w1(w):   # (H, E, D) -> (E, H*D), head-major feature order
        return jnp.transpose(w, (1, 0, 2)).reshape(E, HD)

    def pack_b(b):    # (H, 1, D) -> (H*D,)
        return b.reshape(HD)

    w1 = jnp.concatenate([pack_w1(params["wq1"]),
                          pack_w1(params["wk1"]),
                          pack_w1(params["wv1"])], axis=-1)             # (E, 3HD)
    b1 = jnp.concatenate([pack_b(params["bq1"]),
                          pack_b(params["bk1"]),
                          pack_b(params["bv1"])], axis=-1)[None, :]     # (1, 3HD)

    # Fold the softmax 1/sqrt(D) scale into the q branch of layer 2.
    wq2 = params["wq2"] * scale
    bq2 = params["bq2"] * scale

    w2_all = jnp.concatenate([wq2, params["wk2"], params["wv2"]], axis=0)  # (3H,D,D)
    b2 = jnp.concatenate([pack_b(bq2),
                          pack_b(params["bk2"]),
                          pack_b(params["bv2"])], axis=-1)[None, :]        # (1, 3HD)

    if per_head_w2:
        w2 = w2_all                                         # (3H, D, D)
    else:
        eye = jnp.eye(3 * H, dtype=w2_all.dtype)
        w2 = jnp.einsum("hij,hg->higj", w2_all, eye).reshape(3 * HD, 3 * HD)

    return (w1.astype(jnp.bfloat16), b1.astype(jnp.float32),
            w2.astype(jnp.bfloat16), b2.astype(jnp.float32),
            params["w_out"].astype(jnp.bfloat16),
            params["b_out"].reshape(1, HD).astype(jnp.float32))


# -----------------------------------------------------------------------------
# Parameter init (PyTorch Linear shapes, stored pre-transposed as (in, out))
# -----------------------------------------------------------------------------
def init_params(key, s_a_unit_count, dimensions, embedding_dims):
    H, D, E = s_a_unit_count, dimensions, embedding_dims
    keys = jax.random.split(key, 16)

    def lin(k, fan_in, shape):
        bound = 1.0 / math.sqrt(fan_in)
        return jax.random.uniform(k, shape, jnp.float32, -bound, bound)

    params = {}
    for name, off in [("q", 0), ("k", 4), ("v", 8)]:
        params[f"w{name}1"] = lin(keys[off + 0], E, (H, E, D))
        params[f"b{name}1"] = lin(keys[off + 1], E, (H, 1, D))
        params[f"w{name}2"] = lin(keys[off + 2], D, (H, D, D))
        params[f"b{name}2"] = lin(keys[off + 3], D, (H, 1, D))
    HD = H * D
    params["w_out"] = lin(keys[12], HD, (HD, HD))   # (in, out)
    params["b_out"] = lin(keys[13], HD, (HD,))
    return params


# -----------------------------------------------------------------------------
# Module wrapper
# -----------------------------------------------------------------------------
def multi_head_attention_unit(x, params, *, need_mask, return_matrix=False):
    """x: (B, S, E) float32. Returns (out, matrix) matching the PyTorch module."""
    B, S, E = x.shape
    H, _, D = params["wq1"].shape
    HD = H * D

    per_head_w2 = (D % 128 == 0)
    w1, b1, w2, b2, wo, bo = _pack_weights(params, per_head_w2=per_head_w2)

    # ---- batch tiling: fill the MXU M dimension with Bt*S rows per grid step.
    target_rows = 256
    desired = max(1, min(B, -(-target_rows // S)))
    Bt = 1
    for cand in range(1, B + 1):
        if B % cand == 0 and cand <= desired:
            Bt = cand
    # v7x: keep >= 2 grid steps (2 TensorCores) if MXU fill stays reasonable.
    if B // Bt < 2 and Bt % 2 == 0 and (Bt // 2) * S >= 128:
        Bt //= 2
    grid = (B // Bt,)

    add_mask = None
    if need_mask:
        row = jnp.arange(S)[:, None]
        col = jnp.arange(S)[None, :]
        add_mask = jnp.where(col <= row, 0.0, -1e30).astype(jnp.float32)

    kernel = _make_fused_kernel(heads=H, dims=D, batch_tile=Bt, seq=S,
                                has_mask=need_mask, emit_matrix=return_matrix,
                                per_head_w2=per_head_w2)

    xb = x.astype(jnp.bfloat16)   # halve the activation read DMA

    # ---- VMEM budget estimate (with headroom) ----
    rows = Bt * S
    weight_bytes = (w1.size + w2.size + wo.size) * 2 + (b1.size + b2.size + bo.size) * 4
    if need_mask:
        weight_bytes += S * S * 4
    act_bytes = rows * E * 2 * 2 + rows * HD * 4 * 2
    if return_matrix:
        act_bytes += Bt * S * S * 4 * 2
    tmp_bytes = rows * 3 * HD * 4 * 4 + rows * HD * 4
    estimate = 2 * weight_bytes + act_bytes + tmp_bytes
    vmem_limit = int(min(64 * 2 ** 20, max(32 * 2 ** 20, 2 * estimate)))

    def run(single_buffer_weights):
        def const_spec(shape):
            nd = len(shape)
            idx_map = lambda b, _nd=nd: (0,) * _nd
            if single_buffer_weights:
                # Constant index_map => weights never change; 1 buffer halves
                # their VMEM footprint (matters on v7x's 64 MiB VMEM).
                return pl.BlockSpec(shape, idx_map, pipeline_mode=pl.Buffered(1))
            return pl.BlockSpec(shape, idx_map)

        in_specs = [pl.BlockSpec((Bt, S, E), lambda b: (b, 0, 0))]
        inputs = [xb]
        if need_mask:
            in_specs.append(const_spec((S, S)))
            inputs.append(add_mask)
        in_specs += [const_spec(w1.shape), const_spec(b1.shape),
                     const_spec(w2.shape), const_spec(b2.shape),
                     const_spec(wo.shape), const_spec(bo.shape)]
        inputs += [w1, b1, w2, b2, wo, bo]

        out_specs = [pl.BlockSpec((Bt, S, HD), lambda b: (b, 0, 0))]
        out_shapes = [jax.ShapeDtypeStruct((B, S, HD), jnp.float32)]
        if return_matrix:
            out_specs.append(pl.BlockSpec((Bt, S, S), lambda b: (b, 0, 0)))
            out_shapes.append(jax.ShapeDtypeStruct((B, S, S), jnp.float32))

        return pl.pallas_call(
            kernel,
            out_shape=tuple(out_shapes),
            grid_spec=pltpu.PrefetchScalarGridSpec(
                num_scalar_prefetch=0,
                grid=grid,
                in_specs=in_specs,
                out_specs=out_specs,
                scratch_shapes=[pltpu.VMEM((rows, HD), jnp.float32)],
            ),
            compiler_params=pltpu.CompilerParams(
                dimension_semantics=("parallel",),
                vmem_limit_bytes=vmem_limit),
        )(*inputs)

    try:
        results = run(True)
    except Exception:
        # Fallback if single-buffered (pipeline_mode) specs are unsupported.
        results = run(False)

    out = results[0]
    matrix = results[1] if return_matrix else None
    return out, matrix


# -----------------------------------------------------------------------------
# Pure-JAX f32 reference (for correctness validation)
# -----------------------------------------------------------------------------
def reference_forward(x, params, *, need_mask, return_matrix):
    H, _, D = params["wq1"].shape
    B, S, _ = x.shape
    scale = 1.0 / math.sqrt(float(D))
    mask = None
    if need_mask:
        mask = (jnp.arange(S)[None, :] <= jnp.arange(S)[:, None])

    def mlp(w1, b1, w2, b2):
        h1 = jnp.maximum(jnp.einsum("bse,ed->bsd", x, w1) + b1, 0.0)
        return jnp.einsum("bsd,df->bsf", h1, w2) + b2

    outs, matrix = [], None
    for h in range(H):
        q = mlp(params["wq1"][h], params["bq1"][h], params["wq2"][h], params["bq2"][h])
        k = mlp(params["wk1"][h], params["bk1"][h], params["wk2"][h], params["bk2"][h])
        v = mlp(params["wv1"][h], params["bv1"][h], params["wv2"][h], params["bv2"][h])
        scores = jnp.einsum("bqd,bkd->bqk", q, k) * scale
        if need_mask:
            scores = jnp.where(mask[None], scores, -1e30)
        attn = jax.nn.softmax(scores, axis=-1)
        outs.append(jnp.einsum("bqk,bkd->bqd", attn, v))
        matrix = attn
    cat = jnp.concatenate(outs, axis=-1)
    out = jnp.einsum("bsf,fg->bsg", cat, params["w_out"]) + params["b_out"]
    return out, (matrix if return_matrix else None)


if __name__ == "__main__":
    # --- Config 1: small module-consistent shapes, causal mask, block-diag W2 path.
    B, S = 2, 8
    embedding_dims, dimensions, s_a_unit_count = 32, 16, 4

    key = jax.random.PRNGKey(0)
    kx, kp, kx2, kp2 = jax.random.split(key, 4)
    x = jax.random.normal(kx, (B, S, embedding_dims), dtype=jnp.float32)
    params = init_params(kp, s_a_unit_count, dimensions, embedding_dims)

    out, matrix = multi_head_attention_unit(x, params, need_mask=True,
                                            return_matrix=True)
    out = jax.block_until_ready(out)
    matrix = jax.block_until_ready(matrix)

    assert out.shape == (B, S, s_a_unit_count * dimensions)
    assert matrix.shape == (B, S, S)
    assert bool(jnp.all(jnp.isfinite(out)))
    assert bool(jnp.all(jnp.isfinite(matrix)))

    ref_out, ref_matrix = reference_forward(x, params, need_mask=True,
                                            return_matrix=True)
    assert bool(jnp.allclose(out, ref_out, atol=5e-2, rtol=5e-2)), \
        float(jnp.max(jnp.abs(out - ref_out)))
    assert bool(jnp.allclose(matrix, ref_matrix, atol=3e-2, rtol=5e-2)), \
        float(jnp.max(jnp.abs(matrix - ref_matrix)))

    # No-matrix path (no (S,S) HBM writeback, approx reciprocal).
    out2, matrix2 = multi_head_attention_unit(x, params, need_mask=True,
                                              return_matrix=False)
    out2 = jax.block_until_ready(out2)
    assert matrix2 is None
    assert bool(jnp.allclose(out2, ref_out, atol=5e-2, rtol=5e-2))

    # --- Config 2: D = 128 exercises the per-head layer-2 contraction path
    #     (no block-diagonal weights), no mask.
    B2, S2 = 2, 8
    E2, D2, H2 = 128, 128, 2
    x2 = jax.random.normal(kx2, (B2, S2, E2), dtype=jnp.float32)
    params2 = init_params(kp2, H2, D2, E2)

    out3, _ = multi_head_attention_unit(x2, params2, need_mask=False,
                                        return_matrix=False)
    out3 = jax.block_until_ready(out3)
    ref_out3, _ = reference_forward(x2, params2, need_mask=False,
                                    return_matrix=False)
    assert out3.shape == (B2, S2, H2 * D2)
    assert bool(jnp.all(jnp.isfinite(out3)))
    assert bool(jnp.allclose(out3, ref_out3, atol=5e-2, rtol=5e-2)), \
        float(jnp.max(jnp.abs(out3 - ref_out3)))

    print("KERNEL_OK")
</pallas_src>

<mosaic_0001>
module attributes {stable_mosaic.version = 11 : i64} {
  func.func @kernel(%arg0: i32, %arg1: memref<2x8x32xbf16, #tpu.memory_space<vmem>>, %arg2: memref<8x8xf32, #tpu.memory_space<vmem>>, %arg3: memref<32x192xbf16, #tpu.memory_space<vmem>>, %arg4: memref<1x192xf32, #tpu.memory_space<vmem>>, %arg5: memref<192x192xbf16, #tpu.memory_space<vmem>>, %arg6: memref<1x192xf32, #tpu.memory_space<vmem>>, %arg7: memref<64x64xbf16, #tpu.memory_space<vmem>>, %arg8: memref<1x64xf32, #tpu.memory_space<vmem>>, %arg9: memref<2x8x64xf32, #tpu.memory_space<vmem>>, %arg10: memref<2x8x8xf32, #tpu.memory_space<vmem>>, %arg11: memref<16x64xf32, #tpu.memory_space<vmem>>) attributes {dimension_semantics = [#tpu.dimension_semantics<parallel>], iteration_bounds = array<i64: 1>, scalar_prefetch = 0 : i64, scratch_operands = 1 : i64, tpu.core_type = #tpu.core_type<tc>, window_params = [{transform_indices = @transform_0, window_bounds = array<i64: 2, 8, 32>}, {pipeline_mode = #tpu.pipeline_mode<synchronous>, transform_indices = @transform_1, window_bounds = array<i64: 8, 8>}, {pipeline_mode = #tpu.pipeline_mode<synchronous>, transform_indices = @transform_2, window_bounds = array<i64: 32, 192>}, {pipeline_mode = #tpu.pipeline_mode<synchronous>, transform_indices = @transform_3, window_bounds = array<i64: 1, 192>}, {pipeline_mode = #tpu.pipeline_mode<synchronous>, transform_indices = @transform_4, window_bounds = array<i64: 192, 192>}, {pipeline_mode = #tpu.pipeline_mode<synchronous>, transform_indices = @transform_5, window_bounds = array<i64: 1, 192>}, {pipeline_mode = #tpu.pipeline_mode<synchronous>, transform_indices = @transform_6, window_bounds = array<i64: 64, 64>}, {pipeline_mode = #tpu.pipeline_mode<synchronous>, transform_indices = @transform_7, window_bounds = array<i64: 1, 64>}, {transform_indices = @transform_8, window_bounds = array<i64: 2, 8, 64>}, {transform_indices = @transform_9, window_bounds = array<i64: 2, 8, 8>}]} {
    %c0 = arith.constant 0 : index
    %c0_0 = arith.constant 0 : index
    %c0_1 = arith.constant 0 : index
    %0 = vector.load %arg1[%c0, %c0_0, %c0_1] : memref<2x8x32xbf16, #tpu.memory_space<vmem>>, vector<2x8x32xbf16>
    %1 = vector.shape_cast %0 : vector<2x8x32xbf16> to vector<16x32xbf16>
    %c0_2 = arith.constant 0 : index
    %c0_3 = arith.constant 0 : index
    %2 = vector.load %arg3[%c0_2, %c0_3] : memref<32x192xbf16, #tpu.memory_space<vmem>>, vector<32x192xbf16>
    %cst = arith.constant dense<0.000000e+00> : vector<16x192xf32>
    %3 = tpu.matmul %1, %2, %cst {dimension_numbers = #tpu.dot_dimension_numbers<[1], [0], [0], [1], [0, 0, 1, 1], [], []>} : vector<16x32xbf16>, vector<32x192xbf16>, vector<16x192xf32> -> vector<16x192xf32>
    %c0_4 = arith.constant 0 : index
    %c0_5 = arith.constant 0 : index
    %4 = vector.load %arg4[%c0_4, %c0_5] : memref<1x192xf32, #tpu.memory_space<vmem>>, vector<1x192xf32>
    %5 = vector.broadcast %4 : vector<1x192xf32> to vector<16x192xf32>
    %6 = arith.addf %3, %5 : vector<16x192xf32>
    %cst_6 = arith.constant 0.000000e+00 : f32
    %7 = vector.broadcast %cst_6 : f32 to vector<16x192xf32>
    %8 = arith.maximumf %6, %7 : vector<16x192xf32>
    %9 = arith.truncf %8 : vector<16x192xf32> to vector<16x192xbf16>
    %c0_7 = arith.constant 0 : index
    %c0_8 = arith.constant 0 : index
    %10 = vector.load %arg5[%c0_7, %c0_8] : memref<192x192xbf16, #tpu.memory_space<vmem>>, vector<192x192xbf16>
    %cst_9 = arith.constant dense<0.000000e+00> : vector<16x192xf32>
    %11 = tpu.matmul %9, %10, %cst_9 {dimension_numbers = #tpu.dot_dimension_numbers<[1], [0], [0], [1], [0, 0, 1, 1], [], []>} : vector<16x192xbf16>, vector<192x192xbf16>, vector<16x192xf32> -> vector<16x192xf32>
    %c0_10 = arith.constant 0 : index
    %c0_11 = arith.constant 0 : index
    %12 = vector.load %arg6[%c0_10, %c0_11] : memref<1x192xf32, #tpu.memory_space<vmem>>, vector<1x192xf32>
    %13 = vector.broadcast %12 : vector<1x192xf32> to vector<16x192xf32>
    %14 = arith.addf %11, %13 : vector<16x192xf32>
    %15 = vector.extract_strided_slice %14 {offsets = [0, 0], sizes = [16, 16], strides = [1, 1]} : vector<16x192xf32> to vector<16x16xf32>
    %16 = vector.extract_strided_slice %14 {offsets = [0, 16], sizes = [16, 16], strides = [1, 1]} : vector<16x192xf32> to vector<16x16xf32>
    %17 = vector.extract_strided_slice %14 {offsets = [0, 32], sizes = [16, 16], strides = [1, 1]} : vector<16x192xf32> to vector<16x16xf32>
    %18 = vector.extract_strided_slice %14 {offsets = [0, 48], sizes = [16, 16], strides = [1, 1]} : vector<16x192xf32> to vector<16x16xf32>
    %19 = vector.extract_strided_slice %14 {offsets = [0, 64], sizes = [16, 16], strides = [1, 1]} : vector<16x192xf32> to vector<16x16xf32>
    %20 = vector.extract_strided_slice %14 {offsets = [0, 80], sizes = [16, 16], strides = [1, 1]} : vector<16x192xf32> to vector<16x16xf32>
    %21 = vector.extract_strided_slice %14 {offsets = [0, 96], sizes = [16, 16], strides = [1, 1]} : vector<16x192xf32> to vector<16x16xf32>
    %22 = vector.extract_strided_slice %14 {offsets = [0, 112], sizes = [16, 16], strides = [1, 1]} : vector<16x192xf32> to vector<16x16xf32>
    %23 = vector.extract_strided_slice %14 {offsets = [0, 128], sizes = [16, 16], strides = [1, 1]} : vector<16x192xf32> to vector<16x16xf32>
    %24 = vector.extract_strided_slice %14 {offsets = [0, 144], sizes = [16, 16], strides = [1, 1]} : vector<16x192xf32> to vector<16x16xf32>
    %25 = vector.extract_strided_slice %14 {offsets = [0, 160], sizes = [16, 16], strides = [1, 1]} : vector<16x192xf32> to vector<16x16xf32>
    %26 = vector.extract_strided_slice %14 {offsets = [0, 176], sizes = [16, 16], strides = [1, 1]} : vector<16x192xf32> to vector<16x16xf32>
    %c0_12 = arith.constant 0 : index
    %c0_13 = arith.constant 0 : index
    %27 = vector.load %arg2[%c0_12, %c0_13] : memref<8x8xf32, #tpu.memory_space<vmem>>, vector<8x8xf32>
    %28 = vector.extract_strided_slice %15 {offsets = [0, 0], sizes = [8, 16], strides = [1, 1]} : vector<16x16xf32> to vector<8x16xf32>
    %29 = arith.truncf %28 : vector<8x16xf32> to vector<8x16xbf16>
    %30 = vector.extract_strided_slice %19 {offsets = [0, 0], sizes = [8, 16], strides = [1, 1]} : vector<16x16xf32> to vector<8x16xf32>
    %31 = arith.truncf %30 : vector<8x16xf32> to vector<8x16xbf16>
    %32 = vector.extract_strided_slice %23 {offsets = [0, 0], sizes = [8, 16], strides = [1, 1]} : vector<16x16xf32> to vector<8x16xf32>
    %33 = arith.truncf %32 : vector<8x16xf32> to vector<8x16xbf16>
    %cst_14 = arith.constant dense<0.000000e+00> : vector<8x8xf32>
    %34 = tpu.matmul %29, %31, %cst_14 {dimension_numbers = #tpu.dot_dimension_numbers<[1], [1], [0], [0], [0, 0, 1, 0], [], []>} : vector<8x16xbf16>, vector<8x16xbf16>, vector<8x8xf32> -> vector<8x8xf32>
    %35 = arith.addf %34, %27 : vector<8x8xf32>
    %cst_15 = arith.constant dense<0xFF800000> : vector<8xf32>
    %36 = vector.multi_reduction <maximumf>, %35, %cst_15 [1] : vector<8x8xf32> to vector<8xf32>
    %37 = vector.shape_cast %36 : vector<8xf32> to vector<8x1xf32>
    %38 = vector.broadcast %37 : vector<8x1xf32> to vector<8x8xf32>
    %39 = arith.subf %35, %38 : vector<8x8xf32>
    %40 = math.exp %39 : vector<8x8xf32>
    %cst_16 = arith.constant dense<0.000000e+00> : vector<8xf32>
    %41 = vector.multi_reduction <add>, %40, %cst_16 [1] : vector<8x8xf32> to vector<8xf32>
    %42 = vector.shape_cast %41 : vector<8xf32> to vector<8x1xf32>
    %43 = tpu.reciprocal %42 : vector<8x1xf32> -> vector<8x1xf32>
    %44 = vector.broadcast %43 : vector<8x1xf32> to vector<8x8xf32>
    %45 = arith.mulf %40, %44 : vector<8x8xf32>
    %46 = arith.truncf %45 : vector<8x8xf32> to vector<8x8xbf16>
    %cst_17 = arith.constant dense<0.000000e+00> : vector<8x16xf32>
    %47 = tpu.matmul %46, %33, %cst_17 {dimension_numbers = #tpu.dot_dimension_numbers<[1], [0], [0], [1], [0, 0, 1, 1], [], []>} : vector<8x8xbf16>, vector<8x16xbf16>, vector<8x16xf32> -> vector<8x16xf32>
    %c0_18 = arith.constant 0 : index
    %c0_19 = arith.constant 0 : index
    %48 = vector.load %arg11[%c0_18, %c0_19] : memref<16x64xf32, #tpu.memory_space<vmem>>, vector<8x16xf32>
    tpu.vector_store %arg11[%c0_18, %c0_19], %47 {strides = array<i32>} : memref<16x64xf32, #tpu.memory_space<vmem>>, vector<8x16xf32>,
    %49 = vector.extract_strided_slice %16 {offsets = [0, 0], sizes = [8, 16], strides = [1, 1]} : vector<16x16xf32> to vector<8x16xf32>
    %50 = arith.truncf %49 : vector<8x16xf32> to vector<8x16xbf16>
    %51 = vector.extract_strided_slice %20 {offsets = [0, 0], sizes = [8, 16], strides = [1, 1]} : vector<16x16xf32> to vector<8x16xf32>
    %52 = arith.truncf %51 : vector<8x16xf32> to vector<8x16xbf16>
    %53 = vector.extract_strided_slice %24 {offsets = [0, 0], sizes = [8, 16], strides = [1, 1]} : vector<16x16xf32> to vector<8x16xf32>
    %54 = arith.truncf %53 : vector<8x16xf32> to vector<8x16xbf16>
    %cst_20 = arith.constant dense<0.000000e+00> : vector<8x8xf32>
    %55 = tpu.matmul %50, %52, %cst_20 {dimension_numbers = #tpu.dot_dimension_numbers<[1], [1], [0], [0], [0, 0, 1, 0], [], []>} : vector<8x16xbf16>, vector<8x16xbf16>, vector<8x8xf32> -> vector<8x8xf32>
    %56 = arith.addf %55, %27 : vector<8x8xf32>
    %cst_21 = arith.constant dense<0xFF800000> : vector<8xf32>
    %57 = vector.multi_reduction <maximumf>, %56, %cst_21 [1] : vector<8x8xf32> to vector<8xf32>
    %58 = vector.shape_cast %57 : vector<8xf32> to vector<8x1xf32>
    %59 = vector.broadcast %58 : vector<8x1xf32> to vector<8x8xf32>
    %60 = arith.subf %56, %59 : vector<8x8xf32>
    %61 = math.exp %60 : vector<8x8xf32>
    %cst_22 = arith.constant dense<0.000000e+00> : vector<8xf32>
    %62 = vector.multi_reduction <add>, %61, %cst_22 [1] : vector<8x8xf32> to vector<8xf32>
    %63 = vector.shape_cast %62 : vector<8xf32> to vector<8x1xf32>
    %64 = tpu.reciprocal %63 : vector<8x1xf32> -> vector<8x1xf32>
    %65 = vector.broadcast %64 : vector<8x1xf32> to vector<8x8xf32>
    %66 = arith.mulf %61, %65 : vector<8x8xf32>
    %67 = arith.truncf %66 : vector<8x8xf32> to vector<8x8xbf16>
    %cst_23 = arith.constant dense<0.000000e+00> : vector<8x16xf32>
    %68 = tpu.matmul %67, %54, %cst_23 {dimension_numbers = #tpu.dot_dimension_numbers<[1], [0], [0], [1], [0, 0, 1, 1], [], []>} : vector<8x8xbf16>, vector<8x16xbf16>, vector<8x16xf32> -> vector<8x16xf32>
    %c0_24 = arith.constant 0 : index
    %c16 = arith.constant 16 : index
    %69 = vector.load %arg11[%c0_24, %c16] : memref<16x64xf32, #tpu.memory_space<vmem>>, vector<8x16xf32>
    tpu.vector_store %arg11[%c0_24, %c16], %68 {strides = array<i32>} : memref<16x64xf32, #tpu.memory_space<vmem>>, vector<8x16xf32>,
    %70 = vector.extract_strided_slice %17 {offsets = [0, 0], sizes = [8, 16], strides = [1, 1]} : vector<16x16xf32> to vector<8x16xf32>
    %71 = arith.truncf %70 : vector<8x16xf32> to vector<8x16xbf16>
    %72 = vector.extract_strided_slice %21 {offsets = [0, 0], sizes = [8, 16], strides = [1, 1]} : vector<16x16xf32> to vector<8x16xf32>
    %73 = arith.truncf %72 : vector<8x16xf32> to vector<8x16xbf16>
    %74 = vector.extract_strided_slice %25 {offsets = [0, 0], sizes = [8, 16], strides = [1, 1]} : vector<16x16xf32> to vector<8x16xf32>
    %75 = arith.truncf %74 : vector<8x16xf32> to vector<8x16xbf16>
    %cst_25 = arith.constant dense<0.000000e+00> : vector<8x8xf32>
    %76 = tpu.matmul %71, %73, %cst_25 {dimension_numbers = #tpu.dot_dimension_numbers<[1], [1], [0], [0], [0, 0, 1, 0], [], []>} : vector<8x16xbf16>, vector<8x16xbf16>, vector<8x8xf32> -> vector<8x8xf32>
    %77 = arith.addf %76, %27 : vector<8x8xf32>
    %cst_26 = arith.constant dense<0xFF800000> : vector<8xf32>
    %78 = vector.multi_reduction <maximumf>, %77, %cst_26 [1] : vector<8x8xf32> to vector<8xf32>
    %79 = vector.shape_cast %78 : vector<8xf32> to vector<8x1xf32>
    %80 = vector.broadcast %79 : vector<8x1xf32> to vector<8x8xf32>
    %81 = arith.subf %77, %80 : vector<8x8xf32>
    %82 = math.exp %81 : vector<8x8xf32>
    %cst_27 = arith.constant dense<0.000000e+00> : vector<8xf32>
    %83 = vector.multi_reduction <add>, %82, %cst_27 [1] : vector<8x8xf32> to vector<8xf32>
    %84 = vector.shape_cast %83 : vector<8xf32> to vector<8x1xf32>
    %85 = tpu.reciprocal %84 : vector<8x1xf32> -> vector<8x1xf32>
    %86 = vector.broadcast %85 : vector<8x1xf32> to vector<8x8xf32>
    %87 = arith.mulf %82, %86 : vector<8x8xf32>
    %88 = arith.truncf %87 : vector<8x8xf32> to vector<8x8xbf16>
    %cst_28 = arith.constant dense<0.000000e+00> : vector<8x16xf32>
    %89 = tpu.matmul %88, %75, %cst_28 {dimension_numbers = #tpu.dot_dimension_numbers<[1], [0], [0], [1], [0, 0, 1, 1], [], []>} : vector<8x8xbf16>, vector<8x16xbf16>, vector<8x16xf32> -> vector<8x16xf32>
    %c0_29 = arith.constant 0 : index
    %c32 = arith.constant 32 : index
    %90 = vector.load %arg11[%c0_29, %c32] : memref<16x64xf32, #tpu.memory_space<vmem>>, vector<8x16xf32>
    tpu.vector_store %arg11[%c0_29, %c32], %89 {strides = array<i32>} : memref<16x64xf32, #tpu.memory_space<vmem>>, vector<8x16xf32>,
    %91 = vector.extract_strided_slice %18 {offsets = [0, 0], sizes = [8, 16], strides = [1, 1]} : vector<16x16xf32> to vector<8x16xf32>
    %92 = arith.truncf %91 : vector<8x16xf32> to vector<8x16xbf16>
    %93 = vector.extract_strided_slice %22 {offsets = [0, 0], sizes = [8, 16], strides = [1, 1]} : vector<16x16xf32> to vector<8x16xf32>
    %94 = arith.truncf %93 : vector<8x16xf32> to vector<8x16xbf16>
    %95 = vector.extract_strided_slice %26 {offsets = [0, 0], sizes = [8, 16], strides = [1, 1]} : vector<16x16xf32> to vector<8x16xf32>
    %96 = arith.truncf %95 : vector<8x16xf32> to vector<8x16xbf16>
    %cst_30 = arith.constant dense<0.000000e+00> : vector<8x8xf32>
    %97 = tpu.matmul %92, %94, %cst_30 {dimension_numbers = #tpu.dot_dimension_numbers<[1], [1], [0], [0], [0, 0, 1, 0], [], []>} : vector<8x16xbf16>, vector<8x16xbf16>, vector<8x8xf32> -> vector<8x8xf32>
    %98 = arith.addf %97, %27 : vector<8x8xf32>
    %cst_31 = arith.constant dense<0xFF800000> : vector<8xf32>
    %99 = vector.multi_reduction <maximumf>, %98, %cst_31 [1] : vector<8x8xf32> to vector<8xf32>
    %100 = vector.shape_cast %99 : vector<8xf32> to vector<8x1xf32>
    %101 = vector.broadcast %100 : vector<8x1xf32> to vector<8x8xf32>
    %102 = arith.subf %98, %101 : vector<8x8xf32>
    %103 = math.exp %102 : vector<8x8xf32>
    %cst_32 = arith.constant dense<0.000000e+00> : vector<8xf32>
    %104 = vector.multi_reduction <add>, %103, %cst_32 [1] : vector<8x8xf32> to vector<8xf32>
    %105 = vector.shape_cast %104 : vector<8xf32> to vector<8x1xf32>
    %106 = tpu.reciprocal %105 : vector<8x1xf32> -> vector<8x1xf32>
    %107 = vector.broadcast %106 : vector<8x1xf32> to vector<8x8xf32>
    %108 = arith.mulf %103, %107 : vector<8x8xf32>
    %109 = arith.truncf %108 : vector<8x8xf32> to vector<8x8xbf16>
    %cst_33 = arith.constant dense<0.000000e+00> : vector<8x16xf32>
    %110 = tpu.matmul %109, %96, %cst_33 {dimension_numbers = #tpu.dot_dimension_numbers<[1], [0], [0], [1], [0, 0, 1, 1], [], []>} : vector<8x8xbf16>, vector<8x16xbf16>, vector<8x16xf32> -> vector<8x16xf32>
    %c0_34 = arith.constant 0 : index
    %c48 = arith.constant 48 : index
    %111 = vector.load %arg11[%c0_34, %c48] : memref<16x64xf32, #tpu.memory_space<vmem>>, vector<8x16xf32>
    tpu.vector_store %arg11[%c0_34, %c48], %110 {strides = array<i32>} : memref<16x64xf32, #tpu.memory_space<vmem>>, vector<8x16xf32>,
    %c0_35 = arith.constant 0 : index
    %c0_36 = arith.constant 0 : index
    %c0_37 = arith.constant 0 : index
    %112 = vector.load %arg10[%c0_35, %c0_36, %c0_37] : memref<2x8x8xf32, #tpu.memory_space<vmem>>, vector<1x8x8xf32>
    %113 = vector.shape_cast %112 : vector<1x8x8xf32> to vector<8x8xf32>
    %114 = vector.shape_cast %108 : vector<8x8xf32> to vector<1x8x8xf32>
    tpu.vector_store %arg10[%c0_35, %c0_36, %c0_37], %114 {strides = array<i32>} : memref<2x8x8xf32, #tpu.memory_space<vmem>>, vector<1x8x8xf32>,
    %115 = vector.extract_strided_slice %15 {offsets = [8, 0], sizes = [8, 16], strides = [1, 1]} : vector<16x16xf32> to vector<8x16xf32>
    %116 = arith.truncf %115 : vector<8x16xf32> to vector<8x16xbf16>
    %117 = vector.extract_strided_slice %19 {offsets = [8, 0], sizes = [8, 16], strides = [1, 1]} : vector<16x16xf32> to vector<8x16xf32>
    %118 = arith.truncf %117 : vector<8x16xf32> to vector<8x16xbf16>
    %119 = vector.extract_strided_slice %23 {offsets = [8, 0], sizes = [8, 16], strides = [1, 1]} : vector<16x16xf32> to vector<8x16xf32>
    %120 = arith.truncf %119 : vector<8x16xf32> to vector<8x16xbf16>
    %cst_38 = arith.constant dense<0.000000e+00> : vector<8x8xf32>
    %121 = tpu.matmul %116, %118, %cst_38 {dimension_numbers = #tpu.dot_dimension_numbers<[1], [1], [0], [0], [0, 0, 1, 0], [], []>} : vector<8x16xbf16>, vector<8x16xbf16>, vector<8x8xf32> -> vector<8x8xf32>
    %122 = arith.addf %121, %27 : vector<8x8xf32>
    %cst_39 = arith.constant dense<0xFF800000> : vector<8xf32>
    %123 = vector.multi_reduction <maximumf>, %122, %cst_39 [1] : vector<8x8xf32> to vector<8xf32>
    %124 = vector.shape_cast %123 : vector<8xf32> to vector<8x1xf32>
    %125 = vector.broadcast %124 : vector<8x1xf32> to vector<8x8xf32>
    %126 = arith.subf %122, %125 : vector<8x8xf32>
    %127 = math.exp %126 : vector<8x8xf32>
    %cst_40 = arith.constant dense<0.000000e+00> : vector<8xf32>
    %128 = vector.multi_reduction <add>, %127, %cst_40 [1] : vector<8x8xf32> to vector<8xf32>
    %129 = vector.shape_cast %128 : vector<8xf32> to vector<8x1xf32>
    %130 = tpu.reciprocal %129 : vector<8x1xf32> -> vector<8x1xf32>
    %131 = vector.broadcast %130 : vector<8x1xf32> to vector<8x8xf32>
    %132 = arith.mulf %127, %131 : vector<8x8xf32>
    %133 = arith.truncf %132 : vector<8x8xf32> to vector<8x8xbf16>
    %cst_41 = arith.constant dense<0.000000e+00> : vector<8x16xf32>
    %134 = tpu.matmul %133, %120, %cst_41 {dimension_numbers = #tpu.dot_dimension_numbers<[1], [0], [0], [1], [0, 0, 1, 1], [], []>} : vector<8x8xbf16>, vector<8x16xbf16>, vector<8x16xf32> -> vector<8x16xf32>
    %c8 = arith.constant 8 : index
    %c0_42 = arith.constant 0 : index
    %135 = vector.load %arg11[%c8, %c0_42] : memref<16x64xf32, #tpu.memory_space<vmem>>, vector<8x16xf32>
    tpu.vector_store %arg11[%c8, %c0_42], %134 {strides = array<i32>} : memref<16x64xf32, #tpu.memory_space<vmem>>, vector<8x16xf32>,
    %136 = vector.extract_strided_slice %16 {offsets = [8, 0], sizes = [8, 16], strides = [1, 1]} : vector<16x16xf32> to vector<8x16xf32>
    %137 = arith.truncf %136 : vector<8x16xf32> to vector<8x16xbf16>
    %138 = vector.extract_strided_slice %20 {offsets = [8, 0], sizes = [8, 16], strides = [1, 1]} : vector<16x16xf32> to vector<8x16xf32>
    %139 = arith.truncf %138 : vector<8x16xf32> to vector<8x16xbf16>
    %140 = vector.extract_strided_slice %24 {offsets = [8, 0], sizes = [8, 16], strides = [1, 1]} : vector<16x16xf32> to vector<8x16xf32>
    %141 = arith.truncf %140 : vector<8x16xf32> to vector<8x16xbf16>
    %cst_43 = arith.constant dense<0.000000e+00> : vector<8x8xf32>
    %142 = tpu.matmul %137, %139, %cst_43 {dimension_numbers = #tpu.dot_dimension_numbers<[1], [1], [0], [0], [0, 0, 1, 0], [], []>} : vector<8x16xbf16>, vector<8x16xbf16>, vector<8x8xf32> -> vector<8x8xf32>
    %143 = arith.addf %142, %27 : vector<8x8xf32>
    %cst_44 = arith.constant dense<0xFF800000> : vector<8xf32>
    %144 = vector.multi_reduction <maximumf>, %143, %cst_44 [1] : vector<8x8xf32> to vector<8xf32>
    %145 = vector.shape_cast %144 : vector<8xf32> to vector<8x1xf32>
    %146 = vector.broadcast %145 : vector<8x1xf32> to vector<8x8xf32>
    %147 = arith.subf %143, %146 : vector<8x8xf32>
    %148 = math.exp %147 : vector<8x8xf32>
    %cst_45 = arith.constant dense<0.000000e+00> : vector<8xf32>
    %149 = vector.multi_reduction <add>, %148, %cst_45 [1] : vector<8x8xf32> to vector<8xf32>
    %150 = vector.shape_cast %149 : vector<8xf32> to vector<8x1xf32>
    %151 = tpu.reciprocal %150 : vector<8x1xf32> -> vector<8x1xf32>
    %152 = vector.broadcast %151 : vector<8x1xf32> to vector<8x8xf32>
    %153 = arith.mulf %148, %152 : vector<8x8xf32>
    %154 = arith.truncf %153 : vector<8x8xf32> to vector<8x8xbf16>
    %cst_46 = arith.constant dense<0.000000e+00> : vector<8x16xf32>
    %155 = tpu.matmul %154, %141, %cst_46 {dimension_numbers = #tpu.dot_dimension_numbers<[1], [0], [0], [1], [0, 0, 1, 1], [], []>} : vector<8x8xbf16>, vector<8x16xbf16>, vector<8x16xf32> -> vector<8x16xf32>
    %c8_47 = arith.constant 8 : index
    %c16_48 = arith.constant 16 : index
    %156 = vector.load %arg11[%c8_47, %c16_48] : memref<16x64xf32, #tpu.memory_space<vmem>>, vector<8x16xf32>
    tpu.vector_store %arg11[%c8_47, %c16_48], %155 {strides = array<i32>} : memref<16x64xf32, #tpu.memory_space<vmem>>, vector<8x16xf32>,
    %157 = vector.extract_strided_slice %17 {offsets = [8, 0], sizes = [8, 16], strides = [1, 1]} : vector<16x16xf32> to vector<8x16xf32>
    %158 = arith.truncf %157 : vector<8x16xf32> to vector<8x16xbf16>
    %159 = vector.extract_strided_slice %21 {offsets = [8, 0], sizes = [8, 16], strides = [1, 1]} : vector<16x16xf32> to vector<8x16xf32>
    %160 = arith.truncf %159 : vector<8x16xf32> to vector<8x16xbf16>
    %161 = vector.extract_strided_slice %25 {offsets = [8, 0], sizes = [8, 16], strides = [1, 1]} : vector<16x16xf32> to vector<8x16xf32>
    %162 = arith.truncf %161 : vector<8x16xf32> to vector<8x16xbf16>
    %cst_49 = arith.constant dense<0.000000e+00> : vector<8x8xf32>
    %163 = tpu.matmul %158, %160, %cst_49 {dimension_numbers = #tpu.dot_dimension_numbers<[1], [1], [0], [0], [0, 0, 1, 0], [], []>} : vector<8x16xbf16>, vector<8x16xbf16>, vector<8x8xf32> -> vector<8x8xf32>
    %164 = arith.addf %163, %27 : vector<8x8xf32>
    %cst_50 = arith.constant dense<0xFF800000> : vector<8xf32>
    %165 = vector.multi_reduction <maximumf>, %164, %cst_50 [1] : vector<8x8xf32> to vector<8xf32>
    %166 = vector.shape_cast %165 : vector<8xf32> to vector<8x1xf32>
    %167 = vector.broadcast %166 : vector<8x1xf32> to vector<8x8xf32>
    %168 = arith.subf %164, %167 : vector<8x8xf32>
    %169 = math.exp %168 : vector<8x8xf32>
    %cst_51 = arith.constant dense<0.000000e+00> : vector<8xf32>
    %170 = vector.multi_reduction <add>, %169, %cst_51 [1] : vector<8x8xf32> to vector<8xf32>
    %171 = vector.shape_cast %170 : vector<8xf32> to vector<8x1xf32>
    %172 = tpu.reciprocal %171 : vector<8x1xf32> -> vector<8x1xf32>
    %173 = vector.broadcast %172 : vector<8x1xf32> to vector<8x8xf32>
    %174 = arith.mulf %169, %173 : vector<8x8xf32>
    %175 = arith.truncf %174 : vector<8x8xf32> to vector<8x8xbf16>
    %cst_52 = arith.constant dense<0.000000e+00> : vector<8x16xf32>
    %176 = tpu.matmul %175, %162, %cst_52 {dimension_numbers = #tpu.dot_dimension_numbers<[1], [0], [0], [1], [0, 0, 1, 1], [], []>} : vector<8x8xbf16>, vector<8x16xbf16>, vector<8x16xf32> -> vector<8x16xf32>
    %c8_53 = arith.constant 8 : index
    %c32_54 = arith.constant 32 : index
    %177 = vector.load %arg11[%c8_53, %c32_54] : memref<16x64xf32, #tpu.memory_space<vmem>>, vector<8x16xf32>
    tpu.vector_store %arg11[%c8_53, %c32_54], %176 {strides = array<i32>} : memref<16x64xf32, #tpu.memory_space<vmem>>, vector<8x16xf32>,
    %178 = vector.extract_strided_slice %18 {offsets = [8, 0], sizes = [8, 16], strides = [1, 1]} : vector<16x16xf32> to vector<8x16xf32>
    %179 = arith.truncf %178 : vector<8x16xf32> to vector<8x16xbf16>
    %180 = vector.extract_strided_slice %22 {offsets = [8, 0], sizes = [8, 16], strides = [1, 1]} : vector<16x16xf32> to vector<8x16xf32>
    %181 = arith.truncf %180 : vector<8x16xf32> to vector<8x16xbf16>
    %182 = vector.extract_strided_slice %26 {offsets = [8, 0], sizes = [8, 16], strides = [1, 1]} : vector<16x16xf32> to vector<8x16xf32>
    %183 = arith.truncf %182 : vector<8x16xf32> to vector<8x16xbf16>
    %cst_55 = arith.constant dense<0.000000e+00> : vector<8x8xf32>
    %184 = tpu.matmul %179, %181, %cst_55 {dimension_numbers = #tpu.dot_dimension_numbers<[1], [1], [0], [0], [0, 0, 1, 0], [], []>} : vector<8x16xbf16>, vector<8x16xbf16>, vector<8x8xf32> -> vector<8x8xf32>
    %185 = arith.addf %184, %27 : vector<8x8xf32>
    %cst_56 = arith.constant dense<0xFF800000> : vector<8xf32>
    %186 = vector.multi_reduction <maximumf>, %185, %cst_56 [1] : vector<8x8xf32> to vector<8xf32>
    %187 = vector.shape_cast %186 : vector<8xf32> to vector<8x1xf32>
    %188 = vector.broadcast %187 : vector<8x1xf32> to vector<8x8xf32>
    %189 = arith.subf %185, %188 : vector<8x8xf32>
    %190 = math.exp %189 : vector<8x8xf32>
    %cst_57 = arith.constant dense<0.000000e+00> : vector<8xf32>
    %191 = vector.multi_reduction <add>, %190, %cst_57 [1] : vector<8x8xf32> to vector<8xf32>
    %192 = vector.shape_cast %191 : vector<8xf32> to vector<8x1xf32>
    %193 = tpu.reciprocal %192 : vector<8x1xf32> -> vector<8x1xf32>
    %194 = vector.broadcast %193 : vector<8x1xf32> to vector<8x8xf32>
    %195 = arith.mulf %190, %194 : vector<8x8xf32>
    %196 = arith.truncf %195 : vector<8x8xf32> to vector<8x8xbf16>
    %cst_58 = arith.constant dense<0.000000e+00> : vector<8x16xf32>
    %197 = tpu.matmul %196, %183, %cst_58 {dimension_numbers = #tpu.dot_dimension_numbers<[1], [0], [0], [1], [0, 0, 1, 1], [], []>} : vector<8x8xbf16>, vector<8x16xbf16>, vector<8x16xf32> -> vector<8x16xf32>
    %c8_59 = arith.constant 8 : index
    %c48_60 = arith.constant 48 : index
    %198 = vector.load %arg11[%c8_59, %c48_60] : memref<16x64xf32, #tpu.memory_space<vmem>>, vector<8x16xf32>
    tpu.vector_store %arg11[%c8_59, %c48_60], %197 {strides = array<i32>} : memref<16x64xf32, #tpu.memory_space<vmem>>, vector<8x16xf32>,
    %c1 = arith.constant 1 : index
    %c0_61 = arith.constant 0 : index
    %c0_62 = arith.constant 0 : index
    %199 = vector.load %arg10[%c1, %c0_61, %c0_62] : memref<2x8x8xf32, #tpu.memory_space<vmem>>, vector<1x8x8xf32>
    %200 = vector.shape_cast %199 : vector<1x8x8xf32> to vector<8x8xf32>
    %201 = vector.shape_cast %195 : vector<8x8xf32> to vector<1x8x8xf32>
    tpu.vector_store %arg10[%c1, %c0_61, %c0_62], %201 {strides = array<i32>} : memref<2x8x8xf32, #tpu.memory_space<vmem>>, vector<1x8x8xf32>,
    %c0_63 = arith.constant 0 : index
    %c0_64 = arith.constant 0 : index
    %202 = vector.load %arg11[%c0_63, %c0_64] : memref<16x64xf32, #tpu.memory_space<vmem>>, vector<16x64xf32>
    %203 = arith.truncf %202 : vector<16x64xf32> to vector<16x64xbf16>
    %c0_65 = arith.constant 0 : index
    %c0_66 = arith.constant 0 : index
    %204 = vector.load %arg7[%c0_65, %c0_66] : memref<64x64xbf16, #tpu.memory_space<vmem>>, vector<64x64xbf16>
    %cst_67 = arith.constant dense<0.000000e+00> : vector<16x64xf32>
    %205 = tpu.matmul %203, %204, %cst_67 {dimension_numbers = #tpu.dot_dimension_numbers<[1], [0], [0], [1], [0, 0, 1, 1], [], []>} : vector<16x64xbf16>, vector<64x64xbf16>, vector<16x64xf32> -> vector<16x64xf32>
    %c0_68 = arith.constant 0 : index
    %c0_69 = arith.constant 0 : index
    %206 = vector.load %arg8[%c0_68, %c0_69] : memref<1x64xf32, #tpu.memory_space<vmem>>, vector<1x64xf32>
    %207 = vector.broadcast %206 : vector<1x64xf32> to vector<16x64xf32>
    %208 = arith.addf %205, %207 : vector<16x64xf32>
    %209 = vector.shape_cast %208 : vector<16x64xf32> to vector<2x8x64xf32>
    %c0_70 = arith.constant 0 : index
    %c0_71 = arith.constant 0 : index
    %c0_72 = arith.constant 0 : index
    %210 = vector.load %arg9[%c0_70, %c0_71, %c0_72] : memref<2x8x64xf32, #tpu.memory_space<vmem>>, vector<2x8x64xf32>
    tpu.vector_store %arg9[%c0_70, %c0_71, %c0_72], %209 {strides = array<i32>} : memref<2x8x64xf32, #tpu.memory_space<vmem>>, vector<2x8x64xf32>,
    return
  }
  func.func @transform_0(%arg0: i32) -> (i32, i32, i32) {
    %c0_i32 = arith.constant 0 : i32
    %c0_i32_0 = arith.constant 0 : i32
    %c0_i32_1 = arith.constant 0 : i32
    return %arg0, %c0_i32, %c0_i32_0 : i32, i32, i32
  }
  func.func @transform_1(%arg0: i32) -> (i32, i32) {
    %c0_i32 = arith.constant 0 : i32
    %c0_i32_0 = arith.constant 0 : i32
    %c0_i32_1 = arith.constant 0 : i32
    return %c0_i32, %c0_i32_0 : i32, i32
  }
  func.func @transform_2(%arg0: i32) -> (i32, i32) {
    %c0_i32 = arith.constant 0 : i32
    %c0_i32_0 = arith.constant 0 : i32
    %c0_i32_1 = arith.constant 0 : i32
    return %c0_i32, %c0_i32_0 : i32, i32
  }
  func.func @transform_3(%arg0: i32) -> (i32, i32) {
    %c0_i32 = arith.constant 0 : i32
    %c0_i32_0 = arith.constant 0 : i32
    %c0_i32_1 = arith.constant 0 : i32
    return %c0_i32, %c0_i32_0 : i32, i32
  }
  func.func @transform_4(%arg0: i32) -> (i32, i32) {
    %c0_i32 = arith.constant 0 : i32
    %c0_i32_0 = arith.constant 0 : i32
    %c0_i32_1 = arith.constant 0 : i32
    return %c0_i32, %c0_i32_0 : i32, i32
  }
  func.func @transform_5(%arg0: i32) -> (i32, i32) {
    %c0_i32 = arith.constant 0 : i32
    %c0_i32_0 = arith.constant 0 : i32
    %c0_i32_1 = arith.constant 0 : i32
    return %c0_i32, %c0_i32_0 : i32, i32
  }
  func.func @transform_6(%arg0: i32) -> (i32, i32) {
    %c0_i32 = arith.constant 0 : i32
    %c0_i32_0 = arith.constant 0 : i32
    %c0_i32_1 = arith.constant 0 : i32
    return %c0_i32, %c0_i32_0 : i32, i32
  }
  func.func @transform_7(%arg0: i32) -> (i32, i32) {
    %c0_i32 = arith.constant 0 : i32
    %c0_i32_0 = arith.constant 0 : i32
    %c0_i32_1 = arith.constant 0 : i32
    return %c0_i32, %c0_i32_0 : i32, i32
  }
  func.func @transform_8(%arg0: i32) -> (i32, i32, i32) {
    %c0_i32 = arith.constant 0 : i32
    %c0_i32_0 = arith.constant 0 : i32
    %c0_i32_1 = arith.constant 0 : i32
    return %arg0, %c0_i32, %c0_i32_0 : i32, i32, i32
  }
  func.func @transform_9(%arg0: i32) -> (i32, i32, i32) {
    %c0_i32 = arith.constant 0 : i32
    %c0_i32_0 = arith.constant 0 : i32
    %c0_i32_1 = arith.constant 0 : i32
    return %arg0, %c0_i32, %c0_i32_0 : i32, i32, i32
  }
}

module attributes {stable_mosaic.version = 11 : i64} {
  func.func @kernel(%arg0: i32, %arg1: memref<2x8x32xbf16, #tpu.memory_space<vmem>>, %arg2: memref<8x8xf32, #tpu.memory_space<vmem>>, %arg3: memref<32x192xbf16, #tpu.memory_space<vmem>>, %arg4: memref<1x192xf32, #tpu.memory_space<vmem>>, %arg5: memref<192x192xbf16, #tpu.memory_space<vmem>>, %arg6: memref<1x192xf32, #tpu.memory_space<vmem>>, %arg7: memref<64x64xbf16, #tpu.memory_space<vmem>>, %arg8: memref<1x64xf32, #tpu.memory_space<vmem>>, %arg9: memref<2x8x64xf32, #tpu.memory_space<vmem>>, %arg10: memref<2x8x8xf32, #tpu.memory_space<vmem>>, %arg11: memref<16x64xf32, #tpu.memory_space<vmem>>) attributes {dimension_semantics = [#tpu.dimension_semantics<parallel>], iteration_bounds = array<i64: 1>, scalar_prefetch = 0 : i64, scratch_operands = 1 : i64, tpu.core_type = #tpu.core_type<tc>, window_params = [{transform_indices = @transform_0, window_bounds = array<i64: 2, 8, 32>}, {pipeline_mode = #tpu.pipeline_mode<synchronous>, transform_indices = @transform_1, window_bounds = array<i64: 8, 8>}, {pipeline_mode = #tpu.pipeline_mode<synchronous>, transform_indices = @transform_2, window_bounds = array<i64: 32, 192>}, {pipeline_mode = #tpu.pipeline_mode<synchronous>, transform_indices = @transform_3, window_bounds = array<i64: 1, 192>}, {pipeline_mode = #tpu.pipeline_mode<synchronous>, transform_indices = @transform_4, window_bounds = array<i64: 192, 192>}, {pipeline_mode = #tpu.pipeline_mode<synchronous>, transform_indices = @transform_5, window_bounds = array<i64: 1, 192>}, {pipeline_mode = #tpu.pipeline_mode<synchronous>, transform_indices = @transform_6, window_bounds = array<i64: 64, 64>}, {pipeline_mode = #tpu.pipeline_mode<synchronous>, transform_indices = @transform_7, window_bounds = array<i64: 1, 64>}, {transform_indices = @transform_8, window_bounds = array<i64: 2, 8, 64>}, {transform_indices = @transform_9, window_bounds = array<i64: 2, 8, 8>}]} {
    %c0 = arith.constant 0 : index
    %c0_0 = arith.constant 0 : index
    %c0_1 = arith.constant 0 : index
    %0 = vector.load %arg1[%c0, %c0_0, %c0_1] : memref<2x8x32xbf16, #tpu.memory_space<vmem>>, vector<2x8x32xbf16>
    %1 = vector.shape_cast %0 : vector<2x8x32xbf16> to vector<16x32xbf16>
    %c0_2 = arith.constant 0 : index
    %c0_3 = arith.constant 0 : index
    %2 = vector.load %arg3[%c0_2, %c0_3] : memref<32x192xbf16, #tpu.memory_space<vmem>>, vector<32x192xbf16>
    %cst = arith.constant dense<0.000000e+00> : vector<16x192xf32>
    %3 = tpu.matmul %1, %2, %cst {dimension_numbers = #tpu.dot_dimension_numbers<[1], [0], [0], [1], [0, 0, 1, 1], [], []>} : vector<16x32xbf16>, vector<32x192xbf16>, vector<16x192xf32> -> vector<16x192xf32>
    %c0_4 = arith.constant 0 : index
    %c0_5 = arith.constant 0 : index
    %4 = vector.load %arg4[%c0_4, %c0_5] : memref<1x192xf32, #tpu.memory_space<vmem>>, vector<1x192xf32>
    %5 = vector.broadcast %4 : vector<1x192xf32> to vector<16x192xf32>
    %6 = arith.addf %3, %5 : vector<16x192xf32>
    %cst_6 = arith.constant 0.000000e+00 : f32
    %7 = vector.broadcast %cst_6 : f32 to vector<16x192xf32>
    %8 = arith.maximumf %6, %7 : vector<16x192xf32>
    %9 = arith.truncf %8 : vector<16x192xf32> to vector<16x192xbf16>
    %c0_7 = arith.constant 0 : index
    %c0_8 = arith.constant 0 : index
    %10 = vector.load %arg5[%c0_7, %c0_8] : memref<192x192xbf16, #tpu.memory_space<vmem>>, vector<192x192xbf16>
    %cst_9 = arith.constant dense<0.000000e+00> : vector<16x192xf32>
    %11 = tpu.matmul %9, %10, %cst_9 {dimension_numbers = #tpu.dot_dimension_numbers<[1], [0], [0], [1], [0, 0, 1, 1], [], []>} : vector<16x192xbf16>, vector<192x192xbf16>, vector<16x192xf32> -> vector<16x192xf32>
    %c0_10 = arith.constant 0 : index
    %c0_11 = arith.constant 0 : index
    %12 = vector.load %arg6[%c0_10, %c0_11] : memref<1x192xf32, #tpu.memory_space<vmem>>, vector<1x192xf32>
    %13 = vector.broadcast %12 : vector<1x192xf32> to vector<16x192xf32>
    %14 = arith.addf %11, %13 : vector<16x192xf32>
    %15 = vector.extract_strided_slice %14 {offsets = [0, 0], sizes = [16, 16], strides = [1, 1]} : vector<16x192xf32> to vector<16x16xf32>
    %16 = vector.extract_strided_slice %14 {offsets = [0, 16], sizes = [16, 16], strides = [1, 1]} : vector<16x192xf32> to vector<16x16xf32>
    %17 = vector.extract_strided_slice %14 {offsets = [0, 32], sizes = [16, 16], strides = [1, 1]} : vector<16x192xf32> to vector<16x16xf32>
    %18 = vector.extract_strided_slice %14 {offsets = [0, 48], sizes = [16, 16], strides = [1, 1]} : vector<16x192xf32> to vector<16x16xf32>
    %19 = vector.extract_strided_slice %14 {offsets = [0, 64], sizes = [16, 16], strides = [1, 1]} : vector<16x192xf32> to vector<16x16xf32>
    %20 = vector.extract_strided_slice %14 {offsets = [0, 80], sizes = [16, 16], strides = [1, 1]} : vector<16x192xf32> to vector<16x16xf32>
    %21 = vector.extract_strided_slice %14 {offsets = [0, 96], sizes = [16, 16], strides = [1, 1]} : vector<16x192xf32> to vector<16x16xf32>
    %22 = vector.extract_strided_slice %14 {offsets = [0, 112], sizes = [16, 16], strides = [1, 1]} : vector<16x192xf32> to vector<16x16xf32>
    %23 = vector.extract_strided_slice %14 {offsets = [0, 128], sizes = [16, 16], strides = [1, 1]} : vector<16x192xf32> to vector<16x16xf32>
    %24 = vector.extract_strided_slice %14 {offsets = [0, 144], sizes = [16, 16], strides = [1, 1]} : vector<16x192xf32> to vector<16x16xf32>
    %25 = vector.extract_strided_slice %14 {offsets = [0, 160], sizes = [16, 16], strides = [1, 1]} : vector<16x192xf32> to vector<16x16xf32>
    %26 = vector.extract_strided_slice %14 {offsets = [0, 176], sizes = [16, 16], strides = [1, 1]} : vector<16x192xf32> to vector<16x16xf32>
    %c0_12 = arith.constant 0 : index
    %c0_13 = arith.constant 0 : index
    %27 = vector.load %arg2[%c0_12, %c0_13] : memref<8x8xf32, #tpu.memory_space<vmem>>, vector<8x8xf32>
    %28 = vector.extract_strided_slice %15 {offsets = [0, 0], sizes = [8, 16], strides = [1, 1]} : vector<16x16xf32> to vector<8x16xf32>
    %29 = arith.truncf %28 : vector<8x16xf32> to vector<8x16xbf16>
    %30 = vector.extract_strided_slice %19 {offsets = [0, 0], sizes = [8, 16], strides = [1, 1]} : vector<16x16xf32> to vector<8x16xf32>
    %31 = arith.truncf %30 : vector<8x16xf32> to vector<8x16xbf16>
    %32 = vector.extract_strided_slice %23 {offsets = [0, 0], sizes = [8, 16], strides = [1, 1]} : vector<16x16xf32> to vector<8x16xf32>
    %33 = arith.truncf %32 : vector<8x16xf32> to vector<8x16xbf16>
    %cst_14 = arith.constant dense<0.000000e+00> : vector<8x8xf32>
    %34 = tpu.matmul %29, %31, %cst_14 {dimension_numbers = #tpu.dot_dimension_numbers<[1], [1], [0], [0], [0, 0, 1, 0], [], []>} : vector<8x16xbf16>, vector<8x16xbf16>, vector<8x8xf32> -> vector<8x8xf32>
    %35 = arith.addf %34, %27 : vector<8x8xf32>
    %cst_15 = arith.constant dense<0xFF800000> : vector<8xf32>
    %36 = vector.multi_reduction <maximumf>, %35, %cst_15 [1] : vector<8x8xf32> to vector<8xf32>
    %37 = vector.shape_cast %36 : vector<8xf32> to vector<8x1xf32>
    %38 = vector.broadcast %37 : vector<8x1xf32> to vector<8x8xf32>
    %39 = arith.subf %35, %38 : vector<8x8xf32>
    %40 = math.exp %39 : vector<8x8xf32>
    %cst_16 = arith.constant dense<0.000000e+00> : vector<8xf32>
    %41 = vector.multi_reduction <add>, %40, %cst_16 [1] : vector<8x8xf32> to vector<8xf32>
    %42 = vector.shape_cast %41 : vector<8xf32> to vector<8x1xf32>
    %43 = tpu.reciprocal %42 : vector<8x1xf32> -> vector<8x1xf32>
    %44 = vector.broadcast %43 : vector<8x1xf32> to vector<8x8xf32>
    %45 = arith.mulf %40, %44 : vector<8x8xf32>
    %46 = arith.truncf %45 : vector<8x8xf32> to vector<8x8xbf16>
    %cst_17 = arith.constant dense<0.000000e+00> : vector<8x16xf32>
    %47 = tpu.matmul %46, %33, %cst_17 {dimension_numbers = #tpu.dot_dimension_numbers<[1], [0], [0], [1], [0, 0, 1, 1], [], []>} : vector<8x8xbf16>, vector<8x16xbf16>, vector<8x16xf32> -> vector<8x16xf32>
    %c0_18 = arith.constant 0 : index
    %c0_19 = arith.constant 0 : index
    %48 = vector.load %arg11[%c0_18, %c0_19] : memref<16x64xf32, #tpu.memory_space<vmem>>, vector<8x16xf32>
    tpu.vector_store %arg11[%c0_18, %c0_19], %47 {strides = array<i32>} : memref<16x64xf32, #tpu.memory_space<vmem>>, vector<8x16xf32>,
    %49 = vector.extract_strided_slice %16 {offsets = [0, 0], sizes = [8, 16], strides = [1, 1]} : vector<16x16xf32> to vector<8x16xf32>
    %50 = arith.truncf %49 : vector<8x16xf32> to vector<8x16xbf16>
    %51 = vector.extract_strided_slice %20 {offsets = [0, 0], sizes = [8, 16], strides = [1, 1]} : vector<16x16xf32> to vector<8x16xf32>
    %52 = arith.truncf %51 : vector<8x16xf32> to vector<8x16xbf16>
    %53 = vector.extract_strided_slice %24 {offsets = [0, 0], sizes = [8, 16], strides = [1, 1]} : vector<16x16xf32> to vector<8x16xf32>
    %54 = arith.truncf %53 : vector<8x16xf32> to vector<8x16xbf16>
    %cst_20 = arith.constant dense<0.000000e+00> : vector<8x8xf32>
    %55 = tpu.matmul %50, %52, %cst_20 {dimension_numbers = #tpu.dot_dimension_numbers<[1], [1], [0], [0], [0, 0, 1, 0], [], []>} : vector<8x16xbf16>, vector<8x16xbf16>, vector<8x8xf32> -> vector<8x8xf32>
    %56 = arith.addf %55, %27 : vector<8x8xf32>
    %cst_21 = arith.constant dense<0xFF800000> : vector<8xf32>
    %57 = vector.multi_reduction <maximumf>, %56, %cst_21 [1] : vector<8x8xf32> to vector<8xf32>
    %58 = vector.shape_cast %57 : vector<8xf32> to vector<8x1xf32>
    %59 = vector.broadcast %58 : vector<8x1xf32> to vector<8x8xf32>
    %60 = arith.subf %56, %59 : vector<8x8xf32>
    %61 = math.exp %60 : vector<8x8xf32>
    %cst_22 = arith.constant dense<0.000000e+00> : vector<8xf32>
    %62 = vector.multi_reduction <add>, %61, %cst_22 [1] : vector<8x8xf32> to vector<8xf32>
    %63 = vector.shape_cast %62 : vector<8xf32> to vector<8x1xf32>
    %64 = tpu.reciprocal %63 : vector<8x1xf32> -> vector<8x1xf32>
    %65 = vector.broadcast %64 : vector<8x1xf32> to vector<8x8xf32>
    %66 = arith.mulf %61, %65 : vector<8x8xf32>
    %67 = arith.truncf %66 : vector<8x8xf32> to vector<8x8xbf16>
    %cst_23 = arith.constant dense<0.000000e+00> : vector<8x16xf32>
    %68 = tpu.matmul %67, %54, %cst_23 {dimension_numbers = #tpu.dot_dimension_numbers<[1], [0], [0], [1], [0, 0, 1, 1], [], []>} : vector<8x8xbf16>, vector<8x16xbf16>, vector<8x16xf32> -> vector<8x16xf32>
    %c0_24 = arith.constant 0 : index
    %c16 = arith.constant 16 : index
    %69 = vector.load %arg11[%c0_24, %c16] : memref<16x64xf32, #tpu.memory_space<vmem>>, vector<8x16xf32>
    tpu.vector_store %arg11[%c0_24, %c16], %68 {strides = array<i32>} : memref<16x64xf32, #tpu.memory_space<vmem>>, vector<8x16xf32>,
    %70 = vector.extract_strided_slice %17 {offsets = [0, 0], sizes = [8, 16], strides = [1, 1]} : vector<16x16xf32> to vector<8x16xf32>
    %71 = arith.truncf %70 : vector<8x16xf32> to vector<8x16xbf16>
    %72 = vector.extract_strided_slice %21 {offsets = [0, 0], sizes = [8, 16], strides = [1, 1]} : vector<16x16xf32> to vector<8x16xf32>
    %73 = arith.truncf %72 : vector<8x16xf32> to vector<8x16xbf16>
    %74 = vector.extract_strided_slice %25 {offsets = [0, 0], sizes = [8, 16], strides = [1, 1]} : vector<16x16xf32> to vector<8x16xf32>
    %75 = arith.truncf %74 : vector<8x16xf32> to vector<8x16xbf16>
    %cst_25 = arith.constant dense<0.000000e+00> : vector<8x8xf32>
    %76 = tpu.matmul %71, %73, %cst_25 {dimension_numbers = #tpu.dot_dimension_numbers<[1], [1], [0], [0], [0, 0, 1, 0], [], []>} : vector<8x16xbf16>, vector<8x16xbf16>, vector<8x8xf32> -> vector<8x8xf32>
    %77 = arith.addf %76, %27 : vector<8x8xf32>
    %cst_26 = arith.constant dense<0xFF800000> : vector<8xf32>
    %78 = vector.multi_reduction <maximumf>, %77, %cst_26 [1] : vector<8x8xf32> to vector<8xf32>
    %79 = vector.shape_cast %78 : vector<8xf32> to vector<8x1xf32>
    %80 = vector.broadcast %79 : vector<8x1xf32> to vector<8x8xf32>
    %81 = arith.subf %77, %80 : vector<8x8xf32>
    %82 = math.exp %81 : vector<8x8xf32>
    %cst_27 = arith.constant dense<0.000000e+00> : vector<8xf32>
    %83 = vector.multi_reduction <add>, %82, %cst_27 [1] : vector<8x8xf32> to vector<8xf32>
    %84 = vector.shape_cast %83 : vector<8xf32> to vector<8x1xf32>
    %85 = tpu.reciprocal %84 : vector<8x1xf32> -> vector<8x1xf32>
    %86 = vector.broadcast %85 : vector<8x1xf32> to vector<8x8xf32>
    %87 = arith.mulf %82, %86 : vector<8x8xf32>
    %88 = arith.truncf %87 : vector<8x8xf32> to vector<8x8xbf16>
    %cst_28 = arith.constant dense<0.000000e+00> : vector<8x16xf32>
    %89 = tpu.matmul %88, %75, %cst_28 {dimension_numbers = #tpu.dot_dimension_numbers<[1], [0], [0], [1], [0, 0, 1, 1], [], []>} : vector<8x8xbf16>, vector<8x16xbf16>, vector<8x16xf32> -> vector<8x16xf32>
    %c0_29 = arith.constant 0 : index
    %c32 = arith.constant 32 : index
    %90 = vector.load %arg11[%c0_29, %c32] : memref<16x64xf32, #tpu.memory_space<vmem>>, vector<8x16xf32>
    tpu.vector_store %arg11[%c0_29, %c32], %89 {strides = array<i32>} : memref<16x64xf32, #tpu.memory_space<vmem>>, vector<8x16xf32>,
    %91 = vector.extract_strided_slice %18 {offsets = [0, 0], sizes = [8, 16], strides = [1, 1]} : vector<16x16xf32> to vector<8x16xf32>
    %92 = arith.truncf %91 : vector<8x16xf32> to vector<8x16xbf16>
    %93 = vector.extract_strided_slice %22 {offsets = [0, 0], sizes = [8, 16], strides = [1, 1]} : vector<16x16xf32> to vector<8x16xf32>
    %94 = arith.truncf %93 : vector<8x16xf32> to vector<8x16xbf16>
    %95 = vector.extract_strided_slice %26 {offsets = [0, 0], sizes = [8, 16], strides = [1, 1]} : vector<16x16xf32> to vector<8x16xf32>
    %96 = arith.truncf %95 : vector<8x16xf32> to vector<8x16xbf16>
    %cst_30 = arith.constant dense<0.000000e+00> : vector<8x8xf32>
    %97 = tpu.matmul %92, %94, %cst_30 {dimension_numbers = #tpu.dot_dimension_numbers<[1], [1], [0], [0], [0, 0, 1, 0], [], []>} : vector<8x16xbf16>, vector<8x16xbf16>, vector<8x8xf32> -> vector<8x8xf32>
    %98 = arith.addf %97, %27 : vector<8x8xf32>
    %cst_31 = arith.constant dense<0xFF800000> : vector<8xf32>
    %99 = vector.multi_reduction <maximumf>, %98, %cst_31 [1] : vector<8x8xf32> to vector<8xf32>
    %100 = vector.shape_cast %99 : vector<8xf32> to vector<8x1xf32>
    %101 = vector.broadcast %100 : vector<8x1xf32> to vector<8x8xf32>
    %102 = arith.subf %98, %101 : vector<8x8xf32>
    %103 = math.exp %102 : vector<8x8xf32>
    %cst_32 = arith.constant dense<0.000000e+00> : vector<8xf32>
    %104 = vector.multi_reduction <add>, %103, %cst_32 [1] : vector<8x8xf32> to vector<8xf32>
    %105 = vector.shape_cast %104 : vector<8xf32> to vector<8x1xf32>
    %106 = tpu.reciprocal %105 : vector<8x1xf32> -> vector<8x1xf32>
    %107 = vector.broadcast %106 : vector<8x1xf32> to vector<8x8xf32>
    %108 = arith.mulf %103, %107 : vector<8x8xf32>
    %109 = arith.truncf %108 : vector<8x8xf32> to vector<8x8xbf16>
    %cst_33 = arith.constant dense<0.000000e+00> : vector<8x16xf32>
    %110 = tpu.matmul %109, %96, %cst_33 {dimension_numbers = #tpu.dot_dimension_numbers<[1], [0], [0], [1], [0, 0, 1, 1], [], []>} : vector<8x8xbf16>, vector<8x16xbf16>, vector<8x16xf32> -> vector<8x16xf32>
    %c0_34 = arith.constant 0 : index
    %c48 = arith.constant 48 : index
    %111 = vector.load %arg11[%c0_34, %c48] : memref<16x64xf32, #tpu.memory_space<vmem>>, vector<8x16xf32>
    tpu.vector_store %arg11[%c0_34, %c48], %110 {strides = array<i32>} : memref<16x64xf32, #tpu.memory_space<vmem>>, vector<8x16xf32>,
    %c0_35 = arith.constant 0 : index
    %c0_36 = arith.constant 0 : index
    %c0_37 = arith.constant 0 : index
    %112 = vector.load %arg10[%c0_35, %c0_36, %c0_37] : memref<2x8x8xf32, #tpu.memory_space<vmem>>, vector<1x8x8xf32>
    %113 = vector.shape_cast %112 : vector<1x8x8xf32> to vector<8x8xf32>
    %114 = vector.shape_cast %108 : vector<8x8xf32> to vector<1x8x8xf32>
    tpu.vector_store %arg10[%c0_35, %c0_36, %c0_37], %114 {strides = array<i32>} : memref<2x8x8xf32, #tpu.memory_space<vmem>>, vector<1x8x8xf32>,
    %115 = vector.extract_strided_slice %15 {offsets = [8, 0], sizes = [8, 16], strides = [1, 1]} : vector<16x16xf32> to vector<8x16xf32>
    %116 = arith.truncf %115 : vector<8x16xf32> to vector<8x16xbf16>
    %117 = vector.extract_strided_slice %19 {offsets = [8, 0], sizes = [8, 16], strides = [1, 1]} : vector<16x16xf32> to vector<8x16xf32>
    %118 = arith.truncf %117 : vector<8x16xf32> to vector<8x16xbf16>
    %119 = vector.extract_strided_slice %23 {offsets = [8, 0], sizes = [8, 16], strides = [1, 1]} : vector<16x16xf32> to vector<8x16xf32>
    %120 = arith.truncf %119 : vector<8x16xf32> to vector<8x16xbf16>
    %cst_38 = arith.constant dense<0.000000e+00> : vector<8x8xf32>
    %121 = tpu.matmul %116, %118, %cst_38 {dimension_numbers = #tpu.dot_dimension_numbers<[1], [1], [0], [0], [0, 0, 1, 0], [], []>} : vector<8x16xbf16>, vector<8x16xbf16>, vector<8x8xf32> -> vector<8x8xf32>
    %122 = arith.addf %121, %27 : vector<8x8xf32>
    %cst_39 = arith.constant dense<0xFF800000> : vector<8xf32>
    %123 = vector.multi_reduction <maximumf>, %122, %cst_39 [1] : vector<8x8xf32> to vector<8xf32>
    %124 = vector.shape_cast %123 : vector<8xf32> to vector<8x1xf32>
    %125 = vector.broadcast %124 : vector<8x1xf32> to vector<8x8xf32>
    %126 = arith.subf %122, %125 : vector<8x8xf32>
    %127 = math.exp %126 : vector<8x8xf32>
    %cst_40 = arith.constant dense<0.000000e+00> : vector<8xf32>
    %128 = vector.multi_reduction <add>, %127, %cst_40 [1] : vector<8x8xf32> to vector<8xf32>
    %129 = vector.shape_cast %128 : vector<8xf32> to vector<8x1xf32>
    %130 = tpu.reciprocal %129 : vector<8x1xf32> -> vector<8x1xf32>
    %131 = vector.broadcast %130 : vector<8x1xf32> to vector<8x8xf32>
    %132 = arith.mulf %127, %131 : vector<8x8xf32>
    %133 = arith.truncf %132 : vector<8x8xf32> to vector<8x8xbf16>
    %cst_41 = arith.constant dense<0.000000e+00> : vector<8x16xf32>
    %134 = tpu.matmul %133, %120, %cst_41 {dimension_numbers = #tpu.dot_dimension_numbers<[1], [0], [0], [1], [0, 0, 1, 1], [], []>} : vector<8x8xbf16>, vector<8x16xbf16>, vector<8x16xf32> -> vector<8x16xf32>
    %c8 = arith.constant 8 : index
    %c0_42 = arith.constant 0 : index
    %135 = vector.load %arg11[%c8, %c0_42] : memref<16x64xf32, #tpu.memory_space<vmem>>, vector<8x16xf32>
    tpu.vector_store %arg11[%c8, %c0_42], %134 {strides = array<i32>} : memref<16x64xf32, #tpu.memory_space<vmem>>, vector<8x16xf32>,
    %136 = vector.extract_strided_slice %16 {offsets = [8, 0], sizes = [8, 16], strides = [1, 1]} : vector<16x16xf32> to vector<8x16xf32>
    %137 = arith.truncf %136 : vector<8x16xf32> to vector<8x16xbf16>
    %138 = vector.extract_strided_slice %20 {offsets = [8, 0], sizes = [8, 16], strides = [1, 1]} : vector<16x16xf32> to vector<8x16xf32>
    %139 = arith.truncf %138 : vector<8x16xf32> to vector<8x16xbf16>
    %140 = vector.extract_strided_slice %24 {offsets = [8, 0], sizes = [8, 16], strides = [1, 1]} : vector<16x16xf32> to vector<8x16xf32>
    %141 = arith.truncf %140 : vector<8x16xf32> to vector<8x16xbf16>
    %cst_43 = arith.constant dense<0.000000e+00> : vector<8x8xf32>
    %142 = tpu.matmul %137, %139, %cst_43 {dimension_numbers = #tpu.dot_dimension_numbers<[1], [1], [0], [0], [0, 0, 1, 0], [], []>} : vector<8x16xbf16>, vector<8x16xbf16>, vector<8x8xf32> -> vector<8x8xf32>
    %143 = arith.addf %142, %27 : vector<8x8xf32>
    %cst_44 = arith.constant dense<0xFF800000> : vector<8xf32>
    %144 = vector.multi_reduction <maximumf>, %143, %cst_44 [1] : vector<8x8xf32> to vector<8xf32>
    %145 = vector.shape_cast %144 : vector<8xf32> to vector<8x1xf32>
    %146 = vector.broadcast %145 : vector<8x1xf32> to vector<8x8xf32>
    %147 = arith.subf %143, %146 : vector<8x8xf32>
    %148 = math.exp %147 : vector<8x8xf32>
    %cst_45 = arith.constant dense<0.000000e+00> : vector<8xf32>
    %149 = vector.multi_reduction <add>, %148, %cst_45 [1] : vector<8x8xf32> to vector<8xf32>
    %150 = vector.shape_cast %149 : vector<8xf32> to vector<8x1xf32>
    %151 = tpu.reciprocal %150 : vector<8x1xf32> -> vector<8x1xf32>
    %152 = vector.broadcast %151 : vector<8x1xf32> to vector<8x8xf32>
    %153 = arith.mulf %148, %152 : vector<8x8xf32>
    %154 = arith.truncf %153 : vector<8x8xf32> to vector<8x8xbf16>
    %cst_46 = arith.constant dense<0.000000e+00> : vector<8x16xf32>
    %155 = tpu.matmul %154, %141, %cst_46 {dimension_numbers = #tpu.dot_dimension_numbers<[1], [0], [0], [1], [0, 0, 1, 1], [], []>} : vector<8x8xbf16>, vector<8x16xbf16>, vector<8x16xf32> -> vector<8x16xf32>
    %c8_47 = arith.constant 8 : index
    %c16_48 = arith.constant 16 : index
    %156 = vector.load %arg11[%c8_47, %c16_48] : memref<16x64xf32, #tpu.memory_space<vmem>>, vector<8x16xf32>
    tpu.vector_store %arg11[%c8_47, %c16_48], %155 {strides = array<i32>} : memref<16x64xf32, #tpu.memory_space<vmem>>, vector<8x16xf32>,
    %157 = vector.extract_strided_slice %17 {offsets = [8, 0], sizes = [8, 16], strides = [1, 1]} : vector<16x16xf32> to vector<8x16xf32>
    %158 = arith.truncf %157 : vector<8x16xf32> to vector<8x16xbf16>
    %159 = vector.extract_strided_slice %21 {offsets = [8, 0], sizes = [8, 16], strides = [1, 1]} : vector<16x16xf32> to vector<8x16xf32>
    %160 = arith.truncf %159 : vector<8x16xf32> to vector<8x16xbf16>
    %161 = vector.extract_strided_slice %25 {offsets = [8, 0], sizes = [8, 16], strides = [1, 1]} : vector<16x16xf32> to vector<8x16xf32>
    %162 = arith.truncf %161 : vector<8x16xf32> to vector<8x16xbf16>
    %cst_49 = arith.constant dense<0.000000e+00> : vector<8x8xf32>
    %163 = tpu.matmul %158, %160, %cst_49 {dimension_numbers = #tpu.dot_dimension_numbers<[1], [1], [0], [0], [0, 0, 1, 0], [], []>} : vector<8x16xbf16>, vector<8x16xbf16>, vector<8x8xf32> -> vector<8x8xf32>
    %164 = arith.addf %163, %27 : vector<8x8xf32>
    %cst_50 = arith.constant dense<0xFF800000> : vector<8xf32>
    %165 = vector.multi_reduction <maximumf>, %164, %cst_50 [1] : vector<8x8xf32> to vector<8xf32>
    %166 = vector.shape_cast %165 : vector<8xf32> to vector<8x1xf32>
    %167 = vector.broadcast %166 : vector<8x1xf32> to vector<8x8xf32>
    %168 = arith.subf %164, %167 : vector<8x8xf32>
    %169 = math.exp %168 : vector<8x8xf32>
    %cst_51 = arith.constant dense<0.000000e+00> : vector<8xf32>
    %170 = vector.multi_reduction <add>, %169, %cst_51 [1] : vector<8x8xf32> to vector<8xf32>
    %171 = vector.shape_cast %170 : vector<8xf32> to vector<8x1xf32>
    %172 = tpu.reciprocal %171 : vector<8x1xf32> -> vector<8x1xf32>
    %173 = vector.broadcast %172 : vector<8x1xf32> to vector<8x8xf32>
    %174 = arith.mulf %169, %173 : vector<8x8xf32>
    %175 = arith.truncf %174 : vector<8x8xf32> to vector<8x8xbf16>
    %cst_52 = arith.constant dense<0.000000e+00> : vector<8x16xf32>
    %176 = tpu.matmul %175, %162, %cst_52 {dimension_numbers = #tpu.dot_dimension_numbers<[1], [0], [0], [1], [0, 0, 1, 1], [], []>} : vector<8x8xbf16>, vector<8x16xbf16>, vector<8x16xf32> -> vector<8x16xf32>
    %c8_53 = arith.constant 8 : index
    %c32_54 = arith.constant 32 : index
    %177 = vector.load %arg11[%c8_53, %c32_54] : memref<16x64xf32, #tpu.memory_space<vmem>>, vector<8x16xf32>
    tpu.vector_store %arg11[%c8_53, %c32_54], %176 {strides = array<i32>} : memref<16x64xf32, #tpu.memory_space<vmem>>, vector<8x16xf32>,
    %178 = vector.extract_strided_slice %18 {offsets = [8, 0], sizes = [8, 16], strides = [1, 1]} : vector<16x16xf32> to vector<8x16xf32>
    %179 = arith.truncf %178 : vector<8x16xf32> to vector<8x16xbf16>
    %180 = vector.extract_strided_slice %22 {offsets = [8, 0], sizes = [8, 16], strides = [1, 1]} : vector<16x16xf32> to vector<8x16xf32>
    %181 = arith.truncf %180 : vector<8x16xf32> to vector<8x16xbf16>
    %182 = vector.extract_strided_slice %26 {offsets = [8, 0], sizes = [8, 16], strides = [1, 1]} : vector<16x16xf32> to vector<8x16xf32>
    %183 = arith.truncf %182 : vector<8x16xf32> to vector<8x16xbf16>
    %cst_55 = arith.constant dense<0.000000e+00> : vector<8x8xf32>
    %184 = tpu.matmul %179, %181, %cst_55 {dimension_numbers = #tpu.dot_dimension_numbers<[1], [1], [0], [0], [0, 0, 1, 0], [], []>} : vector<8x16xbf16>, vector<8x16xbf16>, vector<8x8xf32> -> vector<8x8xf32>
    %185 = arith.addf %184, %27 : vector<8x8xf32>
    %cst_56 = arith.constant dense<0xFF800000> : vector<8xf32>
    %186 = vector.multi_reduction <maximumf>, %185, %cst_56 [1] : vector<8x8xf32> to vector<8xf32>
    %187 = vector.shape_cast %186 : vector<8xf32> to vector<8x1xf32>
    %188 = vector.broadcast %187 : vector<8x1xf32> to vector<8x8xf32>
    %189 = arith.subf %185, %188 : vector<8x8xf32>
    %190 = math.exp %189 : vector<8x8xf32>
    %cst_57 = arith.constant dense<0.000000e+00> : vector<8xf32>
    %191 = vector.multi_reduction <add>, %190, %cst_57 [1] : vector<8x8xf32> to vector<8xf32>
    %192 = vector.shape_cast %191 : vector<8xf32> to vector<8x1xf32>
    %193 = tpu.reciprocal %192 : vector<8x1xf32> -> vector<8x1xf32>
    %194 = vector.broadcast %193 : vector<8x1xf32> to vector<8x8xf32>
    %195 = arith.mulf %190, %194 : vector<8x8xf32>
    %196 = arith.truncf %195 : vector<8x8xf32> to vector<8x8xbf16>
    %cst_58 = arith.constant dense<0.000000e+00> : vector<8x16xf32>
    %197 = tpu.matmul %196, %183, %cst_58 {dimension_numbers = #tpu.dot_dimension_numbers<[1], [0], [0], [1], [0, 0, 1, 1], [], []>} : vector<8x8xbf16>, vector<8x16xbf16>, vector<8x16xf32> -> vector<8x16xf32>
    %c8_59 = arith.constant 8 : index
    %c48_60 = arith.constant 48 : index
    %198 = vector.load %arg11[%c8_59, %c48_60] : memref<16x64xf32, #tpu.memory_space<vmem>>, vector<8x16xf32>
    tpu.vector_store %arg11[%c8_59, %c48_60], %197 {strides = array<i32>} : memref<16x64xf32, #tpu.memory_space<vmem>>, vector<8x16xf32>,
    %c1 = arith.constant 1 : index
    %c0_61 = arith.constant 0 : index
    %c0_62 = arith.constant 0 : index
    %199 = vector.load %arg10[%c1, %c0_61, %c0_62] : memref<2x8x8xf32, #tpu.memory_space<vmem>>, vector<1x8x8xf32>
    %200 = vector.shape_cast %199 : vector<1x8x8xf32> to vector<8x8xf32>
    %201 = vector.shape_cast %195 : vector<8x8xf32> to vector<1x8x8xf32>
    tpu.vector_store %arg10[%c1, %c0_61, %c0_62], %201 {strides = array<i32>} : memref<2x8x8xf32, #tpu.memory_space<vmem>>, vector<1x8x8xf32>,
    %c0_63 = arith.constant 0 : index
    %c0_64 = arith.constant 0 : index
    %202 = vector.load %arg11[%c0_63, %c0_64] : memref<16x64xf32, #tpu.memory_space<vmem>>, vector<16x64xf32>
    %203 = arith.truncf %202 : vector<16x64xf32> to vector<16x64xbf16>
    %c0_65 = arith.constant 0 : index
    %c0_66 = arith.constant 0 : index
    %204 = vector.load %arg7[%c0_65, %c0_66] : memref<64x64xbf16, #tpu.memory_space<vmem>>, vector<64x64xbf16>
    %cst_67 = arith.constant dense<0.000000e+00> : vector<16x64xf32>
    %205 = tpu.matmul %203, %204, %cst_67 {dimension_numbers = #tpu.dot_dimension_numbers<[1], [0], [0], [1], [0, 0, 1, 1], [], []>} : vector<16x64xbf16>, vector<64x64xbf16>, vector<16x64xf32> -> vector<16x64xf32>
    %c0_68 = arith.constant 0 : index
    %c0_69 = arith.constant 0 : index
    %206 = vector.load %arg8[%c0_68, %c0_69] : memref<1x64xf32, #tpu.memory_space<vmem>>, vector<1x64xf32>
    %207 = vector.broadcast %206 : vector<1x64xf32> to vector<16x64xf32>
    %208 = arith.addf %205, %207 : vector<16x64xf32>
    %209 = vector.shape_cast %208 : vector<16x64xf32> to vector<2x8x64xf32>
    %c0_70 = arith.constant 0 : index
    %c0_71 = arith.constant 0 : index
    %c0_72 = arith.constant 0 : index
    %210 = vector.load %arg9[%c0_70, %c0_71, %c0_72] : memref<2x8x64xf32, #tpu.memory_space<vmem>>, vector<2x8x64xf32>
    tpu.vector_store %arg9[%c0_70, %c0_71, %c0_72], %209 {strides = array<i32>} : memref<2x8x64xf32, #tpu.memory_space<vmem>>, vector<2x8x64xf32>,
    return
  }
  func.func @transform_0(%arg0: i32) -> (i32, i32, i32) {
    %c0_i32 = arith.constant 0 : i32
    %c0_i32_0 = arith.constant 0 : i32
    %c0_i32_1 = arith.constant 0 : i32
    return %arg0, %c0_i32, %c0_i32_0 : i32, i32, i32
  }
  func.func @transform_1(%arg0: i32) -> (i32, i32) {
    %c0_i32 = arith.constant 0 : i32
    %c0_i32_0 = arith.constant 0 : i32
    %c0_i32_1 = arith.constant 0 : i32
    return %c0_i32, %c0_i32_0 : i32, i32
  }
  func.func @transform_2(%arg0: i32) -> (i32, i32) {
    %c0_i32 = arith.constant 0 : i32
    %c0_i32_0 = arith.constant 0 : i32
    %c0_i32_1 = arith.constant 0 : i32
    return %c0_i32, %c0_i32_0 : i32, i32
  }
  func.func @transform_3(%arg0: i32) -> (i32, i32) {
    %c0_i32 = arith.constant 0 : i32
    %c0_i32_0 = arith.constant 0 : i32
    %c0_i32_1 = arith.constant 0 : i32
    return %c0_i32, %c0_i32_0 : i32, i32
  }
  func.func @transform_4(%arg0: i32) -> (i32, i32) {
    %c0_i32 = arith.constant 0 : i32
    %c0_i32_0 = arith.constant 0 : i32
    %c0_i32_1 = arith.constant 0 : i32
    return %c0_i32, %c0_i32_0 : i32, i32
  }
  func.func @transform_5(%arg0: i32) -> (i32, i32) {
    %c0_i32 = arith.constant 0 : i32
    %c0_i32_0 = arith.constant 0 : i32
    %c0_i32_1 = arith.constant 0 : i32
    return %c0_i32, %c0_i32_0 : i32, i32
  }
  func.func @transform_6(%arg0: i32) -> (i32, i32) {
    %c0_i32 = arith.constant 0 : i32
    %c0_i32_0 = arith.constant 0 : i32
    %c0_i32_1 = arith.constant 0 : i32
    return %c0_i32, %c0_i32_0 : i32, i32
  }
  func.func @transform_7(%arg0: i32) -> (i32, i32) {
    %c0_i32 = arith.constant 0 : i32
    %c0_i32_0 = arith.constant 0 : i32
    %c0_i32_1 = arith.constant 0 : i32
    return %c0_i32, %c0_i32_0 : i32, i32
  }
  func.func @transform_8(%arg0: i32) -> (i32, i32, i32) {
    %c0_i32 = arith.constant 0 : i32
    %c0_i32_0 = arith.constant 0 : i32
    %c0_i32_1 = arith.constant 0 : i32
    return %arg0, %c0_i32, %c0_i32_0 : i32, i32, i32
  }
  func.func @transform_9(%arg0: i32) -> (i32, i32, i32) {
    %c0_i32 = arith.constant 0 : i32
    %c0_i32_0 = arith.constant 0 : i32
    %c0_i32_1 = arith.constant 0 : i32
    return %arg0, %c0_i32, %c0_i32_0 : i32, i32, i32
  }
}

</mosaic_0001>

<bundles_post_ra>
// kernel: tpu_custom_call.1
= control target key start
LH: loop header
LB: loop body
LE: loop exit
PB: predicated region body
PF: predicated region fallthrough
CT: control target
= control target key end

     0   :  { %15 = vsyncpa [#allocation4], 0  ;;  %s2201_s0 = inlined_call_operand.hbm [shape: bf16[2,8,32], index: 0, kind: input, shape index: {}]   ;;  %s2202_s1 = inlined_call_operand.hbm [shape: f32[8,8], index: 1, kind: input, shape index: {}]   ;;  %s2203_s2 = inlined_call_operand.hbm [shape: bf16[32,192], index: 2, kind: input, shape index: {}]   ;;  %s2204_s3 = inlined_call_operand.vmem [shape: f32[1,192], index: 3, kind: input, shape index: {}]   ;;  %s2205_s4 = inlined_call_operand.hbm [shape: bf16[192,192], index: 4, kind: input, shape index: {}]   ;;  %s2206_s5 = inlined_call_operand.vmem [shape: f32[1,192], index: 5, kind: input, shape index: {}]   ;;  %s2207_s6 = inlined_call_operand.hbm [shape: bf16[64,64], index: 6, kind: input, shape index: {}]   ;;  %s2208_s7 = inlined_call_operand.vmem [shape: f32[1,64], index: 7, kind: input, shape index: {}]   ;;  %s2209_s8 = inlined_call_operand.hbm [shape: f32[2,8,64], index: 8, kind: output, shape index: {0}]   ;;  %s2210_s9 = inlined_call_operand.hbm [shape: f32[2,8,8], index: 9, kind: output, shape index: {1}]  }
   0x1   :  { %16 = vsyncpa [#allocation7], 0 }
   0x2   :  { %17 = vsyncpa [#allocation10], 0 }
   0x3   :  { %18 = vsyncpa [#allocation5], 0 }
   0x4   :  { %19 = vsyncpa [#allocation14], 0  ;;  %s1891_s30 = smov [#allocation6]  }
   0x5   :  { %s38_s10 = sshll.u32 %s1891_s30, 4  ;;  %s39_s10 = int_to_ptr.vmem [resolvable:$true] %s38_s10 }
   0x6   :  { %s1749_s11 = scalar_lea.vmem %s39_s10, 128  ;;  %p1754_p1 = scmp.lt.s32.totalorder %s39_s10, %s39_s10 }
   0x7   :  { %p1750_p0 = scmp.ne.s32.totalorder %s39_s10, %s1749_s11  ;;  %p1755_p2 = scmp.lt.s32.totalorder %s1749_s11, %s1749_s11 }
   0x9   :  { %p1756_p3 = por %p1755_p2, %p1754_p1 }
   0xb   :  { %p1757_p4 = pnand %p1756_p3, %p1750_p0 }
   0xd   :  { %1760 = shalt.err (!%p1757_p4)
}
   0xe   :  { %41 = dma.hbm_to_vmem [thread:$0]  %s2202_s1, 128, %s39_s10, [#allocation7]  }
   0xf   :  { %s1892_s14 = smov [#allocation9]   ;;  %s1893_s16 = smov [#allocation3]  }
  0x10   :  { %s61_s15 = sshll.u32 %s1892_s14, 4  ;;  %s25_s17 = sshll.u32 %s1893_s16, 4  ;;  %s62_s15 = int_to_ptr.vmem [resolvable:$true] %s61_s15  ;;  %s26_s17 = int_to_ptr.vmem [resolvable:$true] %s25_s17 }
  0x11   :  { %s1769_s18 = scalar_lea.vmem %s62_s15, 3072  ;;  %p1774_p6 = scmp.lt.s32.totalorder %s62_s15, %s62_s15 }
  0x12   :  { %p1770_p5 = scmp.ne.s32.totalorder %s62_s15, %s1769_s18  ;;  %p1775_p7 = scmp.lt.s32.totalorder %s1769_s18, %s1769_s18 }
  0x14   :  { %p1776_p8 = por %p1775_p7, %p1774_p6 }
  0x16   :  { %p1777_p9 = pnand %p1776_p8, %p1770_p5 }
  0x18   :  { %1780 = shalt.err (!%p1777_p9)
}
  0x19   :  { %s1894_s19 = smov 128   ;;  %s1895_s20 = smov 8  }
  0x1a   :  { %67 = dma.hbm_to_vmem [thread:$0]  %s2205_s4, 3072, %s62_s15, [#allocation10], %s1894_s19, %s1894_s19, %s1895_s20  }
  0x1b   :  { %s1789_s1 = scalar_lea.vmem %s26_s17, 128  ;;  %p1794_p11 = scmp.lt.s32.totalorder %s26_s17, %s26_s17 }
  0x1c   :  { %p1790_p10 = scmp.ne.s32.totalorder %s26_s17, %s1789_s1  ;;  %p1795_p12 = scmp.lt.s32.totalorder %s1789_s1, %s1789_s1 }
  0x1e   :  { %p1796_p13 = por %p1795_p12, %p1794_p11 }
  0x20   :  { %p1797_p0 = pnand %p1796_p13, %p1790_p10 }
  0x22   :  { %1800 = shalt.err (!%p1797_p0)
}
  0x23   :  { %s1896_s23 = smov 64   ;;  %s1897_s24 = smov 4  }
  0x24   :  { %31 = dma.hbm_to_vmem [thread:$0]  %s2201_s0, 128, %s26_s17, [#allocation4], %s1896_s23, %s1896_s23, %s1897_s24  }
  0x25   :  { %s1898_s27 = smov [#allocation8]   ;;  %s1899_s4 = smov [#allocation11]  }
  0x26   :  { %s47_s28 = sshll.u32 %s1898_s27, 4  ;;  %s75_s29 = sshll.u32 %s1899_s4, 4  ;;  %s48_s28 = int_to_ptr.vmem [resolvable:$true] %s47_s28  ;;  %s76_s29 = int_to_ptr.vmem [resolvable:$true] %s75_s29 }
  0x27   :  { %s1809_s30 = scalar_lea.vmem %s48_s28, 512  ;;  %p1814_p2 = scmp.lt.s32.totalorder %s48_s28, %s48_s28 }
  0x28   :  { %p1810_p1 = scmp.ne.s32.totalorder %s48_s28, %s1809_s30  ;;  %p1815_p3 = scmp.lt.s32.totalorder %s1809_s30, %s1809_s30 }
  0x2a   :  { %p1816_p4 = por %p1815_p3, %p1814_p2 }
  0x2c   :  { %p1817_p5 = pnand %p1816_p4, %p1810_p1 }
  0x2e   :  { %1820 = shalt.err (!%p1817_p5)
}
  0x2f   :  { %53 = dma.hbm_to_vmem [thread:$0]  %s2203_s2, 512, %s48_s28, [#allocation7], %s1894_s19, %s1894_s19, %s1895_s20  }
  0x30   :  { %s1829_s0 = scalar_lea.vmem %s76_s29, 512  ;;  %p1834_p7 = scmp.lt.s32.totalorder %s76_s29, %s76_s29 }
  0x31   :  { %p1830_p6 = scmp.ne.s32.totalorder %s76_s29, %s1829_s0  ;;  %p1835_p8 = scmp.lt.s32.totalorder %s1829_s0, %s1829_s0 }
  0x33   :  { %p1836_p9 = por %p1835_p8, %p1834_p7 }
  0x35   :  { %p1837_p10 = pnand %p1836_p9, %p1830_p6 }
  0x37   :  { %1840 = shalt.err (!%p1837_p10)
}
  0x38   :  { %81 = dma.hbm_to_vmem [thread:$0]  %s2207_s6, 512, %s76_s29, [#allocation10], %s1896_s23, %s1896_s23, %s1897_s24  }
  0x39   :  { %1881 = dma.done.wait [#allocation4], 128  }
  0x3a   :  { %1882 = vsyncadd [#allocation4], 4294967168 }
  0x3b   :  { %1883 = dma.done.wait [#allocation7], 640  }
  0x3c   :  { %1884 = vsyncadd [#allocation7], 4294966656 }
  0x3d   :  { %1885 = dma.done.wait [#allocation10], 3584  }
  0x3e   :  { %1886 = vsyncadd [#allocation10], 4294963712  ;;  %v1900_v0 = vmov 0   ;;  %v1662_v1 = vld [vmem:[#allocation8 + $0x14] ss:$8 sps:$4 sm:$0xff]   ;;  %vm143_vm0 = vcmask 261120   ;;  %v108_v30 = vlaneseq }
  0x3f   :  { %179 = vmatprep.mubr.bf16.mxu0 %v1900_v0  ;;  %v1664_v2 = vld [vmem:[#allocation8 + $0x10] ss:$8 sps:$4 sm:$0xff]   ;;  %159 = vmatprep.subr.bf16.mxu0 %v1662_v1  ;;  %v1665_v3 = vld [vmem:[#allocation8 + $0x4] ss:$8 sps:$4 sm:$0xff]   ;;  %v1667_v4 = vld [vmem:[#allocation8] ss:$8 sps:$4 sm:$0xff]  }
  0x40   :  { %160 = vmatpush1.bf16.msra.mxu0 %v1664_v2  ;;  %v1669_v5 = vld [vmem:[#allocation9 + $0x74] ss:$8 sps:$4 sm:$0xff]   ;;  %v1671_v6 = vld [vmem:[#allocation9 + $0x70] ss:$8 sps:$4 sm:$0xff]   ;;  %v1672_v7 = vld [vmem:[#allocation9 + $0x64] ss:$8 sps:$4 sm:$0xff]  }
  0x41   :  { %161 = vmatprep.subr.bf16.mxu0 %v1665_v3  ;;  %v1668_v8 = vld [vmem:[#allocation3] sm:$0xff]   ;;  %356 = vmatprep.subr.bf16.mxu1 %v1669_v5  ;;  %v1674_v9 = vld [vmem:[#allocation9 + $0x60] ss:$8 sps:$4 sm:$0xff]   ;;  %v1678_v12 = vld [vmem:[#allocation9 + $0x44] ss:$8 sps:$4 sm:$0xff]   ;;  %v109_v31 = vshrl.u32 %v108_v30, 7 }
  0x42   :  { %357 = vmatpush1.bf16.msra.mxu1 %v1671_v6  ;;  %v1675_v10 = vld [vmem:[#allocation9 + $0x54] ss:$8 sps:$4 sm:$0xff]   ;;  %v1677_v11 = vld [vmem:[#allocation9 + $0x50] ss:$8 sps:$4 sm:$0xff]   ;;  %v1680_v13 = vld [vmem:[#allocation9 + $0x40] ss:$8 sps:$4 sm:$0xff]  }
  0x43   :  { %358 = vmatprep.subr.bf16.mxu1 %v1672_v7  ;;  %v1681_v14 = vld [vmem:[#allocation9 + $0x34] ss:$8 sps:$4 sm:$0xff]   ;;  %v1683_v15 = vld [vmem:[#allocation9 + $0x30] ss:$8 sps:$4 sm:$0xff]   ;;  %v1684_v16 = vld [vmem:[#allocation9 + $0x24] ss:$8 sps:$4 sm:$0xff]  }
  0x44   :  { %162 = vmatpush1.bf16.msra.mxu0 %v1667_v4  ;;  %v1686_v17 = vld [vmem:[#allocation9 + $0x20] ss:$8 sps:$4 sm:$0xff]   ;;  %v1687_v18 = vld [vmem:[#allocation9 + $0x14] ss:$8 sps:$4 sm:$0xff]   ;;  %v1689_v19 = vld [vmem:[#allocation9 + $0x10] ss:$8 sps:$4 sm:$0xff]  }
  0x45   :  { %v1690_v20 = vld [vmem:[#allocation9 + $0x4] ss:$8 sps:$4 sm:$0xff]   ;;  %v1692_v21 = vld [vmem:[#allocation9] ss:$8 sps:$4 sm:$0xff]   ;;  %v1693_v22 = vld [vmem:[#allocation9 + $0xb4] ss:$8 sps:$4 sm:$0xff]  }
  0x46   :  { %359 = vmatpush1.bf16.msra.mxu1 %v1674_v9  ;;  %v1695_v23 = vld [vmem:[#allocation9 + $0xb0] ss:$8 sps:$4 sm:$0xff]   ;;  %v1696_v24 = vld [vmem:[#allocation9 + $0xa4] ss:$8 sps:$4 sm:$0xff]   ;;  %v1698_v25 = vld [vmem:[#allocation9 + $0xa0] ss:$8 sps:$4 sm:$0xff]  }
  0x47   :  { %1449 = vmatmul.mubr.msk.bf16.vlgmr.msra.gmra.mxu0 %vm143_vm0, %v1668_v8  ;;  %360 = vmatprep.subr.bf16.mxu1 %v1675_v10  ;;  %v1699_v26 = vld [vmem:[#allocation9 + $0x94] ss:$8 sps:$4 sm:$0xff]   ;;  %v1701_v27 = vld [vmem:[#allocation9 + $0x90] ss:$8 sps:$4 sm:$0xff]   ;;  %v1702_v28 = vld [vmem:[#allocation9 + $0x84] ss:$8 sps:$4 sm:$0xff]  }
  0x48   :  { %v1704_v29 = vld [vmem:[#allocation9 + $0x80] ss:$8 sps:$4 sm:$0xff]   ;;  %v114_v32 = vsub.s32 1, %v109_v31  ;;  %v110_v33 = vsub.s32 0, %v109_v31  ;;  %vm352_vm1 = vcmask 523264   ;;  %v1901_v51 = vmov 0.0  }
  0x49   :  { %v106_v34 = vld [vmem:[%s2204_s3] sm:$0x3]  ;;  %1534 = vmatprep.subr.bf16.mxu0 %v1901_v51  ;;  %vm1902_vm2 = vmmov 0   ;;  %vm405_vm3 = vcmask 130048   ;;  %vm468_vm4 = vcmask 1043456   ;;  %v2020_v0 = vld [vmem:[#allocation6] sm:$0xff] }
  0x4a   :  { %361 = vmatpush1.bf16.msra.mxu1 %v1677_v11  ;;  %v115_v36 = vrot.slane %v106_v34, %v114_v32  ;;  %v111_v37 = vrot.slane %v106_v34, %v110_v33  ;;  %v220_v52 = vld [vmem:[%s2206_s5] sm:$0x3]  ;;  %1536 = vmatprep.mubr.msk.bf16.mxu0 %vm1902_vm2, %v1901_v51  ;;  %vm452_vm5 = vcmask 64512   ;;  %s1903_s5 = smov 112   ;;  %s1904_s15 = smov 48   ;;  %vm628_vm6 = vcmask 261248  }
  0x4b   :  { %362 = vmatprep.subr.bf16.mxu1 %v1678_v12  ;;  %v1999_v53 = vrot.slane %v220_v52, %v110_v33  ;;  %v2006_v57 = vrot.slane %v220_v52, %v114_v32  ;;  %s1905_s16 = smov 96   ;;  %s1906_s17 = smov 80   ;;  %vm744_vm7 = vcmask 392448   ;;  %vm860_vm8 = vcmask 523648  }
  0x4c   :  { %s1907_s18 = smov 32   ;;  %s1908_s21 = smov 16  }
  0x4d   :  { %s1909_s22 = smov [#allocation13]  }
  0x4e   :  { %363 = vmatpush1.bf16.msra.mxu1 %v1680_v13  ;;  %s1426_s1 = sshll.u32 %s1909_s22, 4  ;;  %s1427_s1 = int_to_ptr.vmem [resolvable:$true] %s1426_s1 }
  0x4f   :  { %364 = vmatprep.subr.bf16.mxu1 %v1681_v14  ;;  %p1846_p12 = scmp.lt.s32.totalorder %s1427_s1, %s1427_s1 }
  0x52   :  { %365 = vmatpush1.bf16.msra.mxu1 %v1683_v15 }
  0x53   :  { %366 = vmatprep.subr.bf16.mxu1 %v1684_v16 }
  0x56   :  { %367 = vmatpush1.bf16.msra.mxu1 %v1686_v17 }
  0x57   :  { %368 = vmatprep.subr.bf16.mxu1 %v1687_v18 }
  0x5a   :  { %369 = vmatpush1.bf16.msra.mxu1 %v1689_v19 }
  0x5b   :  { %370 = vmatprep.subr.bf16.mxu1 %v1690_v20 }
  0x5e   :  { %371 = vmatpush1.bf16.msra.mxu1 %v1692_v21 }
  0x5f   :  { %380 = vmatprep.subr.bf16.mxu1 %v1693_v22 }
  0x62   :  { %381 = vmatpush2.bf16.msra.mxu1 %v1695_v23 }
  0x63   :  { %382 = vmatprep.subr.bf16.mxu1 %v1696_v24 }
  0x66   :  { %383 = vmatpush2.bf16.msra.mxu1 %v1698_v25 }
  0x67   :  { %384 = vmatprep.subr.bf16.mxu1 %v1699_v26 }
  0x6a   :  { %385 = vmatpush2.bf16.msra.mxu1 %v1701_v27 }
  0x6b   :  { %386 = vmatprep.subr.bf16.mxu1 %v1702_v28 }
  0x6e   :  { %387 = vmatpush2.bf16.msra.mxu1 %v1704_v29 }
  0x6f   :  { %1570 = vmatprep.subr.bf16.mxu1 %v1901_v51 }
 0x107   :  { %v181_v35 = vpop.f32.mrf.mxu0 }
 0x108   :  { %v182_v42 = vadd.f32 %v181_v35, %v111_v37 }
 0x109   :  { %v183_v38 = vpop.f32.mrf.mxu0 }
 0x10a   :  { %v184_v40 = vadd.f32 %v183_v38, %v115_v36  ;;  %v190_v48 = vmax.f32 %v182_v42, 0.0 }
 0x10b   :  { %v185_v39 = vpop.f32.mrf.mxu0 }
 0x10c   :  { %v186_v41 = vadd.f32 %v185_v39, %v111_v37  ;;  %v191_v46 = vmax.f32 %v184_v40, 0.0 }
 0x10d   :  { %v187_v43 = vpop.f32.mrf.mxu0 }
 0x10e   :  { %v188_v44 = vadd.f32 %v187_v43, %v115_v36  ;;  %v192_v45 = vmax.f32 %v186_v41, 0.0 }
 0x110   :  { %v193_v47 = vmax.f32 %v188_v44, 0.0  ;;  %v194_v50 = vpack.c.bf16 %v192_v45, %v190_v48 }
 0x112   :  { %v195_v49 = vpack.c.bf16 %v193_v47, %v191_v46 }
 0x114   :  { %1474 = vmatprep.mubr.msk.bf16.mxu1 %vm352_vm1, %v195_v49 }
 0x115   :  { %389 = vmatmul.mubr.bf16.vlgmr.msra.gmra.mxu1 %v194_v50 }
 0x116   :  { %1572 = vmatprep.mubr.msk.bf16.mxu1 %vm1902_vm2, %v1901_v51 }
 0x1d5   :  { %v390_v54 = vpop.f32.mrf.mxu1 }
 0x1d6   :  { %v391_v55 = vadd.f32 %v390_v54, %v1999_v53 }
 0x1d7   :  { %v392_v58 = vpop.f32.mrf.mxu1 }
 0x1d8   :  { %v2002_v56 = vpack.c.bf16 %v391_v55, %v391_v55  ;;  %v393_v60 = vadd.f32 %v392_v58, %v2006_v57 }
 0x1d9   :  { %v394_v31 = vpop.f32.mrf.mxu1 }
 0x1da   :  { %403 = vrot.lane.b32.xlu0 %v2002_v56, %s1896_s23  ;;  %v2011_v62 = vpack.c.bf16 %v393_v60, %v393_v60  ;;  %v395_v32 = vadd.f32 %v394_v31, %v1999_v53 }
 0x1dc   :  { %v470_v63 = vsel %vm468_vm4, %v2011_v62, 0  ;;  %v863_v33 = vpack.c.bf16 %v395_v32, %v395_v32 }
 0x24c   :  { %v404_v59 = vpop.permute.xlu0 %403 }
 0x24d   :  { %v410_v61 = vsel %vm405_vm3, %v404_v59, 0 }
 0x24e   :  { %1535 = vmatpush3.bf16.xpose.msra.mxu0 %v410_v61 }
 0x24f   :  { %1540 = vmatprep.subr.bf16.mxu0 %v1901_v51 }
 0x255   :  { %1537 = vmatmul.mubr.msk.bf16.vlgmr.msra.gmra.mxu0 %vm405_vm3, %v2002_v56 }
 0x256   :  { %1541 = vmatpush3.bf16.msra.mxu0 %v470_v63  ;;  %1542 = vmatprep.mubr.msk.bf16.mxu0 %vm1902_vm2, %v1901_v51  ;;  %v2094_v63 = vpop.f32.mrf.mxu1 }
 0x257   :  { %1546 = vmatprep.subr.bf16.mxu0 %v1901_v51 }
 0x315   :  { %v446_v1 = vpop.f32.mrf.mxu0 }
 0x316   :  { %v447_v2 = vadd.f32 %v446_v1, %v2020_v0 }
 0x317   :  { %v1538_v3 = vpop.f32.mrf.mxu0 }
 0x318   :  { %v453_v4 = vsel %vm452_vm5, %v447_v2, -inf }
 0x319   :  { %454 = vmax.xlane.f32.xlu0 %v453_v4  ;;  %v449_v5 = vpop.f32.mrf.mxu0 }
 0x31b   :  { %v1539_v6 = vpop.f32.mrf.mxu0 }
 0x32f   :  { %576 = vrot.lane.b32.xlu0 %v2011_v62, %s1903_s5 }
 0x3a2   :  { %v455_v7 = vpop.xlane.xlu0 %454 }
 0x3a3   :  { %v456_v8 = vsub.f32 %v447_v2, %v455_v7 }
 0x3a5   :  { %v457_v9 = vmul.f32 1.442695, %v456_v8 }
 0x3a6   :  { %v577_v18 = vpop.permute.xlu0 %576 }
 0x3a7   :  { %1709 = vpow2.f32 %v457_v9  ;;  %v582_v20 = vsel %vm468_vm4, %v577_v18, 0 }
 0x3b4   :  { %v1710_v10 = vpop.eup %1709 }
 0x3b5   :  { %v459_v11 = vsel %vm452_vm5, %v1710_v10, 0.0 }
 0x3b6   :  { %460 = vadd.xlane.f32.xlu1 %v459_v11 }
 0x3c7   :  { %515 = vrot.lane.b32.xlu1 %v2002_v56, %s1904_s15 }
 0x3cb   :  { %513 = vrot.lane.b32.xlu1 %v2002_v56, %s1903_s5 }
 0x43f   :  { %v461_v12 = vpop.xlane.xlu1 %460 }
 0x440   :  { %1711 = vrcp.f32 %v461_v12 }
 0x443   :  { %v516_v15 = vpop.permute.xlu1 %515 }
 0x444   :  { %v521_v17 = vsel %vm405_vm3, %v516_v15, 0 }
 0x447   :  { %v514_v19 = vpop.permute.xlu1 %513 }
 0x44d   :  { %v1712_v13 = vpop.eup %1711 }
 0x44e   :  { %v463_v14 = vmul.f32 %v1712_v13, %v1710_v10 }
 0x450   :  { %v464_v16 = vpack.c.bf16 %v463_v14, %v463_v14 }
 0x452   :  { %1543 = vmatmul.mubr.msk.bf16.vlgmr.msra.gmra.mxu0 %vm452_vm5, %v464_v16 }
 0x453   :  { %1547 = vmatpush3.bf16.xpose.msra.mxu0 %v521_v17  ;;  %1548 = vmatprep.mubr.msk.bf16.mxu0 %vm1902_vm2, %v1901_v51 }
 0x454   :  { %1552 = vmatprep.subr.bf16.mxu0 %v1901_v51 }
 0x45a   :  { %1549 = vmatmul.mubr.msk.bf16.vlgmr.msra.gmra.mxu0 %vm405_vm3, %v514_v19 }
 0x45b   :  { %1553 = vmatpush3.bf16.msra.mxu0 %v582_v20  ;;  %1554 = vmatprep.mubr.msk.bf16.mxu0 %vm1902_vm2, %v1901_v51 }
 0x45c   :  { %1558 = vmatprep.subr.bf16.mxu0 %v1901_v51 }
 0x512   :  { %v506_v21 = vpop.f32.mrf.mxu0 }
 0x513   :  { %512 = vst.msk [vmem:[#allocation2] sm:$0xff] %vm405_vm3, %v506_v21 }
 0x514   :  { %v1544_v22 = vpop.f32.mrf.mxu0 }
 0x516   :  { %v509_v23 = vpop.f32.mrf.mxu0 }
 0x518   :  { %v1545_v24 = vpop.f32.mrf.mxu0 }
 0x51a   :  { %v557_v25 = vpop.f32.mrf.mxu0 }
 0x51b   :  { %v558_v26 = vadd.f32 %v557_v25, %v2020_v0 }
 0x51c   :  { %v1550_v27 = vpop.f32.mrf.mxu0 }
 0x51d   :  { %v563_v28 = vsel %vm452_vm5, %v558_v26, -inf }
 0x51e   :  { %564 = vmax.xlane.f32.xlu1 %v563_v28  ;;  %v560_v29 = vpop.f32.mrf.mxu0 }
 0x520   :  { %v1551_v30 = vpop.f32.mrf.mxu0 }
 0x52f   :  { %630 = vrot.lane.b32.xlu1 %v2002_v56, %s1905_s16 }
 0x533   :  { %973 = vrot.lane.b32.xlu1 %v863_v33, %s1903_s5 }
 0x537   :  { %1089 = vrot.lane.b32.xlu1 %v863_v33, %s1905_s16 }
 0x53b   :  { %1204 = vrot.lane.b32.xlu1 %v863_v33, %s1906_s17 }
 0x5a7   :  { %v565_v34 = vpop.xlane.xlu1 %564 }
 0x5a8   :  { %v566_v35 = vsub.f32 %v558_v26, %v565_v34 }
 0x5aa   :  { %v567_v36 = vmul.f32 1.442695, %v566_v35 }
 0x5ab   :  { %v631_v53 = vpop.permute.xlu1 %630 }
 0x5ac   :  { %1713 = vpow2.f32 %v567_v36 }
 0x5af   :  { %v974_v55 = vpop.permute.xlu1 %973 }
 0x5b3   :  { %v1090_v59 = vpop.permute.xlu1 %1089 }
 0x5b7   :  { %v1205_v61 = vpop.permute.xlu1 %1204 }
 0x5b9   :  { %v1714_v37 = vpop.eup %1713 }
 0x5ba   :  { %v569_v38 = vsel %vm452_vm5, %v1714_v37, 0.0 }
 0x5bb   :  { %570 = vadd.xlane.f32.xlu0 %v569_v38 }
 0x5d1   :  { %632 = vrot.lane.b32.xlu0 %v2002_v56, %s1907_s18 }
 0x5d5   :  { %748 = vrot.lane.b32.xlu0 %v2002_v56, %s1908_s21 }
 0x5d9   :  { %746 = vrot.lane.b32.xlu0 %v2002_v56, %s1906_s17 }
 0x5dd   :  { %866 = vrot.lane.b32.xlu0 %v863_v33, %s1896_s23  ;;  %s1841_s23 = scalar_lea.vmem %s1427_s1, 256 }
 0x5de   :  { %p1842_p11 = scmp.ne.s32.totalorder %s1427_s1, %s1841_s23  ;;  %p1847_p13 = scmp.lt.s32.totalorder %s1841_s23, %s1841_s23 }
 0x5e0   :  { %p1848_p0 = por %p1847_p13, %p1846_p12 }
 0x5e1   :  { %975 = vrot.lane.b32.xlu0 %v863_v33, %s1904_s15 }
 0x5e2   :  { %p1849_p1 = pnand %p1848_p0, %p1842_p11 }
 0x5e5   :  { %1091 = vrot.lane.b32.xlu0 %v863_v33, %s1907_s18 }
 0x5e9   :  { %1206 = vrot.lane.b32.xlu0 %v863_v33, %s1908_s21 }
 0x644   :  { %v571_v39 = vpop.xlane.xlu0 %570 }
 0x645   :  { %1715 = vrcp.f32 %v571_v39 }
 0x648   :  { %v633_v40 = vpop.permute.xlu0 %632 }
 0x649   :  { %v638_v49 = vsel %vm405_vm3, %v633_v40, 0 }
 0x64c   :  { %v749_v41 = vpop.permute.xlu0 %748 }
 0x64d   :  { %v754_v42 = vsel %vm405_vm3, %v749_v41, 0 }
 0x64e   :  { %1571 = vmatpush3.bf16.xpose.msra.mxu1 %v754_v42 }
 0x64f   :  { %1582 = vmatprep.subr.bf16.mxu1 %v1901_v51 }
 0x650   :  { %v747_v43 = vpop.permute.xlu0 %746 }
 0x652   :  { %v1716_v44 = vpop.eup %1715 }
 0x653   :  { %v573_v45 = vmul.f32 %v1716_v44, %v1714_v37 }
 0x654   :  { %v867_v46 = vpop.permute.xlu0 %866 }
 0x655   :  { %v872_v47 = vsel %vm405_vm3, %v867_v46, 0  ;;  %1573 = vmatmul.mubr.msk.bf16.vlgmr.msra.gmra.mxu1 %vm405_vm3, %v747_v43  ;;  %v574_v48 = vpack.c.bf16 %v573_v45, %v573_v45 }
 0x656   :  { %1583 = vmatpush3.bf16.xpose.msra.mxu1 %v872_v47  ;;  %1584 = vmatprep.mubr.msk.bf16.mxu1 %vm1902_vm2, %v1901_v51 }
 0x657   :  { %1555 = vmatmul.mubr.msk.bf16.vlgmr.msra.gmra.mxu0 %vm452_vm5, %v574_v48  ;;  %1594 = vmatprep.subr.bf16.mxu1 %v1901_v51 }
 0x658   :  { %1559 = vmatpush3.bf16.xpose.msra.mxu0 %v638_v49  ;;  %1560 = vmatprep.mubr.msk.bf16.mxu0 %vm1902_vm2, %v1901_v51  ;;  %v976_v50 = vpop.permute.xlu0 %975 }
 0x659   :  { %1564 = vmatprep.subr.bf16.mxu0 %v1901_v51  ;;  %v981_v52 = vsel %vm405_vm3, %v976_v50, 0 }
 0x65c   :  { %v1092_v54 = vpop.permute.xlu0 %1091 }
 0x65d   :  { %1585 = vmatmul.mubr.msk.bf16.vlgmr.msra.gmra.mxu1 %vm405_vm3, %v863_v33  ;;  %v1097_v56 = vsel %vm405_vm3, %v1092_v54, 0 }
 0x65e   :  { %1595 = vmatpush3.bf16.xpose.msra.mxu1 %v981_v52  ;;  %1596 = vmatprep.mubr.msk.bf16.mxu1 %vm1902_vm2, %v1901_v51 }
 0x65f   :  { %1561 = vmatmul.mubr.msk.bf16.vlgmr.msra.gmra.mxu0 %vm405_vm3, %v631_v53  ;;  %1606 = vmatprep.subr.bf16.mxu1 %v1901_v51 }
 0x660   :  { %1566 = vmatprep.mubr.msk.bf16.mxu0 %vm1902_vm2, %v1901_v51  ;;  %v1207_v58 = vpop.permute.xlu0 %1206 }
 0x661   :  { %v1212_v60 = vsel %vm405_vm3, %v1207_v58, 0 }
 0x665   :  { %1597 = vmatmul.mubr.msk.bf16.vlgmr.msra.gmra.mxu1 %vm405_vm3, %v974_v55 }
 0x666   :  { %1607 = vmatpush3.bf16.xpose.msra.mxu1 %v1097_v56  ;;  %1608 = vmatprep.mubr.msk.bf16.mxu1 %vm1902_vm2, %v1901_v51 }
 0x667   :  { %1618 = vmatprep.subr.bf16.mxu1 %v1901_v51 }
 0x66d   :  { %1609 = vmatmul.mubr.msk.bf16.vlgmr.msra.gmra.mxu1 %vm405_vm3, %v1090_v59 }
 0x66e   :  { %1619 = vmatpush3.bf16.xpose.msra.mxu1 %v1212_v60  ;;  %1620 = vmatprep.mubr.msk.bf16.mxu1 %vm1902_vm2, %v1901_v51 }
 0x66f   :  { %1630 = vmatprep.subr.bf16.mxu1 %v1901_v51 }
 0x675   :  { %1621 = vmatmul.mubr.msk.bf16.vlgmr.msra.gmra.mxu1 %vm405_vm3, %v1205_v61 }
 0x676   :  { %1638 = vmatprep.mubr.msk.bf16.mxu1 %vm1902_vm2, %v1901_v51 }
 0x715   :  { %v790_v1 = vpop.f32.mrf.mxu1 }
 0x716   :  { %v791_v2 = vadd.f32 %v790_v1, %v2020_v0 }
 0x717   :  { %v2097_v3 = vpop.f32.mrf.mxu0  ;;  %v1574_v4 = vpop.f32.mrf.mxu1 }
 0x718   :  { %v796_v5 = vsel %vm452_vm5, %v791_v2, -inf }
 0x719   :  { %797 = vmax.xlane.f32.xlu1 %v796_v5  ;;  %v1556_v6 = vpop.f32.mrf.mxu0  ;;  %v793_v7 = vpop.f32.mrf.mxu1 }
 0x71b   :  { %v621_v8 = vpop.f32.mrf.mxu0  ;;  %v1575_v9 = vpop.f32.mrf.mxu1 }
 0x71c   :  { %v397_v8 = vadd.f32 %v2094_v63, %v2006_v57 }
 0x71d   :  { %v1557_v10 = vpop.f32.mrf.mxu0  ;;  %v908_v11 = vpop.f32.mrf.mxu1 }
 0x71e   :  { %v909_v17 = vadd.f32 %v908_v11, %v2020_v0  ;;  %v864_v10 = vpack.c.bf16 %v397_v8, %v397_v8 }
 0x71f   :  { %v674_v12 = vpop.f32.mrf.mxu0  ;;  %v1586_v13 = vpop.f32.mrf.mxu1 }
 0x720   :  { %v675_v14 = vadd.f32 %v674_v12, %v2020_v0  ;;  %v914_v24 = vsel %vm452_vm5, %v909_v17, -inf }
 0x721   :  { %v1562_v15 = vpop.f32.mrf.mxu0  ;;  %v911_v16 = vpop.f32.mrf.mxu1 }
 0x722   :  { %v680_v18 = vsel %vm452_vm5, %v675_v14, -inf }
 0x723   :  { %v1587_v19 = vpop.f32.mrf.mxu1  ;;  %681 = vmax.xlane.f32.xlu0 %v680_v18  ;;  %v677_v20 = vpop.f32.mrf.mxu0 }
 0x725   :  { %v1563_v21 = vpop.f32.mrf.mxu0  ;;  %v1017_v22 = vpop.f32.mrf.mxu1 }
 0x726   :  { %v1018_v23 = vadd.f32 %v1017_v22, %v2020_v0 }
 0x727   :  { %v1598_v25 = vpop.f32.mrf.mxu1  ;;  %915 = vmax.xlane.f32.xlu0 %v914_v24 }
 0x728   :  { %v1023_v27 = vsel %vm452_vm5, %v1018_v23, -inf }
 0x729   :  { %v1020_v26 = vpop.f32.mrf.mxu1 }
 0x72b   :  { %v1599_v28 = vpop.f32.mrf.mxu1  ;;  %1024 = vmax.xlane.f32.xlu0 %v1023_v27 }
 0x72d   :  { %v1133_v29 = vpop.f32.mrf.mxu1 }
 0x72e   :  { %v1134_v30 = vadd.f32 %v1133_v29, %v2020_v0 }
 0x72f   :  { %v1610_v31 = vpop.f32.mrf.mxu1 }
 0x730   :  { %v1139_v32 = vsel %vm452_vm5, %v1134_v30, -inf }
 0x731   :  { %1140 = vmax.xlane.f32.xlu1 %v1139_v32  ;;  %v1136_v33 = vpop.f32.mrf.mxu1 }
 0x733   :  { %v1611_v34 = vpop.f32.mrf.mxu1 }
 0x735   :  { %v1248_v35 = vpop.f32.mrf.mxu1 }
 0x736   :  { %v1249_v36 = vadd.f32 %v1248_v35, %v2020_v0 }
 0x737   :  { %v1622_v37 = vpop.f32.mrf.mxu1 }
 0x738   :  { %v1254_v38 = vsel %vm452_vm5, %v1249_v36, -inf }
 0x739   :  { %v1251_v39 = vpop.f32.mrf.mxu1  ;;  %1255 = vmax.xlane.f32.xlu0 %v1254_v38 }
 0x73b   :  { %v1623_v40 = vpop.f32.mrf.mxu1 }
 0x7a2   :  { %v798_v41 = vpop.xlane.xlu1 %797 }
 0x7a3   :  { %v799_v42 = vsub.f32 %v791_v2, %v798_v41 }
 0x7a5   :  { %v800_v43 = vmul.f32 1.442695, %v799_v42 }
 0x7a7   :  { %1717 = vpow2.f32 %v800_v43 }
 0x7ac   :  { %v682_v44 = vpop.xlane.xlu0 %681 }
 0x7ad   :  { %v683_v45 = vsub.f32 %v675_v14, %v682_v44 }
 0x7af   :  { %v684_v48 = vmul.f32 1.442695, %v683_v45 }
 0x7b0   :  { %v916_v46 = vpop.xlane.xlu0 %915 }
 0x7b1   :  { %v917_v47 = vsub.f32 %v909_v17, %v916_v46 }
 0x7b3   :  { %v918_v49 = vmul.f32 1.442695, %v917_v47 }
 0x7b4   :  { %v1718_v50 = vpop.eup %1717  ;;  %v1025_v52 = vpop.xlane.xlu0 %1024 }
 0x7b5   :  { %1719 = vpow2.f32 %v918_v49  ;;  %v1026_v0 = vsub.f32 %v1018_v23, %v1025_v52  ;;  %v802_v53 = vsel %vm452_vm5, %v1718_v50, 0.0 }
 0x7b6   :  { %803 = vadd.xlane.f32.xlu0 %v802_v53  ;;  %1721 = vpow2.f32 %v684_v48 }
 0x7b7   :  { %v1027_v54 = vmul.f32 1.442695, %v1026_v0 }
 0x7b9   :  { %1723 = vpow2.f32 %v1027_v54 }
 0x7ba   :  { %v1141_v55 = vpop.xlane.xlu1 %1140 }
 0x7bb   :  { %v1142_v56 = vsub.f32 %v1134_v30, %v1141_v55  ;;  %v930_v30 = vsel %vm468_vm4, %v864_v10, 0 }
 0x7bd   :  { %v1143_v58 = vmul.f32 1.442695, %v1142_v56 }
 0x7bf   :  { %1725 = vpow2.f32 %v1143_v58  ;;  %v1705_v58 = vld [vmem:[#allocation11 + $0x18] sm:$0xff]  }
 0x7c0   :  { %1631 = vmatpush3.bf16.msra.mxu1 %v1705_v58 }
 0x7c1   :  { %1632 = vmatprep.subr.bf16.mxu1 %v1901_v51 }
 0x7c2   :  { %v2111_v59 = vpop.eup %1719  ;;  %v1256_v7 = vpop.xlane.xlu0 %1255 }
 0x7c3   :  { %v920_v60 = vsel %vm452_vm5, %v2111_v59, 0.0  ;;  %v1722_v61 = vpop.eup %1721  ;;  %v1257_v9 = vsub.f32 %v1249_v36, %v1256_v7 }
 0x7c4   :  { %921 = vadd.xlane.f32.xlu1 %v920_v60  ;;  %v686_v2 = vsel %vm452_vm5, %v1722_v61, 0.0  ;;  %v1706_v60 = vld [vmem:[#allocation11 + $0x10] sm:$0xff]  }
 0x7c5   :  { %v1258_v11 = vmul.f32 1.442695, %v1257_v9  ;;  %1633 = vmatpush3.bf16.msra.mxu1 %v1706_v60  ;;  %v1707_v9 = vld [vmem:[#allocation11 + $0x8] sm:$0xff]  }
 0x7c6   :  { %v2115_v1 = vpop.eup %1723  ;;  %1634 = vmatprep.subr.bf16.mxu1 %v1901_v51 }
 0x7c7   :  { %v1029_v4 = vsel %vm452_vm5, %v2115_v1, 0.0  ;;  %1727 = vpow2.f32 %v1258_v11 }
 0x7c8   :  { %687 = vadd.xlane.f32.xlu1 %v686_v2  ;;  %1030 = vadd.xlane.f32.xlu0 %v1029_v4 }
 0x7c9   :  { %1635 = vmatpush3.bf16.msra.mxu1 %v1707_v9 }
 0x7ca   :  { %1636 = vmatprep.subr.bf16.mxu1 %v1901_v51 }
 0x7cc   :  { %v2120_v5 = vpop.eup %1725 }
 0x7cd   :  { %v1145_v6 = vsel %vm452_vm5, %v2120_v5, 0.0 }
 0x7ce   :  { %1146 = vadd.xlane.f32.xlu0 %v1145_v6 }
 0x7d4   :  { %v2135_v12 = vpop.eup %1727 }
 0x7d5   :  { %v1260_v57 = vsel %vm452_vm5, %v2135_v12, 0.0 }
 0x7d9   :  { %692 = vrot.lane.b32.xlu1 %v2011_v62, %s1905_s16 }
 0x7e4   :  { %808 = vrot.lane.b32.xlu0 %v2011_v62, %s1906_s17 }
 0x7e8   :  { %1036 = vrot.lane.b32.xlu0 %v864_v10, %s1903_s5 }
 0x7ec   :  { %1151 = vrot.lane.b32.xlu0 %v864_v10, %s1905_s16 }
 0x7f0   :  { %1266 = vrot.lane.b32.xlu0 %v864_v10, %s1906_s17  ;;  %v1708_v10 = vld [vmem:[#allocation11] sm:$0xff]  }
 0x7f1   :  { %1637 = vmatpush3.bf16.msra.mxu1 %v1708_v10 }
 0x7f4   :  { %625 = vrot.lane.b32.xlu0 %v2097_v3, %s1908_s21 }
 0x7fd   :  { %1261 = vadd.xlane.f32.xlu1 %v1260_v57 }
 0x83f   :  { %v804_v63 = vpop.xlane.xlu0 %803 }
 0x840   :  { %1729 = vrcp.f32 %v804_v63 }
 0x84d   :  { %v1730_v62 = vpop.eup %1729  ;;  %v922_v13 = vpop.xlane.xlu1 %921 }
 0x84e   :  { %v806_v14 = vmul.f32 %v1730_v62, %v1718_v50 }
 0x850   :  { %862 = vst.msk [vmem:[#allocation13] sm:$0xff] %vm452_vm5, %v806_v14  ;;  %v807_v27 = vpack.c.bf16 %v806_v14, %v806_v14 }
 0x851   :  { %v688_v15 = vpop.xlane.xlu1 %687  ;;  %v1031_v16 = vpop.xlane.xlu0 %1030 }
 0x852   :  { %1731 = vrcp.f32 %v688_v15 }
 0x853   :  { %1733 = vrcp.f32 %v922_v13 }
 0x854   :  { %1735 = vrcp.f32 %v1031_v16 }
 0x855   :  { %v693_v17 = vpop.permute.xlu1 %692 }
 0x856   :  { %v698_v18 = vsel %vm468_vm4, %v693_v17, 0 }
 0x857   :  { %1565 = vmatpush3.bf16.msra.mxu0 %v698_v18  ;;  %v1147_v3 = vpop.xlane.xlu0 %1146 }
 0x858   :  { %1576 = vmatprep.subr.bf16.mxu0 %v1901_v51  ;;  %1737 = vrcp.f32 %v1147_v3 }
 0x85b   :  { %v809_v19 = vpop.permute.xlu0 %808 }
 0x85c   :  { %v814_v25 = vsel %vm468_vm4, %v809_v19, 0 }
 0x85f   :  { %v1732_v20 = vpop.eup %1731  ;;  %v1037_v21 = vpop.permute.xlu0 %1036 }
 0x860   :  { %v690_v22 = vmul.f32 %v1732_v20, %v1722_v61  ;;  %v1734_v28 = vpop.eup %1733  ;;  %v1042_v34 = vsel %vm468_vm4, %v1037_v21, 0 }
 0x861   :  { %v924_v31 = vmul.f32 %v1734_v28, %v2111_v59  ;;  %v1736_v33 = vpop.eup %1735 }
 0x862   :  { %v691_v23 = vpack.c.bf16 %v690_v22, %v690_v22  ;;  %v1033_v35 = vmul.f32 %v1736_v33, %v2115_v1 }
 0x863   :  { %v1152_v24 = vpop.permute.xlu0 %1151  ;;  %v925_v32 = vpack.c.bf16 %v924_v31, %v924_v31 }
 0x864   :  { %1567 = vmatmul.mubr.msk.bf16.vlgmr.msra.gmra.mxu0 %vm452_vm5, %v691_v23  ;;  %v1034_v36 = vpack.c.bf16 %v1033_v35, %v1033_v35  ;;  %v1157_v38 = vsel %vm468_vm4, %v1152_v24, 0 }
 0x865   :  { %1577 = vmatpush3.bf16.msra.mxu0 %v814_v25  ;;  %1578 = vmatprep.mubr.msk.bf16.mxu0 %vm1902_vm2, %v1901_v51  ;;  %v1738_v37 = vpop.eup %1737 }
 0x866   :  { %1588 = vmatprep.subr.bf16.mxu0 %v1901_v51  ;;  %v1149_v39 = vmul.f32 %v1738_v37, %v2120_v5 }
 0x867   :  { %v1267_v26 = vpop.permute.xlu0 %1266 }
 0x868   :  { %v1150_v40 = vpack.c.bf16 %v1149_v39, %v1149_v39  ;;  %v1272_v41 = vsel %vm468_vm4, %v1267_v26, 0 }
 0x86b   :  { %v626_v29 = vpop.permute.xlu0 %625 }
 0x86c   :  { %629 = vst.msk [vmem:[#allocation2] sm:$0xff] %vm628_vm6, %v626_v29  ;;  %1579 = vmatmul.mubr.msk.bf16.vlgmr.msra.gmra.mxu0 %vm452_vm5, %v807_v27 }
 0x86d   :  { %1589 = vmatpush3.bf16.msra.mxu0 %v930_v30  ;;  %1590 = vmatprep.mubr.msk.bf16.mxu0 %vm1902_vm2, %v1901_v51 }
 0x86e   :  { %1600 = vmatprep.subr.bf16.mxu0 %v1901_v51 }
 0x874   :  { %1591 = vmatmul.mubr.msk.bf16.vlgmr.msra.gmra.mxu0 %vm452_vm5, %v925_v32 }
 0x875   :  { %1601 = vmatpush3.bf16.msra.mxu0 %v1042_v34  ;;  %1602 = vmatprep.mubr.msk.bf16.mxu0 %vm1902_vm2, %v1901_v51 }
 0x876   :  { %1612 = vmatprep.subr.bf16.mxu0 %v1901_v51 }
 0x87c   :  { %1603 = vmatmul.mubr.msk.bf16.vlgmr.msra.gmra.mxu0 %vm452_vm5, %v1034_v36 }
 0x87d   :  { %1613 = vmatpush3.bf16.msra.mxu0 %v1157_v38  ;;  %1614 = vmatprep.mubr.msk.bf16.mxu0 %vm1902_vm2, %v1901_v51 }
 0x87e   :  { %1624 = vmatprep.subr.bf16.mxu0 %v1901_v51 }
 0x884   :  { %1615 = vmatmul.mubr.msk.bf16.vlgmr.msra.gmra.mxu0 %vm452_vm5, %v1150_v40 }
 0x885   :  { %1625 = vmatpush3.bf16.msra.mxu0 %v1272_v41  ;;  %1626 = vmatprep.mubr.msk.bf16.mxu0 %vm1902_vm2, %v1901_v51 }
 0x886   :  { %v1262_v42 = vpop.xlane.xlu1 %1261 }
 0x887   :  { %1739 = vrcp.f32 %v1262_v42 }
 0x894   :  { %v1740_v43 = vpop.eup %1739 }
 0x895   :  { %v1264_v44 = vmul.f32 %v1740_v43, %v2135_v12 }
 0x897   :  { %v1265_v45 = vpack.c.bf16 %v1264_v44, %v1264_v44  ;;  %1320 = vst.msk [vmem:[#allocation13 + $0x8] sm:$0xff] %vm452_vm5, %v1264_v44 }
 0x899   :  { %1627 = vmatmul.mubr.msk.bf16.vlgmr.msra.gmra.mxu0 %vm452_vm5, %v1265_v45 }
 0x924   :  { %v734_v46 = vpop.f32.mrf.mxu0 }
 0x925   :  { %741 = vrot.lane.b32.xlu0 %v734_v46, %s1907_s18 }
 0x926   :  { %v1568_v47 = vpop.f32.mrf.mxu0 }
 0x928   :  { %v737_v48 = vpop.f32.mrf.mxu0 }
 0x92a   :  { %v1569_v49 = vpop.f32.mrf.mxu0 }
 0x92c   :  { %v850_v50 = vpop.f32.mrf.mxu0 }
 0x92d   :  { %857 = vrot.lane.b32.xlu1 %v850_v50, %s1904_s15 }
 0x92e   :  { %v1580_v52 = vpop.f32.mrf.mxu0 }
 0x930   :  { %v853_v0 = vpop.f32.mrf.mxu0 }
 0x932   :  { %v1581_v53 = vpop.f32.mrf.mxu0 }
 0x934   :  { %v966_v54 = vpop.f32.mrf.mxu0 }
 0x935   :  { %972 = vst.msk [vmem:[#allocation2 + $0x8] sm:$0xff] %vm405_vm3, %v966_v54 }
 0x936   :  { %v1592_v55 = vpop.f32.mrf.mxu0 }
 0x938   :  { %v969_v56 = vpop.f32.mrf.mxu0 }
 0x93a   :  { %v1593_v59 = vpop.f32.mrf.mxu0 }
 0x93c   :  { %v1078_v61 = vpop.f32.mrf.mxu0 }
 0x93d   :  { %1085 = vrot.lane.b32.xlu0 %v1078_v61, %s1908_s21 }
 0x93e   :  { %v1604_v1 = vpop.f32.mrf.mxu0 }
 0x940   :  { %v1081_v2 = vpop.f32.mrf.mxu0 }
 0x942   :  { %v1605_v4 = vpop.f32.mrf.mxu0 }
 0x944   :  { %v1193_v5 = vpop.f32.mrf.mxu0 }
 0x945   :  { %1200 = vrot.lane.b32.xlu0 %v1193_v5, %s1907_s18 }
 0x946   :  { %v1616_v6 = vpop.f32.mrf.mxu0 }
 0x948   :  { %v1196_v7 = vpop.f32.mrf.mxu0 }
 0x94a   :  { %v1617_v8 = vpop.f32.mrf.mxu0 }
 0x959   :  { %v1308_v11 = vpop.f32.mrf.mxu0 }
 0x95a   :  { %1315 = vrot.lane.b32.xlu0 %v1308_v11, %s1904_s15 }
 0x95b   :  { %v1628_v12 = vpop.f32.mrf.mxu0 }
 0x95d   :  { %v1311_v57 = vpop.f32.mrf.mxu0 }
 0x95f   :  { %v1629_v63 = vpop.f32.mrf.mxu0 }
 0x997   :  { %v742_v62 = vpop.permute.xlu0 %741 }
 0x998   :  { %745 = vst.msk [vmem:[#allocation2] sm:$0xff] %vm744_vm7, %v742_v62 }
 0x99f   :  { %v858_v13 = vpop.permute.xlu1 %857 }
 0x9a0   :  { %861 = vst.msk [vmem:[#allocation2] sm:$0xff] %vm860_vm8, %v858_v13 }
 0x9a7   :  { %v1321_v51 = vld [vmem:[#allocation2] sm:$0xff] }
 0x9af   :  { %v1086_v14 = vpop.permute.xlu0 %1085 }
 0x9b0   :  { %1088 = vst.msk [vmem:[#allocation2 + $0x8] sm:$0xff] %vm628_vm6, %v1086_v14 }
 0x9b7   :  { %v1201_v15 = vpop.permute.xlu0 %1200 }
 0x9b8   :  { %1203 = vst.msk [vmem:[#allocation2 + $0x8] sm:$0xff] %vm744_vm7, %v1201_v15 }
 0x9cc   :  { %v1316_v16 = vpop.permute.xlu0 %1315 }
 0x9cd   :  { %1318 = vst.msk [vmem:[#allocation2 + $0x8] sm:$0xff] %vm860_vm8, %v1316_v16 }
 0x9d4   :  { %v1322_v17 = vld [vmem:[#allocation2 + $0x8] sm:$0xff] }
 0x9d5   :  { %v1323_v18 = vpack.c.bf16 %v1322_v17, %v1321_v51 }
 0x9d7   :  { %1639 = vmatmul.mubr.msk.bf16.vlgmr.msra.gmra.mxu1 %vm352_vm1, %v1323_v18 }
 0x9d8   :  { %1852 = shalt.err (!%p1849_p1)
}
 0x9d9   :  { %1432 = dma.vmem_to_hbm [thread:$0]  %s1427_s1, 256, %s2210_s9, [#allocation14], %s1894_s19, %s1894_s19, %s1895_s20  }
 0x9da   :  { %v1491_v3 = vld [vmem:[%s2208_s7] ss:$0 sm:$0xff]  ;;  %s1910_s28 = smov [#allocation12]  }
 0x9db   :  { %s1414_s4 = sshll.u32 %s1910_s28, 4  ;;  %s1415_s4 = int_to_ptr.vmem [resolvable:$true] %s1414_s4 }
 0x9dc   :  { %s1861_s29 = scalar_lea.vmem %s1415_s4, 256  ;;  %p1866_p3 = scmp.lt.s32.totalorder %s1415_s4, %s1415_s4 }
 0x9dd   :  { %p1862_p2 = scmp.ne.s32.totalorder %s1415_s4, %s1861_s29  ;;  %p1867_p4 = scmp.lt.s32.totalorder %s1861_s29, %s1861_s29 }
 0x9df   :  { %p1868_p5 = por %p1867_p4, %p1866_p3 }
 0x9e1   :  { %p1869_p6 = pnand %p1868_p5, %p1862_p2 }
 0xa97   :  { %v1400_v19 = vpop.f32.mrf.mxu1 }
 0xa98   :  { %v1401_v20 = vadd.f32 %v1491_v3, %v1400_v19 }
 0xa99   :  { %v1640_v21 = vpop.f32.mrf.mxu1 }
 0xa9a   :  { %1407 = vst.msk [vmem:[#allocation12] sm:$0xff] %vm352_vm1, %v1401_v20 }
 0xa9b   :  { %v1403_v22 = vpop.f32.mrf.mxu1 }
 0xa9c   :  { %v1404_v23 = vadd.f32 %v1491_v3, %v1403_v22 }
 0xa9d   :  { %v1641_v24 = vpop.f32.mrf.mxu1 }
 0xa9e   :  { %1408 = vst.msk [vmem:[#allocation12 + $0x8] sm:$0xff] %vm352_vm1, %v1404_v23 }
 0xa9f   :  { %1872 = shalt.err (!%p1869_p6)
}
 0xaa0   :  { %1420 = dma.vmem_to_hbm [thread:$0]  %s1415_s4, 256, %s2209_s8, [#allocation5], %s1894_s19, %s1894_s19, %s1895_s20  }
 0xaa1   :  { %1887 = dma.done.wait [#allocation5], 256  }
 0xaa2   :  { %1888 = vsyncadd [#allocation5], 4294967040 }
 0xaa3   :  { %1889 = dma.done.wait [#allocation14], 256  }
 0xaa4   :  { %1890 = vsyncadd [#allocation14], 4294967040 }
 0xaa5   :  { %1439 = vsyncpa [#allocation4], 1 }
 0xaa6   :  { %1440 = vsyncpa [#allocation7], 1 }
 0xaa7   :  { %1441 = vsyncpa [#allocation10], 1 }
 0xaa8   :  { %1442 = vsyncpa [#allocation5], 1 }
 0xaa9   :  { %1443 = vsyncpa [#allocation14], 1 }

// kernel: tpu_custom_call.1
= control target key start
LH: loop header
LB: loop body
LE: loop exit
PB: predicated region body
PF: predicated region fallthrough
CT: control target
= control target key end

     0   :  { %15 = vsyncpa [#allocation4], 0  ;;  %s2201_s0 = inlined_call_operand.hbm [shape: bf16[2,8,32], index: 0, kind: input, shape index: {}]   ;;  %s2202_s1 = inlined_call_operand.hbm [shape: f32[8,8], index: 1, kind: input, shape index: {}]   ;;  %s2203_s2 = inlined_call_operand.hbm [shape: bf16[32,192], index: 2, kind: input, shape index: {}]   ;;  %s2204_s3 = inlined_call_operand.vmem [shape: f32[1,192], index: 3, kind: input, shape index: {}]   ;;  %s2205_s4 = inlined_call_operand.hbm [shape: bf16[192,192], index: 4, kind: input, shape index: {}]   ;;  %s2206_s5 = inlined_call_operand.vmem [shape: f32[1,192], index: 5, kind: input, shape index: {}]   ;;  %s2207_s6 = inlined_call_operand.hbm [shape: bf16[64,64], index: 6, kind: input, shape index: {}]   ;;  %s2208_s7 = inlined_call_operand.vmem [shape: f32[1,64], index: 7, kind: input, shape index: {}]   ;;  %s2209_s8 = inlined_call_operand.hbm [shape: f32[2,8,64], index: 8, kind: output, shape index: {0}]   ;;  %s2210_s9 = inlined_call_operand.hbm [shape: f32[2,8,8], index: 9, kind: output, shape index: {1}]  }
   0x1   :  { %16 = vsyncpa [#allocation7], 0 }
   0x2   :  { %17 = vsyncpa [#allocation10], 0 }
   0x3   :  { %18 = vsyncpa [#allocation5], 0 }
   0x4   :  { %19 = vsyncpa [#allocation14], 0  ;;  %s1891_s30 = smov [#allocation6]  }
   0x5   :  { %s38_s10 = sshll.u32 %s1891_s30, 4  ;;  %s39_s10 = int_to_ptr.vmem [resolvable:$true] %s38_s10 }
   0x6   :  { %s1749_s11 = scalar_lea.vmem %s39_s10, 128  ;;  %p1754_p1 = scmp.lt.s32.totalorder %s39_s10, %s39_s10 }
   0x7   :  { %p1750_p0 = scmp.ne.s32.totalorder %s39_s10, %s1749_s11  ;;  %p1755_p2 = scmp.lt.s32.totalorder %s1749_s11, %s1749_s11 }
   0x9   :  { %p1756_p3 = por %p1755_p2, %p1754_p1 }
   0xb   :  { %p1757_p4 = pnand %p1756_p3, %p1750_p0 }
   0xd   :  { %1760 = shalt.err (!%p1757_p4)
}
   0xe   :  { %41 = dma.hbm_to_vmem [thread:$0]  %s2202_s1, 128, %s39_s10, [#allocation7]  }
   0xf   :  { %s1892_s14 = smov [#allocation9]   ;;  %s1893_s16 = smov [#allocation3]  }
  0x10   :  { %s61_s15 = sshll.u32 %s1892_s14, 4  ;;  %s25_s17 = sshll.u32 %s1893_s16, 4  ;;  %s62_s15 = int_to_ptr.vmem [resolvable:$true] %s61_s15  ;;  %s26_s17 = int_to_ptr.vmem [resolvable:$true] %s25_s17 }
  0x11   :  { %s1769_s18 = scalar_lea.vmem %s62_s15, 3072  ;;  %p1774_p6 = scmp.lt.s32.totalorder %s62_s15, %s62_s15 }
  0x12   :  { %p1770_p5 = scmp.ne.s32.totalorder %s62_s15, %s1769_s18  ;;  %p1775_p7 = scmp.lt.s32.totalorder %s1769_s18, %s1769_s18 }
  0x14   :  { %p1776_p8 = por %p1775_p7, %p1774_p6 }
  0x16   :  { %p1777_p9 = pnand %p1776_p8, %p1770_p5 }
  0x18   :  { %1780 = shalt.err (!%p1777_p9)
}
  0x19   :  { %s1894_s19 = smov 128   ;;  %s1895_s20 = smov 8  }
  0x1a   :  { %67 = dma.hbm_to_vmem [thread:$0]  %s2205_s4, 3072, %s62_s15, [#allocation10], %s1894_s19, %s1894_s19, %s1895_s20  }
  0x1b   :  { %s1789_s1 = scalar_lea.vmem %s26_s17, 128  ;;  %p1794_p11 = scmp.lt.s32.totalorder %s26_s17, %s26_s17 }
  0x1c   :  { %p1790_p10 = scmp.ne.s32.totalorder %s26_s17, %s1789_s1  ;;  %p1795_p12 = scmp.lt.s32.totalorder %s1789_s1, %s1789_s1 }
  0x1e   :  { %p1796_p13 = por %p1795_p12, %p1794_p11 }
  0x20   :  { %p1797_p0 = pnand %p1796_p13, %p1790_p10 }
  0x22   :  { %1800 = shalt.err (!%p1797_p0)
}
  0x23   :  { %s1896_s23 = smov 64   ;;  %s1897_s24 = smov 4  }
  0x24   :  { %31 = dma.hbm_to_vmem [thread:$0]  %s2201_s0, 128, %s26_s17, [#allocation4], %s1896_s23, %s1896_s23, %s1897_s24  }
  0x25   :  { %s1898_s27 = smov [#allocation8]   ;;  %s1899_s4 = smov [#allocation11]  }
  0x26   :  { %s47_s28 = sshll.u32 %s1898_s27, 4  ;;  %s75_s29 = sshll.u32 %s1899_s4, 4  ;;  %s48_s28 = int_to_ptr.vmem [resolvable:$true] %s47_s28  ;;  %s76_s29 = int_to_ptr.vmem [resolvable:$true] %s75_s29 }
  0x27   :  { %s1809_s30 = scalar_lea.vmem %s48_s28, 512  ;;  %p1814_p2 = scmp.lt.s32.totalorder %s48_s28, %s48_s28 }
  0x28   :  { %p1810_p1 = scmp.ne.s32.totalorder %s48_s28, %s1809_s30  ;;  %p1815_p3 = scmp.lt.s32.totalorder %s1809_s30, %s1809_s30 }
  0x2a   :  { %p1816_p4 = por %p1815_p3, %p1814_p2 }
  0x2c   :  { %p1817_p5 = pnand %p1816_p4, %p1810_p1 }
  0x2e   :  { %1820 = shalt.err (!%p1817_p5)
}
  0x2f   :  { %53 = dma.hbm_to_vmem [thread:$0]  %s2203_s2, 512, %s48_s28, [#allocation7], %s1894_s19, %s1894_s19, %s1895_s20  }
  0x30   :  { %s1829_s0 = scalar_lea.vmem %s76_s29, 512  ;;  %p1834_p7 = scmp.lt.s32.totalorder %s76_s29, %s76_s29 }
  0x31   :  { %p1830_p6 = scmp.ne.s32.totalorder %s76_s29, %s1829_s0  ;;  %p1835_p8 = scmp.lt.s32.totalorder %s1829_s0, %s1829_s0 }
  0x33   :  { %p1836_p9 = por %p1835_p8, %p1834_p7 }
  0x35   :  { %p1837_p10 = pnand %p1836_p9, %p1830_p6 }
  0x37   :  { %1840 = shalt.err (!%p1837_p10)
}
  0x38   :  { %81 = dma.hbm_to_vmem [thread:$0]  %s2207_s6, 512, %s76_s29, [#allocation10], %s1896_s23, %s1896_s23, %s1897_s24  }
  0x39   :  { %1881 = dma.done.wait [#allocation4], 128  }
  0x3a   :  { %1882 = vsyncadd [#allocation4], 4294967168 }
  0x3b   :  { %1883 = dma.done.wait [#allocation7], 640  }
  0x3c   :  { %1884 = vsyncadd [#allocation7], 4294966656 }
  0x3d   :  { %1885 = dma.done.wait [#allocation10], 3584  }
  0x3e   :  { %1886 = vsyncadd [#allocation10], 4294963712  ;;  %v1900_v0 = vmov 0   ;;  %v1662_v1 = vld [vmem:[#allocation8 + $0x14] ss:$8 sps:$4 sm:$0xff]   ;;  %vm143_vm0 = vcmask 261120   ;;  %v108_v30 = vlaneseq }
  0x3f   :  { %179 = vmatprep.mubr.bf16.mxu0 %v1900_v0  ;;  %v1664_v2 = vld [vmem:[#allocation8 + $0x10] ss:$8 sps:$4 sm:$0xff]   ;;  %159 = vmatprep.subr.bf16.mxu0 %v1662_v1  ;;  %v1665_v3 = vld [vmem:[#allocation8 + $0x4] ss:$8 sps:$4 sm:$0xff]   ;;  %v1667_v4 = vld [vmem:[#allocation8] ss:$8 sps:$4 sm:$0xff]  }
  0x40   :  { %160 = vmatpush1.bf16.msra.mxu0 %v1664_v2  ;;  %v1669_v5 = vld [vmem:[#allocation9 + $0x74] ss:$8 sps:$4 sm:$0xff]   ;;  %v1671_v6 = vld [vmem:[#allocation9 + $0x70] ss:$8 sps:$4 sm:$0xff]   ;;  %v1672_v7 = vld [vmem:[#allocation9 + $0x64] ss:$8 sps:$4 sm:$0xff]  }
  0x41   :  { %161 = vmatprep.subr.bf16.mxu0 %v1665_v3  ;;  %v1668_v8 = vld [vmem:[#allocation3] sm:$0xff]   ;;  %356 = vmatprep.subr.bf16.mxu1 %v1669_v5  ;;  %v1674_v9 = vld [vmem:[#allocation9 + $0x60] ss:$8 sps:$4 sm:$0xff]   ;;  %v1678_v12 = vld [vmem:[#allocation9 + $0x44] ss:$8 sps:$4 sm:$0xff]   ;;  %v109_v31 = vshrl.u32 %v108_v30, 7 }
  0x42   :  { %357 = vmatpush1.bf16.msra.mxu1 %v1671_v6  ;;  %v1675_v10 = vld [vmem:[#allocation9 + $0x54] ss:$8 sps:$4 sm:$0xff]   ;;  %v1677_v11 = vld [vmem:[#allocation9 + $0x50] ss:$8 sps:$4 sm:$0xff]   ;;  %v1680_v13 = vld [vmem:[#allocation9 + $0x40] ss:$8 sps:$4 sm:$0xff]  }
  0x43   :  { %358 = vmatprep.subr.bf16.mxu1 %v1672_v7  ;;  %v1681_v14 = vld [vmem:[#allocation9 + $0x34] ss:$8 sps:$4 sm:$0xff]   ;;  %v1683_v15 = vld [vmem:[#allocation9 + $0x30] ss:$8 sps:$4 sm:$0xff]   ;;  %v1684_v16 = vld [vmem:[#allocation9 + $0x24] ss:$8 sps:$4 sm:$0xff]  }
  0x44   :  { %162 = vmatpush1.bf16.msra.mxu0 %v1667_v4  ;;  %v1686_v17 = vld [vmem:[#allocation9 + $0x20] ss:$8 sps:$4 sm:$0xff]   ;;  %v1687_v18 = vld [vmem:[#allocation9 + $0x14] ss:$8 sps:$4 sm:$0xff]   ;;  %v1689_v19 = vld [vmem:[#allocation9 + $0x10] ss:$8 sps:$4 sm:$0xff]  }
  0x45   :  { %v1690_v20 = vld [vmem:[#allocation9 + $0x4] ss:$8 sps:$4 sm:$0xff]   ;;  %v1692_v21 = vld [vmem:[#allocation9] ss:$8 sps:$4 sm:$0xff]   ;;  %v1693_v22 = vld [vmem:[#allocation9 + $0xb4] ss:$8 sps:$4 sm:$0xff]  }
  0x46   :  { %359 = vmatpush1.bf16.msra.mxu1 %v1674_v9  ;;  %v1695_v23 = vld [vmem:[#allocation9 + $0xb0] ss:$8 sps:$4 sm:$0xff]   ;;  %v1696_v24 = vld [vmem:[#allocation9 + $0xa4] ss:$8 sps:$4 sm:$0xff]   ;;  %v1698_v25 = vld [vmem:[#allocation9 + $0xa0] ss:$8 sps:$4 sm:$0xff]  }
  0x47   :  { %1449 = vmatmul.mubr.msk.bf16.vlgmr.msra.gmra.mxu0 %vm143_vm0, %v1668_v8  ;;  %360 = vmatprep.subr.bf16.mxu1 %v1675_v10  ;;  %v1699_v26 = vld [vmem:[#allocation9 + $0x94] ss:$8 sps:$4 sm:$0xff]   ;;  %v1701_v27 = vld [vmem:[#allocation9 + $0x90] ss:$8 sps:$4 sm:$0xff]   ;;  %v1702_v28 = vld [vmem:[#allocation9 + $0x84] ss:$8 sps:$4 sm:$0xff]  }
  0x48   :  { %v1704_v29 = vld [vmem:[#allocation9 + $0x80] ss:$8 sps:$4 sm:$0xff]   ;;  %v114_v32 = vsub.s32 1, %v109_v31  ;;  %v110_v33 = vsub.s32 0, %v109_v31  ;;  %vm352_vm1 = vcmask 523264   ;;  %v1901_v51 = vmov 0.0  }
  0x49   :  { %v106_v34 = vld [vmem:[%s2204_s3] sm:$0x3]  ;;  %1534 = vmatprep.subr.bf16.mxu0 %v1901_v51  ;;  %vm1902_vm2 = vmmov 0   ;;  %vm405_vm3 = vcmask 130048   ;;  %vm468_vm4 = vcmask 1043456   ;;  %v2020_v0 = vld [vmem:[#allocation6] sm:$0xff] }
  0x4a   :  { %361 = vmatpush1.bf16.msra.mxu1 %v1677_v11  ;;  %v115_v36 = vrot.slane %v106_v34, %v114_v32  ;;  %v111_v37 = vrot.slane %v106_v34, %v110_v33  ;;  %v220_v52 = vld [vmem:[%s2206_s5] sm:$0x3]  ;;  %1536 = vmatprep.mubr.msk.bf16.mxu0 %vm1902_vm2, %v1901_v51  ;;  %vm452_vm5 = vcmask 64512   ;;  %s1903_s5 = smov 112   ;;  %s1904_s15 = smov 48   ;;  %vm628_vm6 = vcmask 261248  }
  0x4b   :  { %362 = vmatprep.subr.bf16.mxu1 %v1678_v12  ;;  %v1999_v53 = vrot.slane %v220_v52, %v110_v33  ;;  %v2006_v57 = vrot.slane %v220_v52, %v114_v32  ;;  %s1905_s16 = smov 96   ;;  %s1906_s17 = smov 80   ;;  %vm744_vm7 = vcmask 392448   ;;  %vm860_vm8 = vcmask 523648  }
  0x4c   :  { %s1907_s18 = smov 32   ;;  %s1908_s21 = smov 16  }
  0x4d   :  { %s1909_s22 = smov [#allocation13]  }
  0x4e   :  { %363 = vmatpush1.bf16.msra.mxu1 %v1680_v13  ;;  %s1426_s1 = sshll.u32 %s1909_s22, 4  ;;  %s1427_s1 = int_to_ptr.vmem [resolvable:$true] %s1426_s1 }
  0x4f   :  { %364 = vmatprep.subr.bf16.mxu1 %v1681_v14  ;;  %p1846_p12 = scmp.lt.s32.totalorder %s1427_s1, %s1427_s1 }
  0x52   :  { %365 = vmatpush1.bf16.msra.mxu1 %v1683_v15 }
  0x53   :  { %366 = vmatprep.subr.bf16.mxu1 %v1684_v16 }
  0x56   :  { %367 = vmatpush1.bf16.msra.mxu1 %v1686_v17 }
  0x57   :  { %368 = vmatprep.subr.bf16.mxu1 %v1687_v18 }
  0x5a   :  { %369 = vmatpush1.bf16.msra.mxu1 %v1689_v19 }
  0x5b   :  { %370 = vmatprep.subr.bf16.mxu1 %v1690_v20 }
  0x5e   :  { %371 = vmatpush1.bf16.msra.mxu1 %v1692_v21 }
  0x5f   :  { %380 = vmatprep.subr.bf16.mxu1 %v1693_v22 }
  0x62   :  { %381 = vmatpush2.bf16.msra.mxu1 %v1695_v23 }
  0x63   :  { %382 = vmatprep.subr.bf16.mxu1 %v1696_v24 }
  0x66   :  { %383 = vmatpush2.bf16.msra.mxu1 %v1698_v25 }
  0x67   :  { %384 = vmatprep.subr.bf16.mxu1 %v1699_v26 }
  0x6a   :  { %385 = vmatpush2.bf16.msra.mxu1 %v1701_v27 }
  0x6b   :  { %386 = vmatprep.subr.bf16.mxu1 %v1702_v28 }
  0x6e   :  { %387 = vmatpush2.bf16.msra.mxu1 %v1704_v29 }
  0x6f   :  { %1570 = vmatprep.subr.bf16.mxu1 %v1901_v51 }
 0x107   :  { %v181_v35 = vpop.f32.mrf.mxu0 }
 0x108   :  { %v182_v42 = vadd.f32 %v181_v35, %v111_v37 }
 0x109   :  { %v183_v38 = vpop.f32.mrf.mxu0 }
 0x10a   :  { %v184_v40 = vadd.f32 %v183_v38, %v115_v36  ;;  %v190_v48 = vmax.f32 %v182_v42, 0.0 }
 0x10b   :  { %v185_v39 = vpop.f32.mrf.mxu0 }
 0x10c   :  { %v186_v41 = vadd.f32 %v185_v39, %v111_v37  ;;  %v191_v46 = vmax.f32 %v184_v40, 0.0 }
 0x10d   :  { %v187_v43 = vpop.f32.mrf.mxu0 }
 0x10e   :  { %v188_v44 = vadd.f32 %v187_v43, %v115_v36  ;;  %v192_v45 = vmax.f32 %v186_v41, 0.0 }
 0x110   :  { %v193_v47 = vmax.f32 %v188_v44, 0.0  ;;  %v194_v50 = vpack.c.bf16 %v192_v45, %v190_v48 }
 0x112   :  { %v195_v49 = vpack.c.bf16 %v193_v47, %v191_v46 }
 0x114   :  { %1474 = vmatprep.mubr.msk.bf16.mxu1 %vm352_vm1, %v195_v49 }
 0x115   :  { %389 = vmatmul.mubr.bf16.vlgmr.msra.gmra.mxu1 %v194_v50 }
 0x116   :  { %1572 = vmatprep.mubr.msk.bf16.mxu1 %vm1902_vm2, %v1901_v51 }
 0x1d5   :  { %v390_v54 = vpop.f32.mrf.mxu1 }
 0x1d6   :  { %v391_v55 = vadd.f32 %v390_v54, %v1999_v53 }
 0x1d7   :  { %v392_v58 = vpop.f32.mrf.mxu1 }
 0x1d8   :  { %v2002_v56 = vpack.c.bf16 %v391_v55, %v391_v55  ;;  %v393_v60 = vadd.f32 %v392_v58, %v2006_v57 }
 0x1d9   :  { %v394_v31 = vpop.f32.mrf.mxu1 }
 0x1da   :  { %403 = vrot.lane.b32.xlu0 %v2002_v56, %s1896_s23  ;;  %v2011_v62 = vpack.c.bf16 %v393_v60, %v393_v60  ;;  %v395_v32 = vadd.f32 %v394_v31, %v1999_v53 }
 0x1dc   :  { %v470_v63 = vsel %vm468_vm4, %v2011_v62, 0  ;;  %v863_v33 = vpack.c.bf16 %v395_v32, %v395_v32 }
 0x24c   :  { %v404_v59 = vpop.permute.xlu0 %403 }
 0x24d   :  { %v410_v61 = vsel %vm405_vm3, %v404_v59, 0 }
 0x24e   :  { %1535 = vmatpush3.bf16.xpose.msra.mxu0 %v410_v61 }
 0x24f   :  { %1540 = vmatprep.subr.bf16.mxu0 %v1901_v51 }
 0x255   :  { %1537 = vmatmul.mubr.msk.bf16.vlgmr.msra.gmra.mxu0 %vm405_vm3, %v2002_v56 }
 0x256   :  { %1541 = vmatpush3.bf16.msra.mxu0 %v470_v63  ;;  %1542 = vmatprep.mubr.msk.bf16.mxu0 %vm1902_vm2, %v1901_v51  ;;  %v2094_v63 = vpop.f32.mrf.mxu1 }
 0x257   :  { %1546 = vmatprep.subr.bf16.mxu0 %v1901_v51 }
 0x315   :  { %v446_v1 = vpop.f32.mrf.mxu0 }
 0x316   :  { %v447_v2 = vadd.f32 %v446_v1, %v2020_v0 }
 0x317   :  { %v1538_v3 = vpop.f32.mrf.mxu0 }
 0x318   :  { %v453_v4 = vsel %vm452_vm5, %v447_v2, -inf }
 0x319   :  { %454 = vmax.xlane.f32.xlu0 %v453_v4  ;;  %v449_v5 = vpop.f32.mrf.mxu0 }
 0x31b   :  { %v1539_v6 = vpop.f32.mrf.mxu0 }
 0x32f   :  { %576 = vrot.lane.b32.xlu0 %v2011_v62, %s1903_s5 }
 0x3a2   :  { %v455_v7 = vpop.xlane.xlu0 %454 }
 0x3a3   :  { %v456_v8 = vsub.f32 %v447_v2, %v455_v7 }
 0x3a5   :  { %v457_v9 = vmul.f32 1.442695, %v456_v8 }
 0x3a6   :  { %v577_v18 = vpop.permute.xlu0 %576 }
 0x3a7   :  { %1709 = vpow2.f32 %v457_v9  ;;  %v582_v20 = vsel %vm468_vm4, %v577_v18, 0 }
 0x3b4   :  { %v1710_v10 = vpop.eup %1709 }
 0x3b5   :  { %v459_v11 = vsel %vm452_vm5, %v1710_v10, 0.0 }
 0x3b6   :  { %460 = vadd.xlane.f32.xlu1 %v459_v11 }
 0x3c7   :  { %515 = vrot.lane.b32.xlu1 %v2002_v56, %s1904_s15 }
 0x3cb   :  { %513 = vrot.lane.b32.xlu1 %v2002_v56, %s1903_s5 }
 0x43f   :  { %v461_v12 = vpop.xlane.xlu1 %460 }
 0x440   :  { %1711 = vrcp.f32 %v461_v12 }
 0x443   :  { %v516_v15 = vpop.permute.xlu1 %515 }
 0x444   :  { %v521_v17 = vsel %vm405_vm3, %v516_v15, 0 }
 0x447   :  { %v514_v19 = vpop.permute.xlu1 %513 }
 0x44d   :  { %v1712_v13 = vpop.eup %1711 }
 0x44e   :  { %v463_v14 = vmul.f32 %v1712_v13, %v1710_v10 }
 0x450   :  { %v464_v16 = vpack.c.bf16 %v463_v14, %v463_v14 }
 0x452   :  { %1543 = vmatmul.mubr.msk.bf16.vlgmr.msra.gmra.mxu0 %vm452_vm5, %v464_v16 }
 0x453   :  { %1547 = vmatpush3.bf16.xpose.msra.mxu0 %v521_v17  ;;  %1548 = vmatprep.mubr.msk.bf16.mxu0 %vm1902_vm2, %v1901_v51 }
 0x454   :  { %1552 = vmatprep.subr.bf16.mxu0 %v1901_v51 }
 0x45a   :  { %1549 = vmatmul.mubr.msk.bf16.vlgmr.msra.gmra.mxu0 %vm405_vm3, %v514_v19 }
 0x45b   :  { %1553 = vmatpush3.bf16.msra.mxu0 %v582_v20  ;;  %1554 = vmatprep.mubr.msk.bf16.mxu0 %vm1902_vm2, %v1901_v51 }
 0x45c   :  { %1558 = vmatprep.subr.bf16.mxu0 %v1901_v51 }
 0x512   :  { %v506_v21 = vpop.f32.mrf.mxu0 }
 0x513   :  { %512 = vst.msk [vmem:[#allocation2] sm:$0xff] %vm405_vm3, %v506_v21 }
 0x514   :  { %v1544_v22 = vpop.f32.mrf.mxu0 }
 0x516   :  { %v509_v23 = vpop.f32.mrf.mxu0 }
 0x518   :  { %v1545_v24 = vpop.f32.mrf.mxu0 }
 0x51a   :  { %v557_v25 = vpop.f32.mrf.mxu0 }
 0x51b   :  { %v558_v26 = vadd.f32 %v557_v25, %v2020_v0 }
 0x51c   :  { %v1550_v27 = vpop.f32.mrf.mxu0 }
 0x51d   :  { %v563_v28 = vsel %vm452_vm5, %v558_v26, -inf }
 0x51e   :  { %564 = vmax.xlane.f32.xlu1 %v563_v28  ;;  %v560_v29 = vpop.f32.mrf.mxu0 }
 0x520   :  { %v1551_v30 = vpop.f32.mrf.mxu0 }
 0x52f   :  { %630 = vrot.lane.b32.xlu1 %v2002_v56, %s1905_s16 }
 0x533   :  { %973 = vrot.lane.b32.xlu1 %v863_v33, %s1903_s5 }
 0x537   :  { %1089 = vrot.lane.b32.xlu1 %v863_v33, %s1905_s16 }
 0x53b   :  { %1204 = vrot.lane.b32.xlu1 %v863_v33, %s1906_s17 }
 0x5a7   :  { %v565_v34 = vpop.xlane.xlu1 %564 }
 0x5a8   :  { %v566_v35 = vsub.f32 %v558_v26, %v565_v34 }
 0x5aa   :  { %v567_v36 = vmul.f32 1.442695, %v566_v35 }
 0x5ab   :  { %v631_v53 = vpop.permute.xlu1 %630 }
 0x5ac   :  { %1713 = vpow2.f32 %v567_v36 }
 0x5af   :  { %v974_v55 = vpop.permute.xlu1 %973 }
 0x5b3   :  { %v1090_v59 = vpop.permute.xlu1 %1089 }
 0x5b7   :  { %v1205_v61 = vpop.permute.xlu1 %1204 }
 0x5b9   :  { %v1714_v37 = vpop.eup %1713 }
 0x5ba   :  { %v569_v38 = vsel %vm452_vm5, %v1714_v37, 0.0 }
 0x5bb   :  { %570 = vadd.xlane.f32.xlu0 %v569_v38 }
 0x5d1   :  { %632 = vrot.lane.b32.xlu0 %v2002_v56, %s1907_s18 }
 0x5d5   :  { %748 = vrot.lane.b32.xlu0 %v2002_v56, %s1908_s21 }
 0x5d9   :  { %746 = vrot.lane.b32.xlu0 %v2002_v56, %s1906_s17 }
 0x5dd   :  { %866 = vrot.lane.b32.xlu0 %v863_v33, %s1896_s23  ;;  %s1841_s23 = scalar_lea.vmem %s1427_s1, 256 }
 0x5de   :  { %p1842_p11 = scmp.ne.s32.totalorder %s1427_s1, %s1841_s23  ;;  %p1847_p13 = scmp.lt.s32.totalorder %s1841_s23, %s1841_s23 }
 0x5e0   :  { %p1848_p0 = por %p1847_p13, %p1846_p12 }
 0x5e1   :  { %975 = vrot.lane.b32.xlu0 %v863_v33, %s1904_s15 }
 0x5e2   :  { %p1849_p1 = pnand %p1848_p0, %p1842_p11 }
 0x5e5   :  { %1091 = vrot.lane.b32.xlu0 %v863_v33, %s1907_s18 }
 0x5e9   :  { %1206 = vrot.lane.b32.xlu0 %v863_v33, %s1908_s21 }
 0x644   :  { %v571_v39 = vpop.xlane.xlu0 %570 }
 0x645   :  { %1715 = vrcp.f32 %v571_v39 }
 0x648   :  { %v633_v40 = vpop.permute.xlu0 %632 }
 0x649   :  { %v638_v49 = vsel %vm405_vm3, %v633_v40, 0 }
 0x64c   :  { %v749_v41 = vpop.permute.xlu0 %748 }
 0x64d   :  { %v754_v42 = vsel %vm405_vm3, %v749_v41, 0 }
 0x64e   :  { %1571 = vmatpush3.bf16.xpose.msra.mxu1 %v754_v42 }
 0x64f   :  { %1582 = vmatprep.subr.bf16.mxu1 %v1901_v51 }
 0x650   :  { %v747_v43 = vpop.permute.xlu0 %746 }
 0x652   :  { %v1716_v44 = vpop.eup %1715 }
 0x653   :  { %v573_v45 = vmul.f32 %v1716_v44, %v1714_v37 }
 0x654   :  { %v867_v46 = vpop.permute.xlu0 %866 }
 0x655   :  { %v872_v47 = vsel %vm405_vm3, %v867_v46, 0  ;;  %1573 = vmatmul.mubr.msk.bf16.vlgmr.msra.gmra.mxu1 %vm405_vm3, %v747_v43  ;;  %v574_v48 = vpack.c.bf16 %v573_v45, %v573_v45 }
 0x656   :  { %1583 = vmatpush3.bf16.xpose.msra.mxu1 %v872_v47  ;;  %1584 = vmatprep.mubr.msk.bf16.mxu1 %vm1902_vm2, %v1901_v51 }
 0x657   :  { %1555 = vmatmul.mubr.msk.bf16.vlgmr.msra.gmra.mxu0 %vm452_vm5, %v574_v48  ;;  %1594 = vmatprep.subr.bf16.mxu1 %v1901_v51 }
 0x658   :  { %1559 = vmatpush3.bf16.xpose.msra.mxu0 %v638_v49  ;;  %1560 = vmatprep.mubr.msk.bf16.mxu0 %vm1902_vm2, %v1901_v51  ;;  %v976_v50 = vpop.permute.xlu0 %975 }
 0x659   :  { %1564 = vmatprep.subr.bf16.mxu0 %v1901_v51  ;;  %v981_v52 = vsel %vm405_vm3, %v976_v50, 0 }
 0x65c   :  { %v1092_v54 = vpop.permute.xlu0 %1091 }
 0x65d   :  { %1585 = vmatmul.mubr.msk.bf16.vlgmr.msra.gmra.mxu1 %vm405_vm3, %v863_v33  ;;  %v1097_v56 = vsel %vm405_vm3, %v1092_v54, 0 }
 0x65e   :  { %1595 = vmatpush3.bf16.xpose.msra.mxu1 %v981_v52  ;;  %1596 = vmatprep.mubr.msk.bf16.mxu1 %vm1902_vm2, %v1901_v51 }
 0x65f   :  { %1561 = vmatmul.mubr.msk.bf16.vlgmr.msra.gmra.mxu0 %vm405_vm3, %v631_v53  ;;  %1606 = vmatprep.subr.bf16.mxu1 %v1901_v51 }
 0x660   :  { %1566 = vmatprep.mubr.msk.bf16.mxu0 %vm1902_vm2, %v1901_v51  ;;  %v1207_v58 = vpop.permute.xlu0 %1206 }
 0x661   :  { %v1212_v60 = vsel %vm405_vm3, %v1207_v58, 0 }
 0x665   :  { %1597 = vmatmul.mubr.msk.bf16.vlgmr.msra.gmra.mxu1 %vm405_vm3, %v974_v55 }
 0x666   :  { %1607 = vmatpush3.bf16.xpose.msra.mxu1 %v1097_v56  ;;  %1608 = vmatprep.mubr.msk.bf16.mxu1 %vm1902_vm2, %v1901_v51 }
 0x667   :  { %1618 = vmatprep.subr.bf16.mxu1 %v1901_v51 }
 0x66d   :  { %1609 = vmatmul.mubr.msk.bf16.vlgmr.msra.gmra.mxu1 %vm405_vm3, %v1090_v59 }
 0x66e   :  { %1619 = vmatpush3.bf16.xpose.msra.mxu1 %v1212_v60  ;;  %1620 = vmatprep.mubr.msk.bf16.mxu1 %vm1902_vm2, %v1901_v51 }
 0x66f   :  { %1630 = vmatprep.subr.bf16.mxu1 %v1901_v51 }
 0x675   :  { %1621 = vmatmul.mubr.msk.bf16.vlgmr.msra.gmra.mxu1 %vm405_vm3, %v1205_v61 }
 0x676   :  { %1638 = vmatprep.mubr.msk.bf16.mxu1 %vm1902_vm2, %v1901_v51 }
 0x715   :  { %v790_v1 = vpop.f32.mrf.mxu1 }
 0x716   :  { %v791_v2 = vadd.f32 %v790_v1, %v2020_v0 }
 0x717   :  { %v2097_v3 = vpop.f32.mrf.mxu0  ;;  %v1574_v4 = vpop.f32.mrf.mxu1 }
 0x718   :  { %v796_v5 = vsel %vm452_vm5, %v791_v2, -inf }
 0x719   :  { %797 = vmax.xlane.f32.xlu1 %v796_v5  ;;  %v1556_v6 = vpop.f32.mrf.mxu0  ;;  %v793_v7 = vpop.f32.mrf.mxu1 }
 0x71b   :  { %v621_v8 = vpop.f32.mrf.mxu0  ;;  %v1575_v9 = vpop.f32.mrf.mxu1 }
 0x71c   :  { %v397_v8 = vadd.f32 %v2094_v63, %v2006_v57 }
 0x71d   :  { %v1557_v10 = vpop.f32.mrf.mxu0  ;;  %v908_v11 = vpop.f32.mrf.mxu1 }
 0x71e   :  { %v909_v17 = vadd.f32 %v908_v11, %v2020_v0  ;;  %v864_v10 = vpack.c.bf16 %v397_v8, %v397_v8 }
 0x71f   :  { %v674_v12 = vpop.f32.mrf.mxu0  ;;  %v1586_v13 = vpop.f32.mrf.mxu1 }
 0x720   :  { %v675_v14 = vadd.f32 %v674_v12, %v2020_v0  ;;  %v914_v24 = vsel %vm452_vm5, %v909_v17, -inf }
 0x721   :  { %v1562_v15 = vpop.f32.mrf.mxu0  ;;  %v911_v16 = vpop.f32.mrf.mxu1 }
 0x722   :  { %v680_v18 = vsel %vm452_vm5, %v675_v14, -inf }
 0x723   :  { %v1587_v19 = vpop.f32.mrf.mxu1  ;;  %681 = vmax.xlane.f32.xlu0 %v680_v18  ;;  %v677_v20 = vpop.f32.mrf.mxu0 }
 0x725   :  { %v1563_v21 = vpop.f32.mrf.mxu0  ;;  %v1017_v22 = vpop.f32.mrf.mxu1 }
 0x726   :  { %v1018_v23 = vadd.f32 %v1017_v22, %v2020_v0 }
 0x727   :  { %v1598_v25 = vpop.f32.mrf.mxu1  ;;  %915 = vmax.xlane.f32.xlu0 %v914_v24 }
 0x728   :  { %v1023_v27 = vsel %vm452_vm5, %v1018_v23, -inf }
 0x729   :  { %v1020_v26 = vpop.f32.mrf.mxu1 }
 0x72b   :  { %v1599_v28 = vpop.f32.mrf.mxu1  ;;  %1024 = vmax.xlane.f32.xlu0 %v1023_v27 }
 0x72d   :  { %v1133_v29 = vpop.f32.mrf.mxu1 }
 0x72e   :  { %v1134_v30 = vadd.f32 %v1133_v29, %v2020_v0 }
 0x72f   :  { %v1610_v31 = vpop.f32.mrf.mxu1 }
 0x730   :  { %v1139_v32 = vsel %vm452_vm5, %v1134_v30, -inf }
 0x731   :  { %1140 = vmax.xlane.f32.xlu1 %v1139_v32  ;;  %v1136_v33 = vpop.f32.mrf.mxu1 }
 0x733   :  { %v1611_v34 = vpop.f32.mrf.mxu1 }
 0x735   :  { %v1248_v35 = vpop.f32.mrf.mxu1 }
 0x736   :  { %v1249_v36 = vadd.f32 %v1248_v35, %v2020_v0 }
 0x737   :  { %v1622_v37 = vpop.f32.mrf.mxu1 }
 0x738   :  { %v1254_v38 = vsel %vm452_vm5, %v1249_v36, -inf }
 0x739   :  { %v1251_v39 = vpop.f32.mrf.mxu1  ;;  %1255 = vmax.xlane.f32.xlu0 %v1254_v38 }
 0x73b   :  { %v1623_v40 = vpop.f32.mrf.mxu1 }
 0x7a2   :  { %v798_v41 = vpop.xlane.xlu1 %797 }
 0x7a3   :  { %v799_v42 = vsub.f32 %v791_v2, %v798_v41 }
 0x7a5   :  { %v800_v43 = vmul.f32 1.442695, %v799_v42 }
 0x7a7   :  { %1717 = vpow2.f32 %v800_v43 }
 0x7ac   :  { %v682_v44 = vpop.xlane.xlu0 %681 }
 0x7ad   :  { %v683_v45 = vsub.f32 %v675_v14, %v682_v44 }
 0x7af   :  { %v684_v48 = vmul.f32 1.442695, %v683_v45 }
 0x7b0   :  { %v916_v46 = vpop.xlane.xlu0 %915 }
 0x7b1   :  { %v917_v47 = vsub.f32 %v909_v17, %v916_v46 }
 0x7b3   :  { %v918_v49 = vmul.f32 1.442695, %v917_v47 }
 0x7b4   :  { %v1718_v50 = vpop.eup %1717  ;;  %v1025_v52 = vpop.xlane.xlu0 %1024 }
 0x7b5   :  { %1719 = vpow2.f32 %v918_v49  ;;  %v1026_v0 = vsub.f32 %v1018_v23, %v1025_v52  ;;  %v802_v53 = vsel %vm452_vm5, %v1718_v50, 0.0 }
 0x7b6   :  { %803 = vadd.xlane.f32.xlu0 %v802_v53  ;;  %1721 = vpow2.f32 %v684_v48 }
 0x7b7   :  { %v1027_v54 = vmul.f32 1.442695, %v1026_v0 }
 0x7b9   :  { %1723 = vpow2.f32 %v1027_v54 }
 0x7ba   :  { %v1141_v55 = vpop.xlane.xlu1 %1140 }
 0x7bb   :  { %v1142_v56 = vsub.f32 %v1134_v30, %v1141_v55  ;;  %v930_v30 = vsel %vm468_vm4, %v864_v10, 0 }
 0x7bd   :  { %v1143_v58 = vmul.f32 1.442695, %v1142_v56 }
 0x7bf   :  { %1725 = vpow2.f32 %v1143_v58  ;;  %v1705_v58 = vld [vmem:[#allocation11 + $0x18] sm:$0xff]  }
 0x7c0   :  { %1631 = vmatpush3.bf16.msra.mxu1 %v1705_v58 }
 0x7c1   :  { %1632 = vmatprep.subr.bf16.mxu1 %v1901_v51 }
 0x7c2   :  { %v2111_v59 = vpop.eup %1719  ;;  %v1256_v7 = vpop.xlane.xlu0 %1255 }
 0x7c3   :  { %v920_v60 = vsel %vm452_vm5, %v2111_v59, 0.0  ;;  %v1722_v61 = vpop.eup %1721  ;;  %v1257_v9 = vsub.f32 %v1249_v36, %v1256_v7 }
 0x7c4   :  { %921 = vadd.xlane.f32.xlu1 %v920_v60  ;;  %v686_v2 = vsel %vm452_vm5, %v1722_v61, 0.0  ;;  %v1706_v60 = vld [vmem:[#allocation11 + $0x10] sm:$0xff]  }
 0x7c5   :  { %v1258_v11 = vmul.f32 1.442695, %v1257_v9  ;;  %1633 = vmatpush3.bf16.msra.mxu1 %v1706_v60  ;;  %v1707_v9 = vld [vmem:[#allocation11 + $0x8] sm:$0xff]  }
 0x7c6   :  { %v2115_v1 = vpop.eup %1723  ;;  %1634 = vmatprep.subr.bf16.mxu1 %v1901_v51 }
 0x7c7   :  { %v1029_v4 = vsel %vm452_vm5, %v2115_v1, 0.0  ;;  %1727 = vpow2.f32 %v1258_v11 }
 0x7c8   :  { %687 = vadd.xlane.f32.xlu1 %v686_v2  ;;  %1030 = vadd.xlane.f32.xlu0 %v1029_v4 }
 0x7c9   :  { %1635 = vmatpush3.bf16.msra.mxu1 %v1707_v9 }
 0x7ca   :  { %1636 = vmatprep.subr.bf16.mxu1 %v1901_v51 }
 0x7cc   :  { %v2120_v5 = vpop.eup %1725 }
 0x7cd   :  { %v1145_v6 = vsel %vm452_vm5, %v2120_v5, 0.0 }
 0x7ce   :  { %1146 = vadd.xlane.f32.xlu0 %v1145_v6 }
 0x7d4   :  { %v2135_v12 = vpop.eup %1727 }
 0x7d5   :  { %v1260_v57 = vsel %vm452_vm5, %v2135_v12, 0.0 }
 0x7d9   :  { %692 = vrot.lane.b32.xlu1 %v2011_v62, %s1905_s16 }
 0x7e4   :  { %808 = vrot.lane.b32.xlu0 %v2011_v62, %s1906_s17 }
 0x7e8   :  { %1036 = vrot.lane.b32.xlu0 %v864_v10, %s1903_s5 }
 0x7ec   :  { %1151 = vrot.lane.b32.xlu0 %v864_v10, %s1905_s16 }
 0x7f0   :  { %1266 = vrot.lane.b32.xlu0 %v864_v10, %s1906_s17  ;;  %v1708_v10 = vld [vmem:[#allocation11] sm:$0xff]  }
 0x7f1   :  { %1637 = vmatpush3.bf16.msra.mxu1 %v1708_v10 }
 0x7f4   :  { %625 = vrot.lane.b32.xlu0 %v2097_v3, %s1908_s21 }
 0x7fd   :  { %1261 = vadd.xlane.f32.xlu1 %v1260_v57 }
 0x83f   :  { %v804_v63 = vpop.xlane.xlu0 %803 }
 0x840   :  { %1729 = vrcp.f32 %v804_v63 }
 0x84d   :  { %v1730_v62 = vpop.eup %1729  ;;  %v922_v13 = vpop.xlane.xlu1 %921 }
 0x84e   :  { %v806_v14 = vmul.f32 %v1730_v62, %v1718_v50 }
 0x850   :  { %862 = vst.msk [vmem:[#allocation13] sm:$0xff] %vm452_vm5, %v806_v14  ;;  %v807_v27 = vpack.c.bf16 %v806_v14, %v806_v14 }
 0x851   :  { %v688_v15 = vpop.xlane.xlu1 %687  ;;  %v1031_v16 = vpop.xlane.xlu0 %1030 }
 0x852   :  { %1731 = vrcp.f32 %v688_v15 }
 0x853   :  { %1733 = vrcp.f32 %v922_v13 }
 0x854   :  { %1735 = vrcp.f32 %v1031_v16 }
 0x855   :  { %v693_v17 = vpop.permute.xlu1 %692 }
 0x856   :  { %v698_v18 = vsel %vm468_vm4, %v693_v17, 0 }
 0x857   :  { %1565 = vmatpush3.bf16.msra.mxu0 %v698_v18  ;;  %v1147_v3 = vpop.xlane.xlu0 %1146 }
 0x858   :  { %1576 = vmatprep.subr.bf16.mxu0 %v1901_v51  ;;  %1737 = vrcp.f32 %v1147_v3 }
 0x85b   :  { %v809_v19 = vpop.permute.xlu0 %808 }
 0x85c   :  { %v814_v25 = vsel %vm468_vm4, %v809_v19, 0 }
 0x85f   :  { %v1732_v20 = vpop.eup %1731  ;;  %v1037_v21 = vpop.permute.xlu0 %1036 }
 0x860   :  { %v690_v22 = vmul.f32 %v1732_v20, %v1722_v61  ;;  %v1734_v28 = vpop.eup %1733  ;;  %v1042_v34 = vsel %vm468_vm4, %v1037_v21, 0 }
 0x861   :  { %v924_v31 = vmul.f32 %v1734_v28, %v2111_v59  ;;  %v1736_v33 = vpop.eup %1735 }
 0x862   :  { %v691_v23 = vpack.c.bf16 %v690_v22, %v690_v22  ;;  %v1033_v35 = vmul.f32 %v1736_v33, %v2115_v1 }
 0x863   :  { %v1152_v24 = vpop.permute.xlu0 %1151  ;;  %v925_v32 = vpack.c.bf16 %v924_v31, %v924_v31 }
 0x864   :  { %1567 = vmatmul.mubr.msk.bf16.vlgmr.msra.gmra.mxu0 %vm452_vm5, %v691_v23  ;;  %v1034_v36 = vpack.c.bf16 %v1033_v35, %v1033_v35  ;;  %v1157_v38 = vsel %vm468_vm4, %v1152_v24, 0 }
 0x865   :  { %1577 = vmatpush3.bf16.msra.mxu0 %v814_v25  ;;  %1578 = vmatprep.mubr.msk.bf16.mxu0 %vm1902_vm2, %v1901_v51  ;;  %v1738_v37 = vpop.eup %1737 }
 0x866   :  { %1588 = vmatprep.subr.bf16.mxu0 %v1901_v51  ;;  %v1149_v39 = vmul.f32 %v1738_v37, %v2120_v5 }
 0x867   :  { %v1267_v26 = vpop.permute.xlu0 %1266 }
 0x868   :  { %v1150_v40 = vpack.c.bf16 %v1149_v39, %v1149_v39  ;;  %v1272_v41 = vsel %vm468_vm4, %v1267_v26, 0 }
 0x86b   :  { %v626_v29 = vpop.permute.xlu0 %625 }
 0x86c   :  { %629 = vst.msk [vmem:[#allocation2] sm:$0xff] %vm628_vm6, %v626_v29  ;;  %1579 = vmatmul.mubr.msk.bf16.vlgmr.msra.gmra.mxu0 %vm452_vm5, %v807_v27 }
 0x86d   :  { %1589 = vmatpush3.bf16.msra.mxu0 %v930_v30  ;;  %1590 = vmatprep.mubr.msk.bf16.mxu0 %vm1902_vm2, %v1901_v51 }
 0x86e   :  { %1600 = vmatprep.subr.bf16.mxu0 %v1901_v51 }
 0x874   :  { %1591 = vmatmul.mubr.msk.bf16.vlgmr.msra.gmra.mxu0 %vm452_vm5, %v925_v32 }
 0x875   :  { %1601 = vmatpush3.bf16.msra.mxu0 %v1042_v34  ;;  %1602 = vmatprep.mubr.msk.bf16.mxu0 %vm1902_vm2, %v1901_v51 }
 0x876   :  { %1612 = vmatprep.subr.bf16.mxu0 %v1901_v51 }
 0x87c   :  { %1603 = vmatmul.mubr.msk.bf16.vlgmr.msra.gmra.mxu0 %vm452_vm5, %v1034_v36 }
 0x87d   :  { %1613 = vmatpush3.bf16.msra.mxu0 %v1157_v38  ;;  %1614 = vmatprep.mubr.msk.bf16.mxu0 %vm1902_vm2, %v1901_v51 }
 0x87e   :  { %1624 = vmatprep.subr.bf16.mxu0 %v1901_v51 }
 0x884   :  { %1615 = vmatmul.mubr.msk.bf16.vlgmr.msra.gmra.mxu0 %vm452_vm5, %v1150_v40 }
 0x885   :  { %1625 = vmatpush3.bf16.msra.mxu0 %v1272_v41  ;;  %1626 = vmatprep.mubr.msk.bf16.mxu0 %vm1902_vm2, %v1901_v51 }
 0x886   :  { %v1262_v42 = vpop.xlane.xlu1 %1261 }
 0x887   :  { %1739 = vrcp.f32 %v1262_v42 }
 0x894   :  { %v1740_v43 = vpop.eup %1739 }
 0x895   :  { %v1264_v44 = vmul.f32 %v1740_v43, %v2135_v12 }
 0x897   :  { %v1265_v45 = vpack.c.bf16 %v1264_v44, %v1264_v44  ;;  %1320 = vst.msk [vmem:[#allocation13 + $0x8] sm:$0xff] %vm452_vm5, %v1264_v44 }
 0x899   :  { %1627 = vmatmul.mubr.msk.bf16.vlgmr.msra.gmra.mxu0 %vm452_vm5, %v1265_v45 }
 0x924   :  { %v734_v46 = vpop.f32.mrf.mxu0 }
 0x925   :  { %741 = vrot.lane.b32.xlu0 %v734_v46, %s1907_s18 }
 0x926   :  { %v1568_v47 = vpop.f32.mrf.mxu0 }
 0x928   :  { %v737_v48 = vpop.f32.mrf.mxu0 }
 0x92a   :  { %v1569_v49 = vpop.f32.mrf.mxu0 }
 0x92c   :  { %v850_v50 = vpop.f32.mrf.mxu0 }
 0x92d   :  { %857 = vrot.lane.b32.xlu1 %v850_v50, %s1904_s15 }
 0x92e   :  { %v1580_v52 = vpop.f32.mrf.mxu0 }
 0x930   :  { %v853_v0 = vpop.f32.mrf.mxu0 }
 0x932   :  { %v1581_v53 = vpop.f32.mrf.mxu0 }
 0x934   :  { %v966_v54 = vpop.f32.mrf.mxu0 }
 0x935   :  { %972 = vst.msk [vmem:[#allocation2 + $0x8] sm:$0xff] %vm405_vm3, %v966_v54 }
 0x936   :  { %v1592_v55 = vpop.f32.mrf.mxu0 }
 0x938   :  { %v969_v56 = vpop.f32.mrf.mxu0 }
 0x93a   :  { %v1593_v59 = vpop.f32.mrf.mxu0 }
 0x93c   :  { %v1078_v61 = vpop.f32.mrf.mxu0 }
 0x93d   :  { %1085 = vrot.lane.b32.xlu0 %v1078_v61, %s1908_s21 }
 0x93e   :  { %v1604_v1 = vpop.f32.mrf.mxu0 }
 0x940   :  { %v1081_v2 = vpop.f32.mrf.mxu0 }
 0x942   :  { %v1605_v4 = vpop.f32.mrf.mxu0 }
 0x944   :  { %v1193_v5 = vpop.f32.mrf.mxu0 }
 0x945   :  { %1200 = vrot.lane.b32.xlu0 %v1193_v5, %s1907_s18 }
 0x946   :  { %v1616_v6 = vpop.f32.mrf.mxu0 }
 0x948   :  { %v1196_v7 = vpop.f32.mrf.mxu0 }
 0x94a   :  { %v1617_v8 = vpop.f32.mrf.mxu0 }
 0x959   :  { %v1308_v11 = vpop.f32.mrf.mxu0 }
 0x95a   :  { %1315 = vrot.lane.b32.xlu0 %v1308_v11, %s1904_s15 }
 0x95b   :  { %v1628_v12 = vpop.f32.mrf.mxu0 }
 0x95d   :  { %v1311_v57 = vpop.f32.mrf.mxu0 }
 0x95f   :  { %v1629_v63 = vpop.f32.mrf.mxu0 }
 0x997   :  { %v742_v62 = vpop.permute.xlu0 %741 }
 0x998   :  { %745 = vst.msk [vmem:[#allocation2] sm:$0xff] %vm744_vm7, %v742_v62 }
 0x99f   :  { %v858_v13 = vpop.permute.xlu1 %857 }
 0x9a0   :  { %861 = vst.msk [vmem:[#allocation2] sm:$0xff] %vm860_vm8, %v858_v13 }
 0x9a7   :  { %v1321_v51 = vld [vmem:[#allocation2] sm:$0xff] }
 0x9af   :  { %v1086_v14 = vpop.permute.xlu0 %1085 }
 0x9b0   :  { %1088 = vst.msk [vmem:[#allocation2 + $0x8] sm:$0xff] %vm628_vm6, %v1086_v14 }
 0x9b7   :  { %v1201_v15 = vpop.permute.xlu0 %1200 }
 0x9b8   :  { %1203 = vst.msk [vmem:[#allocation2 + $0x8] sm:$0xff] %vm744_vm7, %v1201_v15 }
 0x9cc   :  { %v1316_v16 = vpop.permute.xlu0 %1315 }
 0x9cd   :  { %1318 = vst.msk [vmem:[#allocation2 + $0x8] sm:$0xff] %vm860_vm8, %v1316_v16 }
 0x9d4   :  { %v1322_v17 = vld [vmem:[#allocation2 + $0x8] sm:$0xff] }
 0x9d5   :  { %v1323_v18 = vpack.c.bf16 %v1322_v17, %v1321_v51 }
 0x9d7   :  { %1639 = vmatmul.mubr.msk.bf16.vlgmr.msra.gmra.mxu1 %vm352_vm1, %v1323_v18 }
 0x9d8   :  { %1852 = shalt.err (!%p1849_p1)
}
 0x9d9   :  { %1432 = dma.vmem_to_hbm [thread:$0]  %s1427_s1, 256, %s2210_s9, [#allocation14], %s1894_s19, %s1894_s19, %s1895_s20  }
 0x9da   :  { %v1491_v3 = vld [vmem:[%s2208_s7] ss:$0 sm:$0xff]  ;;  %s1910_s28 = smov [#allocation12]  }
 0x9db   :  { %s1414_s4 = sshll.u32 %s1910_s28, 4  ;;  %s1415_s4 = int_to_ptr.vmem [resolvable:$true] %s1414_s4 }
 0x9dc   :  { %s1861_s29 = scalar_lea.vmem %s1415_s4, 256  ;;  %p1866_p3 = scmp.lt.s32.totalorder %s1415_s4, %s1415_s4 }
 0x9dd   :  { %p1862_p2 = scmp.ne.s32.totalorder %s1415_s4, %s1861_s29  ;;  %p1867_p4 = scmp.lt.s32.totalorder %s1861_s29, %s1861_s29 }
 0x9df   :  { %p1868_p5 = por %p1867_p4, %p1866_p3 }
 0x9e1   :  { %p1869_p6 = pnand %p1868_p5, %p1862_p2 }
 0xa97   :  { %v1400_v19 = vpop.f32.mrf.mxu1 }
 0xa98   :  { %v1401_v20 = vadd.f32 %v1491_v3, %v1400_v19 }
 0xa99   :  { %v1640_v21 = vpop.f32.mrf.mxu1 }
 0xa9a   :  { %1407 = vst.msk [vmem:[#allocation12] sm:$0xff] %vm352_vm1, %v1401_v20 }
 0xa9b   :  { %v1403_v22 = vpop.f32.mrf.mxu1 }
 0xa9c   :  { %v1404_v23 = vadd.f32 %v1491_v3, %v1403_v22 }
 0xa9d   :  { %v1641_v24 = vpop.f32.mrf.mxu1 }
 0xa9e   :  { %1408 = vst.msk [vmem:[#allocation12 + $0x8] sm:$0xff] %vm352_vm1, %v1404_v23 }
 0xa9f   :  { %1872 = shalt.err (!%p1869_p6)
}
 0xaa0   :  { %1420 = dma.vmem_to_hbm [thread:$0]  %s1415_s4, 256, %s2209_s8, [#allocation5], %s1894_s19, %s1894_s19, %s1895_s20  }
 0xaa1   :  { %1887 = dma.done.wait [#allocation5], 256  }
 0xaa2   :  { %1888 = vsyncadd [#allocation5], 4294967040 }
 0xaa3   :  { %1889 = dma.done.wait [#allocation14], 256  }
 0xaa4   :  { %1890 = vsyncadd [#allocation14], 4294967040 }
 0xaa5   :  { %1439 = vsyncpa [#allocation4], 1 }
 0xaa6   :  { %1440 = vsyncpa [#allocation7], 1 }
 0xaa7   :  { %1441 = vsyncpa [#allocation10], 1 }
 0xaa8   :  { %1442 = vsyncpa [#allocation5], 1 }
 0xaa9   :  { %1443 = vsyncpa [#allocation14], 1 }

</bundles_post_ra>
